<compile_context>
chip_gen: v7x
topology: tpu7x:2x2x1
jax: 0.10.0
libtpu: 0.0.40
codegen_flags: <defaults>
</compile_context>

<pallas_src>
import jax
import jax.numpy as jnp
from jax import lax
from jax.experimental import pallas as pl
from jax.experimental.pallas import tpu as pltpu


# --------------------------------------------------------------------------------------
# Kernel
# --------------------------------------------------------------------------------------
def _make_kernel(H, W, Cp, nb):
    HW = H * W
    L = nb * HW

    def conv3x3(src, w_ref, mask):
        # src: (Cp, L) f32; w_ref: (9, Cp, Cp); mask: (9, L) per-tap validity (1 inside image).
        # out[co, s] = sum_t sum_ci w[t, co, ci] * src[ci, s + off_t] * mask[t, s]
        acc = None
        for dh in range(3):
            for dw in range(3):
                t = dh * 3 + dw
                off = (dh - 1) * W + (dw - 1)
                if off == 0:
                    part = src                       # centre tap is always in-image
                else:
                    part = pltpu.roll(src, shift=(-off) % L, axis=1) * mask[t:t + 1, :]
                contrib = jnp.dot(w_ref[t], part, preferred_element_type=jnp.float32)
                acc = contrib if acc is None else acc + contrib
        return acc

    def kernel(x_ref, mask_ref, w1_ref, s1_ref, b1_ref, a_ref,
               w2_ref, s2_ref, b2_ref, out_ref):
        # x_ref/out_ref : (nb, Cp, HW)   nb batch elements, channels-first, spatial on lanes
        # mask_ref      : (9, nb*HW)     per-tap "same"-padding validity mask (tiled over nb)
        # w*_ref        : (9, Cp, Cp)    conv weights per tap, W[t, co, ci]
        # s*/b*         : (Cp, 1)        folded inference BatchNorm scale / shift
        # a_ref         : (1, 1) SMEM    shared PReLU slope
        mask = mask_ref[...]

        if nb == 1:
            x = x_ref[0]
        else:
            # lane-flatten the batch: (Cp, nb*HW)
            x = jnp.concatenate([x_ref[b] for b in range(nb)], axis=1)

        # conv1 + folded BN1 + PReLU
        y1 = conv3x3(x, w1_ref, mask)
        y1 = y1 * s1_ref[...] + b1_ref[...]
        a = a_ref[0, 0]
        y1 = jnp.where(y1 >= 0.0, y1, a * y1)

        # conv2 + folded BN2
        y2 = conv3x3(y1, w2_ref, mask)
        y2 = y2 * s2_ref[...] + b2_ref[...]

        # residual add, lane-dense stores
        out = (y2 + x).astype(out_ref.dtype)
        if nb == 1:
            out_ref[0] = out
        else:
            for b in range(nb):
                out_ref[b] = out[:, b * HW:(b + 1) * HW]

    return kernel


# --------------------------------------------------------------------------------------
# Wrapper helpers
# --------------------------------------------------------------------------------------
def _fold_bn(gamma, beta, mean, var, eps=1e-5):
    scale = gamma / jnp.sqrt(var + eps)
    shift = beta - mean * scale
    return scale, shift


def _tap_masks(H, W):
    # mask[(kh*3+kw), i*W+j] == 1 iff tap (kh, kw) of a 3x3 "same" conv reads inside the image.
    hw = H * W
    ii = jnp.arange(hw, dtype=jnp.int32) // W
    jj = jnp.arange(hw, dtype=jnp.int32) % W
    rows = []
    for dh in range(3):
        for dw in range(3):
            ok = ((ii + (dh - 1) >= 0) & (ii + (dh - 1) < H) &
                  (jj + (dw - 1) >= 0) & (jj + (dw - 1) < W))
            rows.append(ok)
    return jnp.stack(rows).astype(jnp.float32)          # (9, H*W)


def _pick_nb(N, cap=8):
    # Batch elements per grid step: batch as much as evenly divides while keeping >= 2 grid
    # steps whenever N >= 2 (v7x has 2 TensorCores; one fused step would idle one of them).
    if N < 2:
        return 1
    for nb in range(min(N // 2, cap), 0, -1):
        if N % nb == 0:
            return nb
    return 1


def _const_spec(shape, single_buffer):
    # Grid-constant operand: same block every step.  Request single buffering when supported.
    idx = lambda g, _n=len(shape): (0,) * _n
    if single_buffer:
        return pl.BlockSpec(shape, idx, pipeline_mode=pl.Buffered(1))
    return pl.BlockSpec(shape, idx)


def _build_call(N, Cp, H, W, nb, single_buffer):
    HW = H * W
    L = nb * HW
    G = N // nb
    kernel = _make_kernel(H, W, Cp, nb)
    flops = 2 * 9 * 2 * Cp * Cp * HW * N                 # two convs, 9 taps, mul+add
    bytes_accessed = 4 * (2 * N * Cp * HW + 2 * 9 * Cp * Cp + 9 * L + 4 * Cp + 1)
    return pl.pallas_call(
        kernel,
        out_shape=jax.ShapeDtypeStruct((N, Cp, HW), jnp.float32),
        grid=(G,),
        in_specs=[
            pl.BlockSpec((nb, Cp, HW), lambda g: (g, 0, 0)),      # x (nb batch elements)
            _const_spec((9, L), single_buffer),                   # tap masks (tiled over nb)
            _const_spec((9, Cp, Cp), single_buffer),              # w1
            _const_spec((Cp, 1), single_buffer),                  # bn1 scale
            _const_spec((Cp, 1), single_buffer),                  # bn1 shift
            pl.BlockSpec(memory_space=pltpu.MemorySpace.SMEM),    # PReLU slope (scalar)
            _const_spec((9, Cp, Cp), single_buffer),              # w2
            _const_spec((Cp, 1), single_buffer),                  # bn2 scale
            _const_spec((Cp, 1), single_buffer),                  # bn2 shift
        ],
        out_specs=pl.BlockSpec((nb, Cp, HW), lambda g: (g, 0, 0)),
        compiler_params=pltpu.CompilerParams(
            dimension_semantics=("parallel",),
            vmem_limit_bytes=32 * 1024 * 1024,
        ),
        cost_estimate=pl.CostEstimate(
            flops=flops, transcendentals=0, bytes_accessed=bytes_accessed),
    )


def residual_conv_block(x_nchw, params):
    """Fused Pallas forward pass. x_nchw: (N, C, H, W) float32 (native PyTorch layout)."""
    N, C, H, W = x_nchw.shape
    HW = H * W
    Cp = ((C + 7) // 8) * 8                               # pad channels to the 8-sublane granule
    nb = _pick_nb(N)

    x = x_nchw.reshape(N, C, HW).astype(jnp.float32)
    if Cp != C:
        x = jnp.pad(x, ((0, 0), (0, Cp - C), (0, 0)))      # padded channels stay zero end-to-end

    def wmat(w):  # OIHW (co, ci, kh, kw) -> (9, Cp, Cp) with [t=kh*3+kw, co, ci]
        w = w.astype(jnp.float32)
        if Cp != C:
            w = jnp.pad(w, ((0, Cp - C), (0, Cp - C), (0, 0), (0, 0)))
        return jnp.transpose(w, (2, 3, 0, 1)).reshape(9, Cp, Cp)

    def cvec(v):  # (C,) -> (Cp, 1), padded channels get 0 (keeps them exactly zero)
        v = v.astype(jnp.float32)
        if Cp != C:
            v = jnp.pad(v, (0, Cp - C))
        return v.reshape(Cp, 1)

    w1 = wmat(params["w1"])
    w2 = wmat(params["w2"])
    s1, b1 = _fold_bn(params["bn1_gamma"], params["bn1_beta"],
                      params["bn1_mean"], params["bn1_var"])
    s2, b2 = _fold_bn(params["bn2_gamma"], params["bn2_beta"],
                      params["bn2_mean"], params["bn2_var"])
    s1, b1, s2, b2 = cvec(s1), cvec(b1), cvec(s2), cvec(b2)
    a = params["prelu_a"].reshape(1, 1).astype(jnp.float32)
    mask = jnp.tile(_tap_masks(H, W), (1, nb))             # (9, nb*HW)

    last_err = None
    for single_buffer in (True, False):                    # fall back if Buffered(1) unsupported
        try:
            fn = _build_call(N, Cp, H, W, nb, single_buffer)
            out = fn(x, mask, w1, s1, b1, a, w2, s2, b2)
            out = jax.block_until_ready(out)
            return out[:, :C, :].reshape(N, C, H, W)
        except Exception as e:  # noqa: BLE001 - retry once with default double buffering
            last_err = e
    raise last_err


# --------------------------------------------------------------------------------------
# Pure-JAX reference and parameter init
# --------------------------------------------------------------------------------------
def reference_forward(x_nchw, params):
    """Pure-JAX reference (inference-mode BatchNorm), NCHW throughout."""
    eps = 1e-5

    def conv(x, w):
        return lax.conv_general_dilated(
            x, w, window_strides=(1, 1), padding="SAME",
            dimension_numbers=("NCHW", "OIHW", "NCHW"),
            precision=lax.Precision.HIGHEST)

    def bn(x, g, b, m, v):
        return (g[None, :, None, None] * (x - m[None, :, None, None])
                / jnp.sqrt(v[None, :, None, None] + eps)
                + b[None, :, None, None])

    y = conv(x_nchw, params["w1"])
    y = bn(y, params["bn1_gamma"], params["bn1_beta"],
           params["bn1_mean"], params["bn1_var"])
    a = params["prelu_a"]
    y = jnp.where(y >= 0, y, a * y)
    y = conv(y, params["w2"])
    y = bn(y, params["bn2_gamma"], params["bn2_beta"],
           params["bn2_mean"], params["bn2_var"])
    return y + x_nchw


def init_params(key, channels):
    ks = jax.random.split(key, 8)
    C = channels
    return {
        # CubeSphereConv2DSinglePanel(C, C, (3,3), (1,1), bias=False) -> OIHW weights
        "w1": jax.random.normal(ks[0], (C, C, 3, 3), jnp.float32) * 0.1,
        "w2": jax.random.normal(ks[1], (C, C, 3, 3), jnp.float32) * 0.1,
        # BatchNorm2d params + running stats (inference mode)
        "bn1_gamma": 1.0 + 0.1 * jax.random.normal(ks[2], (C,), jnp.float32),
        "bn1_beta": 0.1 * jax.random.normal(ks[3], (C,), jnp.float32),
        "bn1_mean": 0.1 * jax.random.normal(ks[4], (C,), jnp.float32),
        "bn1_var": jnp.abs(jax.random.normal(ks[5], (C,), jnp.float32)) + 0.5,
        "bn2_gamma": 1.0 + 0.1 * jax.random.normal(ks[6], (C,), jnp.float32),
        "bn2_beta": 0.1 * jax.random.normal(ks[7], (C,), jnp.float32),
        "bn2_mean": jnp.zeros((C,), jnp.float32),
        "bn2_var": jnp.ones((C,), jnp.float32),
        # PReLU default: single shared parameter initialized to 0.25
        "prelu_a": jnp.array(0.25, jnp.float32),
    }


if __name__ == "__main__":
    key = jax.random.PRNGKey(0)
    k_x, k_p = jax.random.split(key)

    # N=4 exercises both the multi-image-per-step lane flattening (nb=2) and a 2-step grid.
    N, C, H, W = 4, 4, 16, 16
    x = jax.random.normal(k_x, (N, C, H, W), jnp.float32)
    params = init_params(k_p, C)

    out = residual_conv_block(x, params)
    out = jax.block_until_ready(out)

    ref = reference_forward(x, params)
    assert out.shape == (N, C, H, W)
    max_err = float(jnp.max(jnp.abs(out - ref)))
    assert jnp.allclose(out, ref, atol=2e-4, rtol=2e-4), max_err

    print("KERNEL_OK")
</pallas_src>

<mosaic_0001>
module attributes {stable_mosaic.version = 11 : i64} {
  func.func @kernel(%arg0: i32, %arg1: memref<2x8x256xf32, #tpu.memory_space<vmem>>, %arg2: memref<9x512xf32, #tpu.memory_space<vmem>>, %arg3: memref<9x8x8xf32, #tpu.memory_space<vmem>>, %arg4: memref<8x1xf32, #tpu.memory_space<vmem>>, %arg5: memref<8x1xf32, #tpu.memory_space<vmem>>, %arg6: memref<1x1xf32, #tpu.memory_space<smem>>, %arg7: memref<9x8x8xf32, #tpu.memory_space<vmem>>, %arg8: memref<8x1xf32, #tpu.memory_space<vmem>>, %arg9: memref<8x1xf32, #tpu.memory_space<vmem>>, %arg10: memref<2x8x256xf32, #tpu.memory_space<vmem>>) attributes {dimension_semantics = [#tpu.dimension_semantics<parallel>], iteration_bounds = array<i64: 2>, scalar_prefetch = 0 : i64, scratch_operands = 0 : i64, tpu.core_type = #tpu.core_type<tc>, window_params = [{transform_indices = @transform_0, window_bounds = array<i64: 2, 8, 256>}, {pipeline_mode = #tpu.pipeline_mode<synchronous>, transform_indices = @transform_1, window_bounds = array<i64: 9, 512>}, {pipeline_mode = #tpu.pipeline_mode<synchronous>, transform_indices = @transform_2, window_bounds = array<i64: 9, 8, 8>}, {pipeline_mode = #tpu.pipeline_mode<synchronous>, transform_indices = @transform_3, window_bounds = array<i64: 8, 1>}, {pipeline_mode = #tpu.pipeline_mode<synchronous>, transform_indices = @transform_4, window_bounds = array<i64: 8, 1>}, {transform_indices = @transform_5, window_bounds = array<i64: 1, 1>}, {pipeline_mode = #tpu.pipeline_mode<synchronous>, transform_indices = @transform_6, window_bounds = array<i64: 9, 8, 8>}, {pipeline_mode = #tpu.pipeline_mode<synchronous>, transform_indices = @transform_7, window_bounds = array<i64: 8, 1>}, {pipeline_mode = #tpu.pipeline_mode<synchronous>, transform_indices = @transform_8, window_bounds = array<i64: 8, 1>}, {transform_indices = @transform_9, window_bounds = array<i64: 2, 8, 256>}]} {
    %c0 = arith.constant 0 : index
    %c0_0 = arith.constant 0 : index
    %0 = vector.load %arg2[%c0, %c0_0] : memref<9x512xf32, #tpu.memory_space<vmem>>, vector<9x512xf32>
    %c0_1 = arith.constant 0 : index
    %c0_2 = arith.constant 0 : index
    %c0_3 = arith.constant 0 : index
    %1 = vector.load %arg1[%c0_1, %c0_2, %c0_3] : memref<2x8x256xf32, #tpu.memory_space<vmem>>, vector<1x8x256xf32>
    %2 = vector.shape_cast %1 : vector<1x8x256xf32> to vector<8x256xf32>
    %c1 = arith.constant 1 : index
    %c0_4 = arith.constant 0 : index
    %c0_5 = arith.constant 0 : index
    %3 = vector.load %arg1[%c1, %c0_4, %c0_5] : memref<2x8x256xf32, #tpu.memory_space<vmem>>, vector<1x8x256xf32>
    %4 = vector.shape_cast %3 : vector<1x8x256xf32> to vector<8x256xf32>
    %5 = tpu.concatenate %2, %4 in 1 : vector<8x256xf32>, vector<8x256xf32> -> vector<8x512xf32>
    %c17_i32 = arith.constant 17 : i32
    %6 = tpu.dynamic_rotate %5 by %c17_i32 dim 1 : vector<8x512xf32>, i32 -> vector<8x512xf32>
    %7 = vector.extract_strided_slice %0 {offsets = [0, 0], sizes = [1, 512], strides = [1, 1]} : vector<9x512xf32> to vector<1x512xf32>
    %8 = vector.broadcast %7 : vector<1x512xf32> to vector<8x512xf32>
    %9 = arith.mulf %6, %8 : vector<8x512xf32>
    %c0_6 = arith.constant 0 : index
    %c0_7 = arith.constant 0 : index
    %c0_8 = arith.constant 0 : index
    %10 = vector.load %arg3[%c0_6, %c0_7, %c0_8] : memref<9x8x8xf32, #tpu.memory_space<vmem>>, vector<1x8x8xf32>
    %11 = vector.shape_cast %10 : vector<1x8x8xf32> to vector<8x8xf32>
    %cst = arith.constant dense<0.000000e+00> : vector<8x512xf32>
    %12 = tpu.matmul %11, %9, %cst {dimension_numbers = #tpu.dot_dimension_numbers<[1], [0], [0], [1], [0, 0, 1, 1], [], []>} : vector<8x8xf32>, vector<8x512xf32>, vector<8x512xf32> -> vector<8x512xf32>
    %c16_i32 = arith.constant 16 : i32
    %13 = tpu.dynamic_rotate %5 by %c16_i32 dim 1 : vector<8x512xf32>, i32 -> vector<8x512xf32>
    %14 = vector.extract_strided_slice %0 {offsets = [1, 0], sizes = [1, 512], strides = [1, 1]} : vector<9x512xf32> to vector<1x512xf32>
    %15 = vector.broadcast %14 : vector<1x512xf32> to vector<8x512xf32>
    %16 = arith.mulf %13, %15 : vector<8x512xf32>
    %c1_9 = arith.constant 1 : index
    %c0_10 = arith.constant 0 : index
    %c0_11 = arith.constant 0 : index
    %17 = vector.load %arg3[%c1_9, %c0_10, %c0_11] : memref<9x8x8xf32, #tpu.memory_space<vmem>>, vector<1x8x8xf32>
    %18 = vector.shape_cast %17 : vector<1x8x8xf32> to vector<8x8xf32>
    %cst_12 = arith.constant dense<0.000000e+00> : vector<8x512xf32>
    %19 = tpu.matmul %18, %16, %cst_12 {dimension_numbers = #tpu.dot_dimension_numbers<[1], [0], [0], [1], [0, 0, 1, 1], [], []>} : vector<8x8xf32>, vector<8x512xf32>, vector<8x512xf32> -> vector<8x512xf32>
    %20 = arith.addf %12, %19 : vector<8x512xf32>
    %c15_i32 = arith.constant 15 : i32
    %21 = tpu.dynamic_rotate %5 by %c15_i32 dim 1 : vector<8x512xf32>, i32 -> vector<8x512xf32>
    %22 = vector.extract_strided_slice %0 {offsets = [2, 0], sizes = [1, 512], strides = [1, 1]} : vector<9x512xf32> to vector<1x512xf32>
    %23 = vector.broadcast %22 : vector<1x512xf32> to vector<8x512xf32>
    %24 = arith.mulf %21, %23 : vector<8x512xf32>
    %c2 = arith.constant 2 : index
    %c0_13 = arith.constant 0 : index
    %c0_14 = arith.constant 0 : index
    %25 = vector.load %arg3[%c2, %c0_13, %c0_14] : memref<9x8x8xf32, #tpu.memory_space<vmem>>, vector<1x8x8xf32>
    %26 = vector.shape_cast %25 : vector<1x8x8xf32> to vector<8x8xf32>
    %cst_15 = arith.constant dense<0.000000e+00> : vector<8x512xf32>
    %27 = tpu.matmul %26, %24, %cst_15 {dimension_numbers = #tpu.dot_dimension_numbers<[1], [0], [0], [1], [0, 0, 1, 1], [], []>} : vector<8x8xf32>, vector<8x512xf32>, vector<8x512xf32> -> vector<8x512xf32>
    %28 = arith.addf %20, %27 : vector<8x512xf32>
    %c1_i32 = arith.constant 1 : i32
    %29 = tpu.dynamic_rotate %5 by %c1_i32 dim 1 : vector<8x512xf32>, i32 -> vector<8x512xf32>
    %30 = vector.extract_strided_slice %0 {offsets = [3, 0], sizes = [1, 512], strides = [1, 1]} : vector<9x512xf32> to vector<1x512xf32>
    %31 = vector.broadcast %30 : vector<1x512xf32> to vector<8x512xf32>
    %32 = arith.mulf %29, %31 : vector<8x512xf32>
    %c3 = arith.constant 3 : index
    %c0_16 = arith.constant 0 : index
    %c0_17 = arith.constant 0 : index
    %33 = vector.load %arg3[%c3, %c0_16, %c0_17] : memref<9x8x8xf32, #tpu.memory_space<vmem>>, vector<1x8x8xf32>
    %34 = vector.shape_cast %33 : vector<1x8x8xf32> to vector<8x8xf32>
    %cst_18 = arith.constant dense<0.000000e+00> : vector<8x512xf32>
    %35 = tpu.matmul %34, %32, %cst_18 {dimension_numbers = #tpu.dot_dimension_numbers<[1], [0], [0], [1], [0, 0, 1, 1], [], []>} : vector<8x8xf32>, vector<8x512xf32>, vector<8x512xf32> -> vector<8x512xf32>
    %36 = arith.addf %28, %35 : vector<8x512xf32>
    %c4 = arith.constant 4 : index
    %c0_19 = arith.constant 0 : index
    %c0_20 = arith.constant 0 : index
    %37 = vector.load %arg3[%c4, %c0_19, %c0_20] : memref<9x8x8xf32, #tpu.memory_space<vmem>>, vector<1x8x8xf32>
    %38 = vector.shape_cast %37 : vector<1x8x8xf32> to vector<8x8xf32>
    %cst_21 = arith.constant dense<0.000000e+00> : vector<8x512xf32>
    %39 = tpu.matmul %38, %5, %cst_21 {dimension_numbers = #tpu.dot_dimension_numbers<[1], [0], [0], [1], [0, 0, 1, 1], [], []>} : vector<8x8xf32>, vector<8x512xf32>, vector<8x512xf32> -> vector<8x512xf32>
    %40 = arith.addf %36, %39 : vector<8x512xf32>
    %c511_i32 = arith.constant 511 : i32
    %41 = tpu.dynamic_rotate %5 by %c511_i32 dim 1 : vector<8x512xf32>, i32 -> vector<8x512xf32>
    %42 = vector.extract_strided_slice %0 {offsets = [5, 0], sizes = [1, 512], strides = [1, 1]} : vector<9x512xf32> to vector<1x512xf32>
    %43 = vector.broadcast %42 : vector<1x512xf32> to vector<8x512xf32>
    %44 = arith.mulf %41, %43 : vector<8x512xf32>
    %c5 = arith.constant 5 : index
    %c0_22 = arith.constant 0 : index
    %c0_23 = arith.constant 0 : index
    %45 = vector.load %arg3[%c5, %c0_22, %c0_23] : memref<9x8x8xf32, #tpu.memory_space<vmem>>, vector<1x8x8xf32>
    %46 = vector.shape_cast %45 : vector<1x8x8xf32> to vector<8x8xf32>
    %cst_24 = arith.constant dense<0.000000e+00> : vector<8x512xf32>
    %47 = tpu.matmul %46, %44, %cst_24 {dimension_numbers = #tpu.dot_dimension_numbers<[1], [0], [0], [1], [0, 0, 1, 1], [], []>} : vector<8x8xf32>, vector<8x512xf32>, vector<8x512xf32> -> vector<8x512xf32>
    %48 = arith.addf %40, %47 : vector<8x512xf32>
    %c497_i32 = arith.constant 497 : i32
    %49 = tpu.dynamic_rotate %5 by %c497_i32 dim 1 : vector<8x512xf32>, i32 -> vector<8x512xf32>
    %50 = vector.extract_strided_slice %0 {offsets = [6, 0], sizes = [1, 512], strides = [1, 1]} : vector<9x512xf32> to vector<1x512xf32>
    %51 = vector.broadcast %50 : vector<1x512xf32> to vector<8x512xf32>
    %52 = arith.mulf %49, %51 : vector<8x512xf32>
    %c6 = arith.constant 6 : index
    %c0_25 = arith.constant 0 : index
    %c0_26 = arith.constant 0 : index
    %53 = vector.load %arg3[%c6, %c0_25, %c0_26] : memref<9x8x8xf32, #tpu.memory_space<vmem>>, vector<1x8x8xf32>
    %54 = vector.shape_cast %53 : vector<1x8x8xf32> to vector<8x8xf32>
    %cst_27 = arith.constant dense<0.000000e+00> : vector<8x512xf32>
    %55 = tpu.matmul %54, %52, %cst_27 {dimension_numbers = #tpu.dot_dimension_numbers<[1], [0], [0], [1], [0, 0, 1, 1], [], []>} : vector<8x8xf32>, vector<8x512xf32>, vector<8x512xf32> -> vector<8x512xf32>
    %56 = arith.addf %48, %55 : vector<8x512xf32>
    %c496_i32 = arith.constant 496 : i32
    %57 = tpu.dynamic_rotate %5 by %c496_i32 dim 1 : vector<8x512xf32>, i32 -> vector<8x512xf32>
    %58 = vector.extract_strided_slice %0 {offsets = [7, 0], sizes = [1, 512], strides = [1, 1]} : vector<9x512xf32> to vector<1x512xf32>
    %59 = vector.broadcast %58 : vector<1x512xf32> to vector<8x512xf32>
    %60 = arith.mulf %57, %59 : vector<8x512xf32>
    %c7 = arith.constant 7 : index
    %c0_28 = arith.constant 0 : index
    %c0_29 = arith.constant 0 : index
    %61 = vector.load %arg3[%c7, %c0_28, %c0_29] : memref<9x8x8xf32, #tpu.memory_space<vmem>>, vector<1x8x8xf32>
    %62 = vector.shape_cast %61 : vector<1x8x8xf32> to vector<8x8xf32>
    %cst_30 = arith.constant dense<0.000000e+00> : vector<8x512xf32>
    %63 = tpu.matmul %62, %60, %cst_30 {dimension_numbers = #tpu.dot_dimension_numbers<[1], [0], [0], [1], [0, 0, 1, 1], [], []>} : vector<8x8xf32>, vector<8x512xf32>, vector<8x512xf32> -> vector<8x512xf32>
    %64 = arith.addf %56, %63 : vector<8x512xf32>
    %c495_i32 = arith.constant 495 : i32
    %65 = tpu.dynamic_rotate %5 by %c495_i32 dim 1 : vector<8x512xf32>, i32 -> vector<8x512xf32>
    %66 = vector.extract_strided_slice %0 {offsets = [8, 0], sizes = [1, 512], strides = [1, 1]} : vector<9x512xf32> to vector<1x512xf32>
    %67 = vector.broadcast %66 : vector<1x512xf32> to vector<8x512xf32>
    %68 = arith.mulf %65, %67 : vector<8x512xf32>
    %c8 = arith.constant 8 : index
    %c0_31 = arith.constant 0 : index
    %c0_32 = arith.constant 0 : index
    %69 = vector.load %arg3[%c8, %c0_31, %c0_32] : memref<9x8x8xf32, #tpu.memory_space<vmem>>, vector<1x8x8xf32>
    %70 = vector.shape_cast %69 : vector<1x8x8xf32> to vector<8x8xf32>
    %cst_33 = arith.constant dense<0.000000e+00> : vector<8x512xf32>
    %71 = tpu.matmul %70, %68, %cst_33 {dimension_numbers = #tpu.dot_dimension_numbers<[1], [0], [0], [1], [0, 0, 1, 1], [], []>} : vector<8x8xf32>, vector<8x512xf32>, vector<8x512xf32> -> vector<8x512xf32>
    %72 = arith.addf %64, %71 : vector<8x512xf32>
    %c0_34 = arith.constant 0 : index
    %c0_35 = arith.constant 0 : index
    %73 = vector.load %arg4[%c0_34, %c0_35] : memref<8x1xf32, #tpu.memory_space<vmem>>, vector<8x1xf32>
    %74 = vector.broadcast %73 : vector<8x1xf32> to vector<8x512xf32>
    %75 = arith.mulf %72, %74 : vector<8x512xf32>
    %c0_36 = arith.constant 0 : index
    %c0_37 = arith.constant 0 : index
    %76 = vector.load %arg5[%c0_36, %c0_37] : memref<8x1xf32, #tpu.memory_space<vmem>>, vector<8x1xf32>
    %77 = vector.broadcast %76 : vector<8x1xf32> to vector<8x512xf32>
    %78 = arith.addf %75, %77 : vector<8x512xf32>
    %c0_38 = arith.constant 0 : index
    %c0_39 = arith.constant 0 : index
    %79 = memref.load %arg6[%c0_38, %c0_39] : memref<1x1xf32, #tpu.memory_space<smem>>
    %cst_40 = arith.constant 0.000000e+00 : f32
    %80 = vector.broadcast %cst_40 : f32 to vector<8x512xf32>
    %81 = arith.cmpf oge, %78, %80 : vector<8x512xf32>
    %82 = vector.broadcast %79 : f32 to vector<8x512xf32>
    %83 = arith.mulf %82, %78 : vector<8x512xf32>
    %84 = arith.select %81, %78, %83 : vector<8x512xi1>, vector<8x512xf32>
    %c17_i32_41 = arith.constant 17 : i32
    %85 = tpu.dynamic_rotate %84 by %c17_i32_41 dim 1 : vector<8x512xf32>, i32 -> vector<8x512xf32>
    %86 = vector.extract_strided_slice %0 {offsets = [0, 0], sizes = [1, 512], strides = [1, 1]} : vector<9x512xf32> to vector<1x512xf32>
    %87 = vector.broadcast %86 : vector<1x512xf32> to vector<8x512xf32>
    %88 = arith.mulf %85, %87 : vector<8x512xf32>
    %c0_42 = arith.constant 0 : index
    %c0_43 = arith.constant 0 : index
    %c0_44 = arith.constant 0 : index
    %89 = vector.load %arg7[%c0_42, %c0_43, %c0_44] : memref<9x8x8xf32, #tpu.memory_space<vmem>>, vector<1x8x8xf32>
    %90 = vector.shape_cast %89 : vector<1x8x8xf32> to vector<8x8xf32>
    %cst_45 = arith.constant dense<0.000000e+00> : vector<8x512xf32>
    %91 = tpu.matmul %90, %88, %cst_45 {dimension_numbers = #tpu.dot_dimension_numbers<[1], [0], [0], [1], [0, 0, 1, 1], [], []>} : vector<8x8xf32>, vector<8x512xf32>, vector<8x512xf32> -> vector<8x512xf32>
    %c16_i32_46 = arith.constant 16 : i32
    %92 = tpu.dynamic_rotate %84 by %c16_i32_46 dim 1 : vector<8x512xf32>, i32 -> vector<8x512xf32>
    %93 = vector.extract_strided_slice %0 {offsets = [1, 0], sizes = [1, 512], strides = [1, 1]} : vector<9x512xf32> to vector<1x512xf32>
    %94 = vector.broadcast %93 : vector<1x512xf32> to vector<8x512xf32>
    %95 = arith.mulf %92, %94 : vector<8x512xf32>
    %c1_47 = arith.constant 1 : index
    %c0_48 = arith.constant 0 : index
    %c0_49 = arith.constant 0 : index
    %96 = vector.load %arg7[%c1_47, %c0_48, %c0_49] : memref<9x8x8xf32, #tpu.memory_space<vmem>>, vector<1x8x8xf32>
    %97 = vector.shape_cast %96 : vector<1x8x8xf32> to vector<8x8xf32>
    %cst_50 = arith.constant dense<0.000000e+00> : vector<8x512xf32>
    %98 = tpu.matmul %97, %95, %cst_50 {dimension_numbers = #tpu.dot_dimension_numbers<[1], [0], [0], [1], [0, 0, 1, 1], [], []>} : vector<8x8xf32>, vector<8x512xf32>, vector<8x512xf32> -> vector<8x512xf32>
    %99 = arith.addf %91, %98 : vector<8x512xf32>
    %c15_i32_51 = arith.constant 15 : i32
    %100 = tpu.dynamic_rotate %84 by %c15_i32_51 dim 1 : vector<8x512xf32>, i32 -> vector<8x512xf32>
    %101 = vector.extract_strided_slice %0 {offsets = [2, 0], sizes = [1, 512], strides = [1, 1]} : vector<9x512xf32> to vector<1x512xf32>
    %102 = vector.broadcast %101 : vector<1x512xf32> to vector<8x512xf32>
    %103 = arith.mulf %100, %102 : vector<8x512xf32>
    %c2_52 = arith.constant 2 : index
    %c0_53 = arith.constant 0 : index
    %c0_54 = arith.constant 0 : index
    %104 = vector.load %arg7[%c2_52, %c0_53, %c0_54] : memref<9x8x8xf32, #tpu.memory_space<vmem>>, vector<1x8x8xf32>
    %105 = vector.shape_cast %104 : vector<1x8x8xf32> to vector<8x8xf32>
    %cst_55 = arith.constant dense<0.000000e+00> : vector<8x512xf32>
    %106 = tpu.matmul %105, %103, %cst_55 {dimension_numbers = #tpu.dot_dimension_numbers<[1], [0], [0], [1], [0, 0, 1, 1], [], []>} : vector<8x8xf32>, vector<8x512xf32>, vector<8x512xf32> -> vector<8x512xf32>
    %107 = arith.addf %99, %106 : vector<8x512xf32>
    %c1_i32_56 = arith.constant 1 : i32
    %108 = tpu.dynamic_rotate %84 by %c1_i32_56 dim 1 : vector<8x512xf32>, i32 -> vector<8x512xf32>
    %109 = vector.extract_strided_slice %0 {offsets = [3, 0], sizes = [1, 512], strides = [1, 1]} : vector<9x512xf32> to vector<1x512xf32>
    %110 = vector.broadcast %109 : vector<1x512xf32> to vector<8x512xf32>
    %111 = arith.mulf %108, %110 : vector<8x512xf32>
    %c3_57 = arith.constant 3 : index
    %c0_58 = arith.constant 0 : index
    %c0_59 = arith.constant 0 : index
    %112 = vector.load %arg7[%c3_57, %c0_58, %c0_59] : memref<9x8x8xf32, #tpu.memory_space<vmem>>, vector<1x8x8xf32>
    %113 = vector.shape_cast %112 : vector<1x8x8xf32> to vector<8x8xf32>
    %cst_60 = arith.constant dense<0.000000e+00> : vector<8x512xf32>
    %114 = tpu.matmul %113, %111, %cst_60 {dimension_numbers = #tpu.dot_dimension_numbers<[1], [0], [0], [1], [0, 0, 1, 1], [], []>} : vector<8x8xf32>, vector<8x512xf32>, vector<8x512xf32> -> vector<8x512xf32>
    %115 = arith.addf %107, %114 : vector<8x512xf32>
    %c4_61 = arith.constant 4 : index
    %c0_62 = arith.constant 0 : index
    %c0_63 = arith.constant 0 : index
    %116 = vector.load %arg7[%c4_61, %c0_62, %c0_63] : memref<9x8x8xf32, #tpu.memory_space<vmem>>, vector<1x8x8xf32>
    %117 = vector.shape_cast %116 : vector<1x8x8xf32> to vector<8x8xf32>
    %cst_64 = arith.constant dense<0.000000e+00> : vector<8x512xf32>
    %118 = tpu.matmul %117, %84, %cst_64 {dimension_numbers = #tpu.dot_dimension_numbers<[1], [0], [0], [1], [0, 0, 1, 1], [], []>} : vector<8x8xf32>, vector<8x512xf32>, vector<8x512xf32> -> vector<8x512xf32>
    %119 = arith.addf %115, %118 : vector<8x512xf32>
    %c511_i32_65 = arith.constant 511 : i32
    %120 = tpu.dynamic_rotate %84 by %c511_i32_65 dim 1 : vector<8x512xf32>, i32 -> vector<8x512xf32>
    %121 = vector.extract_strided_slice %0 {offsets = [5, 0], sizes = [1, 512], strides = [1, 1]} : vector<9x512xf32> to vector<1x512xf32>
    %122 = vector.broadcast %121 : vector<1x512xf32> to vector<8x512xf32>
    %123 = arith.mulf %120, %122 : vector<8x512xf32>
    %c5_66 = arith.constant 5 : index
    %c0_67 = arith.constant 0 : index
    %c0_68 = arith.constant 0 : index
    %124 = vector.load %arg7[%c5_66, %c0_67, %c0_68] : memref<9x8x8xf32, #tpu.memory_space<vmem>>, vector<1x8x8xf32>
    %125 = vector.shape_cast %124 : vector<1x8x8xf32> to vector<8x8xf32>
    %cst_69 = arith.constant dense<0.000000e+00> : vector<8x512xf32>
    %126 = tpu.matmul %125, %123, %cst_69 {dimension_numbers = #tpu.dot_dimension_numbers<[1], [0], [0], [1], [0, 0, 1, 1], [], []>} : vector<8x8xf32>, vector<8x512xf32>, vector<8x512xf32> -> vector<8x512xf32>
    %127 = arith.addf %119, %126 : vector<8x512xf32>
    %c497_i32_70 = arith.constant 497 : i32
    %128 = tpu.dynamic_rotate %84 by %c497_i32_70 dim 1 : vector<8x512xf32>, i32 -> vector<8x512xf32>
    %129 = vector.extract_strided_slice %0 {offsets = [6, 0], sizes = [1, 512], strides = [1, 1]} : vector<9x512xf32> to vector<1x512xf32>
    %130 = vector.broadcast %129 : vector<1x512xf32> to vector<8x512xf32>
    %131 = arith.mulf %128, %130 : vector<8x512xf32>
    %c6_71 = arith.constant 6 : index
    %c0_72 = arith.constant 0 : index
    %c0_73 = arith.constant 0 : index
    %132 = vector.load %arg7[%c6_71, %c0_72, %c0_73] : memref<9x8x8xf32, #tpu.memory_space<vmem>>, vector<1x8x8xf32>
    %133 = vector.shape_cast %132 : vector<1x8x8xf32> to vector<8x8xf32>
    %cst_74 = arith.constant dense<0.000000e+00> : vector<8x512xf32>
    %134 = tpu.matmul %133, %131, %cst_74 {dimension_numbers = #tpu.dot_dimension_numbers<[1], [0], [0], [1], [0, 0, 1, 1], [], []>} : vector<8x8xf32>, vector<8x512xf32>, vector<8x512xf32> -> vector<8x512xf32>
    %135 = arith.addf %127, %134 : vector<8x512xf32>
    %c496_i32_75 = arith.constant 496 : i32
    %136 = tpu.dynamic_rotate %84 by %c496_i32_75 dim 1 : vector<8x512xf32>, i32 -> vector<8x512xf32>
    %137 = vector.extract_strided_slice %0 {offsets = [7, 0], sizes = [1, 512], strides = [1, 1]} : vector<9x512xf32> to vector<1x512xf32>
    %138 = vector.broadcast %137 : vector<1x512xf32> to vector<8x512xf32>
    %139 = arith.mulf %136, %138 : vector<8x512xf32>
    %c7_76 = arith.constant 7 : index
    %c0_77 = arith.constant 0 : index
    %c0_78 = arith.constant 0 : index
    %140 = vector.load %arg7[%c7_76, %c0_77, %c0_78] : memref<9x8x8xf32, #tpu.memory_space<vmem>>, vector<1x8x8xf32>
    %141 = vector.shape_cast %140 : vector<1x8x8xf32> to vector<8x8xf32>
    %cst_79 = arith.constant dense<0.000000e+00> : vector<8x512xf32>
    %142 = tpu.matmul %141, %139, %cst_79 {dimension_numbers = #tpu.dot_dimension_numbers<[1], [0], [0], [1], [0, 0, 1, 1], [], []>} : vector<8x8xf32>, vector<8x512xf32>, vector<8x512xf32> -> vector<8x512xf32>
    %143 = arith.addf %135, %142 : vector<8x512xf32>
    %c495_i32_80 = arith.constant 495 : i32
    %144 = tpu.dynamic_rotate %84 by %c495_i32_80 dim 1 : vector<8x512xf32>, i32 -> vector<8x512xf32>
    %145 = vector.extract_strided_slice %0 {offsets = [8, 0], sizes = [1, 512], strides = [1, 1]} : vector<9x512xf32> to vector<1x512xf32>
    %146 = vector.broadcast %145 : vector<1x512xf32> to vector<8x512xf32>
    %147 = arith.mulf %144, %146 : vector<8x512xf32>
    %c8_81 = arith.constant 8 : index
    %c0_82 = arith.constant 0 : index
    %c0_83 = arith.constant 0 : index
    %148 = vector.load %arg7[%c8_81, %c0_82, %c0_83] : memref<9x8x8xf32, #tpu.memory_space<vmem>>, vector<1x8x8xf32>
    %149 = vector.shape_cast %148 : vector<1x8x8xf32> to vector<8x8xf32>
    %cst_84 = arith.constant dense<0.000000e+00> : vector<8x512xf32>
    %150 = tpu.matmul %149, %147, %cst_84 {dimension_numbers = #tpu.dot_dimension_numbers<[1], [0], [0], [1], [0, 0, 1, 1], [], []>} : vector<8x8xf32>, vector<8x512xf32>, vector<8x512xf32> -> vector<8x512xf32>
    %151 = arith.addf %143, %150 : vector<8x512xf32>
    %c0_85 = arith.constant 0 : index
    %c0_86 = arith.constant 0 : index
    %152 = vector.load %arg8[%c0_85, %c0_86] : memref<8x1xf32, #tpu.memory_space<vmem>>, vector<8x1xf32>
    %153 = vector.broadcast %152 : vector<8x1xf32> to vector<8x512xf32>
    %154 = arith.mulf %151, %153 : vector<8x512xf32>
    %c0_87 = arith.constant 0 : index
    %c0_88 = arith.constant 0 : index
    %155 = vector.load %arg9[%c0_87, %c0_88] : memref<8x1xf32, #tpu.memory_space<vmem>>, vector<8x1xf32>
    %156 = vector.broadcast %155 : vector<8x1xf32> to vector<8x512xf32>
    %157 = arith.addf %154, %156 : vector<8x512xf32>
    %158 = arith.addf %157, %5 : vector<8x512xf32>
    %159 = vector.extract_strided_slice %158 {offsets = [0, 0], sizes = [8, 256], strides = [1, 1]} : vector<8x512xf32> to vector<8x256xf32>
    %c0_89 = arith.constant 0 : index
    %c0_90 = arith.constant 0 : index
    %c0_91 = arith.constant 0 : index
    %160 = vector.load %arg10[%c0_89, %c0_90, %c0_91] : memref<2x8x256xf32, #tpu.memory_space<vmem>>, vector<1x8x256xf32>
    %161 = vector.shape_cast %160 : vector<1x8x256xf32> to vector<8x256xf32>
    %162 = vector.shape_cast %159 : vector<8x256xf32> to vector<1x8x256xf32>
    tpu.vector_store %arg10[%c0_89, %c0_90, %c0_91], %162 {strides = array<i32>} : memref<2x8x256xf32, #tpu.memory_space<vmem>>, vector<1x8x256xf32>,
    %163 = vector.extract_strided_slice %158 {offsets = [0, 256], sizes = [8, 256], strides = [1, 1]} : vector<8x512xf32> to vector<8x256xf32>
    %c1_92 = arith.constant 1 : index
    %c0_93 = arith.constant 0 : index
    %c0_94 = arith.constant 0 : index
    %164 = vector.load %arg10[%c1_92, %c0_93, %c0_94] : memref<2x8x256xf32, #tpu.memory_space<vmem>>, vector<1x8x256xf32>
    %165 = vector.shape_cast %164 : vector<1x8x256xf32> to vector<8x256xf32>
    %166 = vector.shape_cast %163 : vector<8x256xf32> to vector<1x8x256xf32>
    tpu.vector_store %arg10[%c1_92, %c0_93, %c0_94], %166 {strides = array<i32>} : memref<2x8x256xf32, #tpu.memory_space<vmem>>, vector<1x8x256xf32>,
    return
  }
  func.func @transform_0(%arg0: i32) -> (i32, i32, i32) {
    %c0_i32 = arith.constant 0 : i32
    %c0_i32_0 = arith.constant 0 : i32
    %c0_i32_1 = arith.constant 0 : i32
    return %arg0, %c0_i32, %c0_i32_0 : i32, i32, i32
  }
  func.func @transform_1(%arg0: i32) -> (i32, i32) {
    %c0_i32 = arith.constant 0 : i32
    %c0_i32_0 = arith.constant 0 : i32
    %c0_i32_1 = arith.constant 0 : i32
    return %c0_i32, %c0_i32_0 : i32, i32
  }
  func.func @transform_2(%arg0: i32) -> (i32, i32, i32) {
    %c0_i32 = arith.constant 0 : i32
    %c0_i32_0 = arith.constant 0 : i32
    %c0_i32_1 = arith.constant 0 : i32
    %c0_i32_2 = arith.constant 0 : i32
    return %c0_i32, %c0_i32_0, %c0_i32_1 : i32, i32, i32
  }
  func.func @transform_3(%arg0: i32) -> (i32, i32) {
    %c0_i32 = arith.constant 0 : i32
    %c0_i32_0 = arith.constant 0 : i32
    %c0_i32_1 = arith.constant 0 : i32
    return %c0_i32, %c0_i32_0 : i32, i32
  }
  func.func @transform_4(%arg0: i32) -> (i32, i32) {
    %c0_i32 = arith.constant 0 : i32
    %c0_i32_0 = arith.constant 0 : i32
    %c0_i32_1 = arith.constant 0 : i32
    return %c0_i32, %c0_i32_0 : i32, i32
  }
  func.func @transform_5(%arg0: i32) -> (i32, i32) {
    %c0_i32 = arith.constant 0 : i32
    %c0_i32_0 = arith.constant 0 : i32
    %c0_i32_1 = arith.constant 0 : i32
    return %c0_i32, %c0_i32_0 : i32, i32
  }
  func.func @transform_6(%arg0: i32) -> (i32, i32, i32) {
    %c0_i32 = arith.constant 0 : i32
    %c0_i32_0 = arith.constant 0 : i32
    %c0_i32_1 = arith.constant 0 : i32
    %c0_i32_2 = arith.constant 0 : i32
    return %c0_i32, %c0_i32_0, %c0_i32_1 : i32, i32, i32
  }
  func.func @transform_7(%arg0: i32) -> (i32, i32) {
    %c0_i32 = arith.constant 0 : i32
    %c0_i32_0 = arith.constant 0 : i32
    %c0_i32_1 = arith.constant 0 : i32
    return %c0_i32, %c0_i32_0 : i32, i32
  }
  func.func @transform_8(%arg0: i32) -> (i32, i32) {
    %c0_i32 = arith.constant 0 : i32
    %c0_i32_0 = arith.constant 0 : i32
    %c0_i32_1 = arith.constant 0 : i32
    return %c0_i32, %c0_i32_0 : i32, i32
  }
  func.func @transform_9(%arg0: i32) -> (i32, i32, i32) {
    %c0_i32 = arith.constant 0 : i32
    %c0_i32_0 = arith.constant 0 : i32
    %c0_i32_1 = arith.constant 0 : i32
    return %arg0, %c0_i32, %c0_i32_0 : i32, i32, i32
  }
}

module attributes {stable_mosaic.version = 11 : i64} {
  func.func @kernel(%arg0: i32, %arg1: memref<2x8x256xf32, #tpu.memory_space<vmem>>, %arg2: memref<9x512xf32, #tpu.memory_space<vmem>>, %arg3: memref<9x8x8xf32, #tpu.memory_space<vmem>>, %arg4: memref<8x1xf32, #tpu.memory_space<vmem>>, %arg5: memref<8x1xf32, #tpu.memory_space<vmem>>, %arg6: memref<1x1xf32, #tpu.memory_space<smem>>, %arg7: memref<9x8x8xf32, #tpu.memory_space<vmem>>, %arg8: memref<8x1xf32, #tpu.memory_space<vmem>>, %arg9: memref<8x1xf32, #tpu.memory_space<vmem>>, %arg10: memref<2x8x256xf32, #tpu.memory_space<vmem>>) attributes {dimension_semantics = [#tpu.dimension_semantics<parallel>], iteration_bounds = array<i64: 2>, scalar_prefetch = 0 : i64, scratch_operands = 0 : i64, tpu.core_type = #tpu.core_type<tc>, window_params = [{transform_indices = @transform_0, window_bounds = array<i64: 2, 8, 256>}, {pipeline_mode = #tpu.pipeline_mode<synchronous>, transform_indices = @transform_1, window_bounds = array<i64: 9, 512>}, {pipeline_mode = #tpu.pipeline_mode<synchronous>, transform_indices = @transform_2, window_bounds = array<i64: 9, 8, 8>}, {pipeline_mode = #tpu.pipeline_mode<synchronous>, transform_indices = @transform_3, window_bounds = array<i64: 8, 1>}, {pipeline_mode = #tpu.pipeline_mode<synchronous>, transform_indices = @transform_4, window_bounds = array<i64: 8, 1>}, {transform_indices = @transform_5, window_bounds = array<i64: 1, 1>}, {pipeline_mode = #tpu.pipeline_mode<synchronous>, transform_indices = @transform_6, window_bounds = array<i64: 9, 8, 8>}, {pipeline_mode = #tpu.pipeline_mode<synchronous>, transform_indices = @transform_7, window_bounds = array<i64: 8, 1>}, {pipeline_mode = #tpu.pipeline_mode<synchronous>, transform_indices = @transform_8, window_bounds = array<i64: 8, 1>}, {transform_indices = @transform_9, window_bounds = array<i64: 2, 8, 256>}]} {
    %c0 = arith.constant 0 : index
    %c0_0 = arith.constant 0 : index
    %0 = vector.load %arg2[%c0, %c0_0] : memref<9x512xf32, #tpu.memory_space<vmem>>, vector<9x512xf32>
    %c0_1 = arith.constant 0 : index
    %c0_2 = arith.constant 0 : index
    %c0_3 = arith.constant 0 : index
    %1 = vector.load %arg1[%c0_1, %c0_2, %c0_3] : memref<2x8x256xf32, #tpu.memory_space<vmem>>, vector<1x8x256xf32>
    %2 = vector.shape_cast %1 : vector<1x8x256xf32> to vector<8x256xf32>
    %c1 = arith.constant 1 : index
    %c0_4 = arith.constant 0 : index
    %c0_5 = arith.constant 0 : index
    %3 = vector.load %arg1[%c1, %c0_4, %c0_5] : memref<2x8x256xf32, #tpu.memory_space<vmem>>, vector<1x8x256xf32>
    %4 = vector.shape_cast %3 : vector<1x8x256xf32> to vector<8x256xf32>
    %5 = tpu.concatenate %2, %4 in 1 : vector<8x256xf32>, vector<8x256xf32> -> vector<8x512xf32>
    %c17_i32 = arith.constant 17 : i32
    %6 = tpu.dynamic_rotate %5 by %c17_i32 dim 1 : vector<8x512xf32>, i32 -> vector<8x512xf32>
    %7 = vector.extract_strided_slice %0 {offsets = [0, 0], sizes = [1, 512], strides = [1, 1]} : vector<9x512xf32> to vector<1x512xf32>
    %8 = vector.broadcast %7 : vector<1x512xf32> to vector<8x512xf32>
    %9 = arith.mulf %6, %8 : vector<8x512xf32>
    %c0_6 = arith.constant 0 : index
    %c0_7 = arith.constant 0 : index
    %c0_8 = arith.constant 0 : index
    %10 = vector.load %arg3[%c0_6, %c0_7, %c0_8] : memref<9x8x8xf32, #tpu.memory_space<vmem>>, vector<1x8x8xf32>
    %11 = vector.shape_cast %10 : vector<1x8x8xf32> to vector<8x8xf32>
    %cst = arith.constant dense<0.000000e+00> : vector<8x512xf32>
    %12 = tpu.matmul %11, %9, %cst {dimension_numbers = #tpu.dot_dimension_numbers<[1], [0], [0], [1], [0, 0, 1, 1], [], []>} : vector<8x8xf32>, vector<8x512xf32>, vector<8x512xf32> -> vector<8x512xf32>
    %c16_i32 = arith.constant 16 : i32
    %13 = tpu.dynamic_rotate %5 by %c16_i32 dim 1 : vector<8x512xf32>, i32 -> vector<8x512xf32>
    %14 = vector.extract_strided_slice %0 {offsets = [1, 0], sizes = [1, 512], strides = [1, 1]} : vector<9x512xf32> to vector<1x512xf32>
    %15 = vector.broadcast %14 : vector<1x512xf32> to vector<8x512xf32>
    %16 = arith.mulf %13, %15 : vector<8x512xf32>
    %c1_9 = arith.constant 1 : index
    %c0_10 = arith.constant 0 : index
    %c0_11 = arith.constant 0 : index
    %17 = vector.load %arg3[%c1_9, %c0_10, %c0_11] : memref<9x8x8xf32, #tpu.memory_space<vmem>>, vector<1x8x8xf32>
    %18 = vector.shape_cast %17 : vector<1x8x8xf32> to vector<8x8xf32>
    %cst_12 = arith.constant dense<0.000000e+00> : vector<8x512xf32>
    %19 = tpu.matmul %18, %16, %cst_12 {dimension_numbers = #tpu.dot_dimension_numbers<[1], [0], [0], [1], [0, 0, 1, 1], [], []>} : vector<8x8xf32>, vector<8x512xf32>, vector<8x512xf32> -> vector<8x512xf32>
    %20 = arith.addf %12, %19 : vector<8x512xf32>
    %c15_i32 = arith.constant 15 : i32
    %21 = tpu.dynamic_rotate %5 by %c15_i32 dim 1 : vector<8x512xf32>, i32 -> vector<8x512xf32>
    %22 = vector.extract_strided_slice %0 {offsets = [2, 0], sizes = [1, 512], strides = [1, 1]} : vector<9x512xf32> to vector<1x512xf32>
    %23 = vector.broadcast %22 : vector<1x512xf32> to vector<8x512xf32>
    %24 = arith.mulf %21, %23 : vector<8x512xf32>
    %c2 = arith.constant 2 : index
    %c0_13 = arith.constant 0 : index
    %c0_14 = arith.constant 0 : index
    %25 = vector.load %arg3[%c2, %c0_13, %c0_14] : memref<9x8x8xf32, #tpu.memory_space<vmem>>, vector<1x8x8xf32>
    %26 = vector.shape_cast %25 : vector<1x8x8xf32> to vector<8x8xf32>
    %cst_15 = arith.constant dense<0.000000e+00> : vector<8x512xf32>
    %27 = tpu.matmul %26, %24, %cst_15 {dimension_numbers = #tpu.dot_dimension_numbers<[1], [0], [0], [1], [0, 0, 1, 1], [], []>} : vector<8x8xf32>, vector<8x512xf32>, vector<8x512xf32> -> vector<8x512xf32>
    %28 = arith.addf %20, %27 : vector<8x512xf32>
    %c1_i32 = arith.constant 1 : i32
    %29 = tpu.dynamic_rotate %5 by %c1_i32 dim 1 : vector<8x512xf32>, i32 -> vector<8x512xf32>
    %30 = vector.extract_strided_slice %0 {offsets = [3, 0], sizes = [1, 512], strides = [1, 1]} : vector<9x512xf32> to vector<1x512xf32>
    %31 = vector.broadcast %30 : vector<1x512xf32> to vector<8x512xf32>
    %32 = arith.mulf %29, %31 : vector<8x512xf32>
    %c3 = arith.constant 3 : index
    %c0_16 = arith.constant 0 : index
    %c0_17 = arith.constant 0 : index
    %33 = vector.load %arg3[%c3, %c0_16, %c0_17] : memref<9x8x8xf32, #tpu.memory_space<vmem>>, vector<1x8x8xf32>
    %34 = vector.shape_cast %33 : vector<1x8x8xf32> to vector<8x8xf32>
    %cst_18 = arith.constant dense<0.000000e+00> : vector<8x512xf32>
    %35 = tpu.matmul %34, %32, %cst_18 {dimension_numbers = #tpu.dot_dimension_numbers<[1], [0], [0], [1], [0, 0, 1, 1], [], []>} : vector<8x8xf32>, vector<8x512xf32>, vector<8x512xf32> -> vector<8x512xf32>
    %36 = arith.addf %28, %35 : vector<8x512xf32>
    %c4 = arith.constant 4 : index
    %c0_19 = arith.constant 0 : index
    %c0_20 = arith.constant 0 : index
    %37 = vector.load %arg3[%c4, %c0_19, %c0_20] : memref<9x8x8xf32, #tpu.memory_space<vmem>>, vector<1x8x8xf32>
    %38 = vector.shape_cast %37 : vector<1x8x8xf32> to vector<8x8xf32>
    %cst_21 = arith.constant dense<0.000000e+00> : vector<8x512xf32>
    %39 = tpu.matmul %38, %5, %cst_21 {dimension_numbers = #tpu.dot_dimension_numbers<[1], [0], [0], [1], [0, 0, 1, 1], [], []>} : vector<8x8xf32>, vector<8x512xf32>, vector<8x512xf32> -> vector<8x512xf32>
    %40 = arith.addf %36, %39 : vector<8x512xf32>
    %c511_i32 = arith.constant 511 : i32
    %41 = tpu.dynamic_rotate %5 by %c511_i32 dim 1 : vector<8x512xf32>, i32 -> vector<8x512xf32>
    %42 = vector.extract_strided_slice %0 {offsets = [5, 0], sizes = [1, 512], strides = [1, 1]} : vector<9x512xf32> to vector<1x512xf32>
    %43 = vector.broadcast %42 : vector<1x512xf32> to vector<8x512xf32>
    %44 = arith.mulf %41, %43 : vector<8x512xf32>
    %c5 = arith.constant 5 : index
    %c0_22 = arith.constant 0 : index
    %c0_23 = arith.constant 0 : index
    %45 = vector.load %arg3[%c5, %c0_22, %c0_23] : memref<9x8x8xf32, #tpu.memory_space<vmem>>, vector<1x8x8xf32>
    %46 = vector.shape_cast %45 : vector<1x8x8xf32> to vector<8x8xf32>
    %cst_24 = arith.constant dense<0.000000e+00> : vector<8x512xf32>
    %47 = tpu.matmul %46, %44, %cst_24 {dimension_numbers = #tpu.dot_dimension_numbers<[1], [0], [0], [1], [0, 0, 1, 1], [], []>} : vector<8x8xf32>, vector<8x512xf32>, vector<8x512xf32> -> vector<8x512xf32>
    %48 = arith.addf %40, %47 : vector<8x512xf32>
    %c497_i32 = arith.constant 497 : i32
    %49 = tpu.dynamic_rotate %5 by %c497_i32 dim 1 : vector<8x512xf32>, i32 -> vector<8x512xf32>
    %50 = vector.extract_strided_slice %0 {offsets = [6, 0], sizes = [1, 512], strides = [1, 1]} : vector<9x512xf32> to vector<1x512xf32>
    %51 = vector.broadcast %50 : vector<1x512xf32> to vector<8x512xf32>
    %52 = arith.mulf %49, %51 : vector<8x512xf32>
    %c6 = arith.constant 6 : index
    %c0_25 = arith.constant 0 : index
    %c0_26 = arith.constant 0 : index
    %53 = vector.load %arg3[%c6, %c0_25, %c0_26] : memref<9x8x8xf32, #tpu.memory_space<vmem>>, vector<1x8x8xf32>
    %54 = vector.shape_cast %53 : vector<1x8x8xf32> to vector<8x8xf32>
    %cst_27 = arith.constant dense<0.000000e+00> : vector<8x512xf32>
    %55 = tpu.matmul %54, %52, %cst_27 {dimension_numbers = #tpu.dot_dimension_numbers<[1], [0], [0], [1], [0, 0, 1, 1], [], []>} : vector<8x8xf32>, vector<8x512xf32>, vector<8x512xf32> -> vector<8x512xf32>
    %56 = arith.addf %48, %55 : vector<8x512xf32>
    %c496_i32 = arith.constant 496 : i32
    %57 = tpu.dynamic_rotate %5 by %c496_i32 dim 1 : vector<8x512xf32>, i32 -> vector<8x512xf32>
    %58 = vector.extract_strided_slice %0 {offsets = [7, 0], sizes = [1, 512], strides = [1, 1]} : vector<9x512xf32> to vector<1x512xf32>
    %59 = vector.broadcast %58 : vector<1x512xf32> to vector<8x512xf32>
    %60 = arith.mulf %57, %59 : vector<8x512xf32>
    %c7 = arith.constant 7 : index
    %c0_28 = arith.constant 0 : index
    %c0_29 = arith.constant 0 : index
    %61 = vector.load %arg3[%c7, %c0_28, %c0_29] : memref<9x8x8xf32, #tpu.memory_space<vmem>>, vector<1x8x8xf32>
    %62 = vector.shape_cast %61 : vector<1x8x8xf32> to vector<8x8xf32>
    %cst_30 = arith.constant dense<0.000000e+00> : vector<8x512xf32>
    %63 = tpu.matmul %62, %60, %cst_30 {dimension_numbers = #tpu.dot_dimension_numbers<[1], [0], [0], [1], [0, 0, 1, 1], [], []>} : vector<8x8xf32>, vector<8x512xf32>, vector<8x512xf32> -> vector<8x512xf32>
    %64 = arith.addf %56, %63 : vector<8x512xf32>
    %c495_i32 = arith.constant 495 : i32
    %65 = tpu.dynamic_rotate %5 by %c495_i32 dim 1 : vector<8x512xf32>, i32 -> vector<8x512xf32>
    %66 = vector.extract_strided_slice %0 {offsets = [8, 0], sizes = [1, 512], strides = [1, 1]} : vector<9x512xf32> to vector<1x512xf32>
    %67 = vector.broadcast %66 : vector<1x512xf32> to vector<8x512xf32>
    %68 = arith.mulf %65, %67 : vector<8x512xf32>
    %c8 = arith.constant 8 : index
    %c0_31 = arith.constant 0 : index
    %c0_32 = arith.constant 0 : index
    %69 = vector.load %arg3[%c8, %c0_31, %c0_32] : memref<9x8x8xf32, #tpu.memory_space<vmem>>, vector<1x8x8xf32>
    %70 = vector.shape_cast %69 : vector<1x8x8xf32> to vector<8x8xf32>
    %cst_33 = arith.constant dense<0.000000e+00> : vector<8x512xf32>
    %71 = tpu.matmul %70, %68, %cst_33 {dimension_numbers = #tpu.dot_dimension_numbers<[1], [0], [0], [1], [0, 0, 1, 1], [], []>} : vector<8x8xf32>, vector<8x512xf32>, vector<8x512xf32> -> vector<8x512xf32>
    %72 = arith.addf %64, %71 : vector<8x512xf32>
    %c0_34 = arith.constant 0 : index
    %c0_35 = arith.constant 0 : index
    %73 = vector.load %arg4[%c0_34, %c0_35] : memref<8x1xf32, #tpu.memory_space<vmem>>, vector<8x1xf32>
    %74 = vector.broadcast %73 : vector<8x1xf32> to vector<8x512xf32>
    %75 = arith.mulf %72, %74 : vector<8x512xf32>
    %c0_36 = arith.constant 0 : index
    %c0_37 = arith.constant 0 : index
    %76 = vector.load %arg5[%c0_36, %c0_37] : memref<8x1xf32, #tpu.memory_space<vmem>>, vector<8x1xf32>
    %77 = vector.broadcast %76 : vector<8x1xf32> to vector<8x512xf32>
    %78 = arith.addf %75, %77 : vector<8x512xf32>
    %c0_38 = arith.constant 0 : index
    %c0_39 = arith.constant 0 : index
    %79 = memref.load %arg6[%c0_38, %c0_39] : memref<1x1xf32, #tpu.memory_space<smem>>
    %cst_40 = arith.constant 0.000000e+00 : f32
    %80 = vector.broadcast %cst_40 : f32 to vector<8x512xf32>
    %81 = arith.cmpf oge, %78, %80 : vector<8x512xf32>
    %82 = vector.broadcast %79 : f32 to vector<8x512xf32>
    %83 = arith.mulf %82, %78 : vector<8x512xf32>
    %84 = arith.select %81, %78, %83 : vector<8x512xi1>, vector<8x512xf32>
    %c17_i32_41 = arith.constant 17 : i32
    %85 = tpu.dynamic_rotate %84 by %c17_i32_41 dim 1 : vector<8x512xf32>, i32 -> vector<8x512xf32>
    %86 = vector.extract_strided_slice %0 {offsets = [0, 0], sizes = [1, 512], strides = [1, 1]} : vector<9x512xf32> to vector<1x512xf32>
    %87 = vector.broadcast %86 : vector<1x512xf32> to vector<8x512xf32>
    %88 = arith.mulf %85, %87 : vector<8x512xf32>
    %c0_42 = arith.constant 0 : index
    %c0_43 = arith.constant 0 : index
    %c0_44 = arith.constant 0 : index
    %89 = vector.load %arg7[%c0_42, %c0_43, %c0_44] : memref<9x8x8xf32, #tpu.memory_space<vmem>>, vector<1x8x8xf32>
    %90 = vector.shape_cast %89 : vector<1x8x8xf32> to vector<8x8xf32>
    %cst_45 = arith.constant dense<0.000000e+00> : vector<8x512xf32>
    %91 = tpu.matmul %90, %88, %cst_45 {dimension_numbers = #tpu.dot_dimension_numbers<[1], [0], [0], [1], [0, 0, 1, 1], [], []>} : vector<8x8xf32>, vector<8x512xf32>, vector<8x512xf32> -> vector<8x512xf32>
    %c16_i32_46 = arith.constant 16 : i32
    %92 = tpu.dynamic_rotate %84 by %c16_i32_46 dim 1 : vector<8x512xf32>, i32 -> vector<8x512xf32>
    %93 = vector.extract_strided_slice %0 {offsets = [1, 0], sizes = [1, 512], strides = [1, 1]} : vector<9x512xf32> to vector<1x512xf32>
    %94 = vector.broadcast %93 : vector<1x512xf32> to vector<8x512xf32>
    %95 = arith.mulf %92, %94 : vector<8x512xf32>
    %c1_47 = arith.constant 1 : index
    %c0_48 = arith.constant 0 : index
    %c0_49 = arith.constant 0 : index
    %96 = vector.load %arg7[%c1_47, %c0_48, %c0_49] : memref<9x8x8xf32, #tpu.memory_space<vmem>>, vector<1x8x8xf32>
    %97 = vector.shape_cast %96 : vector<1x8x8xf32> to vector<8x8xf32>
    %cst_50 = arith.constant dense<0.000000e+00> : vector<8x512xf32>
    %98 = tpu.matmul %97, %95, %cst_50 {dimension_numbers = #tpu.dot_dimension_numbers<[1], [0], [0], [1], [0, 0, 1, 1], [], []>} : vector<8x8xf32>, vector<8x512xf32>, vector<8x512xf32> -> vector<8x512xf32>
    %99 = arith.addf %91, %98 : vector<8x512xf32>
    %c15_i32_51 = arith.constant 15 : i32
    %100 = tpu.dynamic_rotate %84 by %c15_i32_51 dim 1 : vector<8x512xf32>, i32 -> vector<8x512xf32>
    %101 = vector.extract_strided_slice %0 {offsets = [2, 0], sizes = [1, 512], strides = [1, 1]} : vector<9x512xf32> to vector<1x512xf32>
    %102 = vector.broadcast %101 : vector<1x512xf32> to vector<8x512xf32>
    %103 = arith.mulf %100, %102 : vector<8x512xf32>
    %c2_52 = arith.constant 2 : index
    %c0_53 = arith.constant 0 : index
    %c0_54 = arith.constant 0 : index
    %104 = vector.load %arg7[%c2_52, %c0_53, %c0_54] : memref<9x8x8xf32, #tpu.memory_space<vmem>>, vector<1x8x8xf32>
    %105 = vector.shape_cast %104 : vector<1x8x8xf32> to vector<8x8xf32>
    %cst_55 = arith.constant dense<0.000000e+00> : vector<8x512xf32>
    %106 = tpu.matmul %105, %103, %cst_55 {dimension_numbers = #tpu.dot_dimension_numbers<[1], [0], [0], [1], [0, 0, 1, 1], [], []>} : vector<8x8xf32>, vector<8x512xf32>, vector<8x512xf32> -> vector<8x512xf32>
    %107 = arith.addf %99, %106 : vector<8x512xf32>
    %c1_i32_56 = arith.constant 1 : i32
    %108 = tpu.dynamic_rotate %84 by %c1_i32_56 dim 1 : vector<8x512xf32>, i32 -> vector<8x512xf32>
    %109 = vector.extract_strided_slice %0 {offsets = [3, 0], sizes = [1, 512], strides = [1, 1]} : vector<9x512xf32> to vector<1x512xf32>
    %110 = vector.broadcast %109 : vector<1x512xf32> to vector<8x512xf32>
    %111 = arith.mulf %108, %110 : vector<8x512xf32>
    %c3_57 = arith.constant 3 : index
    %c0_58 = arith.constant 0 : index
    %c0_59 = arith.constant 0 : index
    %112 = vector.load %arg7[%c3_57, %c0_58, %c0_59] : memref<9x8x8xf32, #tpu.memory_space<vmem>>, vector<1x8x8xf32>
    %113 = vector.shape_cast %112 : vector<1x8x8xf32> to vector<8x8xf32>
    %cst_60 = arith.constant dense<0.000000e+00> : vector<8x512xf32>
    %114 = tpu.matmul %113, %111, %cst_60 {dimension_numbers = #tpu.dot_dimension_numbers<[1], [0], [0], [1], [0, 0, 1, 1], [], []>} : vector<8x8xf32>, vector<8x512xf32>, vector<8x512xf32> -> vector<8x512xf32>
    %115 = arith.addf %107, %114 : vector<8x512xf32>
    %c4_61 = arith.constant 4 : index
    %c0_62 = arith.constant 0 : index
    %c0_63 = arith.constant 0 : index
    %116 = vector.load %arg7[%c4_61, %c0_62, %c0_63] : memref<9x8x8xf32, #tpu.memory_space<vmem>>, vector<1x8x8xf32>
    %117 = vector.shape_cast %116 : vector<1x8x8xf32> to vector<8x8xf32>
    %cst_64 = arith.constant dense<0.000000e+00> : vector<8x512xf32>
    %118 = tpu.matmul %117, %84, %cst_64 {dimension_numbers = #tpu.dot_dimension_numbers<[1], [0], [0], [1], [0, 0, 1, 1], [], []>} : vector<8x8xf32>, vector<8x512xf32>, vector<8x512xf32> -> vector<8x512xf32>
    %119 = arith.addf %115, %118 : vector<8x512xf32>
    %c511_i32_65 = arith.constant 511 : i32
    %120 = tpu.dynamic_rotate %84 by %c511_i32_65 dim 1 : vector<8x512xf32>, i32 -> vector<8x512xf32>
    %121 = vector.extract_strided_slice %0 {offsets = [5, 0], sizes = [1, 512], strides = [1, 1]} : vector<9x512xf32> to vector<1x512xf32>
    %122 = vector.broadcast %121 : vector<1x512xf32> to vector<8x512xf32>
    %123 = arith.mulf %120, %122 : vector<8x512xf32>
    %c5_66 = arith.constant 5 : index
    %c0_67 = arith.constant 0 : index
    %c0_68 = arith.constant 0 : index
    %124 = vector.load %arg7[%c5_66, %c0_67, %c0_68] : memref<9x8x8xf32, #tpu.memory_space<vmem>>, vector<1x8x8xf32>
    %125 = vector.shape_cast %124 : vector<1x8x8xf32> to vector<8x8xf32>
    %cst_69 = arith.constant dense<0.000000e+00> : vector<8x512xf32>
    %126 = tpu.matmul %125, %123, %cst_69 {dimension_numbers = #tpu.dot_dimension_numbers<[1], [0], [0], [1], [0, 0, 1, 1], [], []>} : vector<8x8xf32>, vector<8x512xf32>, vector<8x512xf32> -> vector<8x512xf32>
    %127 = arith.addf %119, %126 : vector<8x512xf32>
    %c497_i32_70 = arith.constant 497 : i32
    %128 = tpu.dynamic_rotate %84 by %c497_i32_70 dim 1 : vector<8x512xf32>, i32 -> vector<8x512xf32>
    %129 = vector.extract_strided_slice %0 {offsets = [6, 0], sizes = [1, 512], strides = [1, 1]} : vector<9x512xf32> to vector<1x512xf32>
    %130 = vector.broadcast %129 : vector<1x512xf32> to vector<8x512xf32>
    %131 = arith.mulf %128, %130 : vector<8x512xf32>
    %c6_71 = arith.constant 6 : index
    %c0_72 = arith.constant 0 : index
    %c0_73 = arith.constant 0 : index
    %132 = vector.load %arg7[%c6_71, %c0_72, %c0_73] : memref<9x8x8xf32, #tpu.memory_space<vmem>>, vector<1x8x8xf32>
    %133 = vector.shape_cast %132 : vector<1x8x8xf32> to vector<8x8xf32>
    %cst_74 = arith.constant dense<0.000000e+00> : vector<8x512xf32>
    %134 = tpu.matmul %133, %131, %cst_74 {dimension_numbers = #tpu.dot_dimension_numbers<[1], [0], [0], [1], [0, 0, 1, 1], [], []>} : vector<8x8xf32>, vector<8x512xf32>, vector<8x512xf32> -> vector<8x512xf32>
    %135 = arith.addf %127, %134 : vector<8x512xf32>
    %c496_i32_75 = arith.constant 496 : i32
    %136 = tpu.dynamic_rotate %84 by %c496_i32_75 dim 1 : vector<8x512xf32>, i32 -> vector<8x512xf32>
    %137 = vector.extract_strided_slice %0 {offsets = [7, 0], sizes = [1, 512], strides = [1, 1]} : vector<9x512xf32> to vector<1x512xf32>
    %138 = vector.broadcast %137 : vector<1x512xf32> to vector<8x512xf32>
    %139 = arith.mulf %136, %138 : vector<8x512xf32>
    %c7_76 = arith.constant 7 : index
    %c0_77 = arith.constant 0 : index
    %c0_78 = arith.constant 0 : index
    %140 = vector.load %arg7[%c7_76, %c0_77, %c0_78] : memref<9x8x8xf32, #tpu.memory_space<vmem>>, vector<1x8x8xf32>
    %141 = vector.shape_cast %140 : vector<1x8x8xf32> to vector<8x8xf32>
    %cst_79 = arith.constant dense<0.000000e+00> : vector<8x512xf32>
    %142 = tpu.matmul %141, %139, %cst_79 {dimension_numbers = #tpu.dot_dimension_numbers<[1], [0], [0], [1], [0, 0, 1, 1], [], []>} : vector<8x8xf32>, vector<8x512xf32>, vector<8x512xf32> -> vector<8x512xf32>
    %143 = arith.addf %135, %142 : vector<8x512xf32>
    %c495_i32_80 = arith.constant 495 : i32
    %144 = tpu.dynamic_rotate %84 by %c495_i32_80 dim 1 : vector<8x512xf32>, i32 -> vector<8x512xf32>
    %145 = vector.extract_strided_slice %0 {offsets = [8, 0], sizes = [1, 512], strides = [1, 1]} : vector<9x512xf32> to vector<1x512xf32>
    %146 = vector.broadcast %145 : vector<1x512xf32> to vector<8x512xf32>
    %147 = arith.mulf %144, %146 : vector<8x512xf32>
    %c8_81 = arith.constant 8 : index
    %c0_82 = arith.constant 0 : index
    %c0_83 = arith.constant 0 : index
    %148 = vector.load %arg7[%c8_81, %c0_82, %c0_83] : memref<9x8x8xf32, #tpu.memory_space<vmem>>, vector<1x8x8xf32>
    %149 = vector.shape_cast %148 : vector<1x8x8xf32> to vector<8x8xf32>
    %cst_84 = arith.constant dense<0.000000e+00> : vector<8x512xf32>
    %150 = tpu.matmul %149, %147, %cst_84 {dimension_numbers = #tpu.dot_dimension_numbers<[1], [0], [0], [1], [0, 0, 1, 1], [], []>} : vector<8x8xf32>, vector<8x512xf32>, vector<8x512xf32> -> vector<8x512xf32>
    %151 = arith.addf %143, %150 : vector<8x512xf32>
    %c0_85 = arith.constant 0 : index
    %c0_86 = arith.constant 0 : index
    %152 = vector.load %arg8[%c0_85, %c0_86] : memref<8x1xf32, #tpu.memory_space<vmem>>, vector<8x1xf32>
    %153 = vector.broadcast %152 : vector<8x1xf32> to vector<8x512xf32>
    %154 = arith.mulf %151, %153 : vector<8x512xf32>
    %c0_87 = arith.constant 0 : index
    %c0_88 = arith.constant 0 : index
    %155 = vector.load %arg9[%c0_87, %c0_88] : memref<8x1xf32, #tpu.memory_space<vmem>>, vector<8x1xf32>
    %156 = vector.broadcast %155 : vector<8x1xf32> to vector<8x512xf32>
    %157 = arith.addf %154, %156 : vector<8x512xf32>
    %158 = arith.addf %157, %5 : vector<8x512xf32>
    %159 = vector.extract_strided_slice %158 {offsets = [0, 0], sizes = [8, 256], strides = [1, 1]} : vector<8x512xf32> to vector<8x256xf32>
    %c0_89 = arith.constant 0 : index
    %c0_90 = arith.constant 0 : index
    %c0_91 = arith.constant 0 : index
    %160 = vector.load %arg10[%c0_89, %c0_90, %c0_91] : memref<2x8x256xf32, #tpu.memory_space<vmem>>, vector<1x8x256xf32>
    %161 = vector.shape_cast %160 : vector<1x8x256xf32> to vector<8x256xf32>
    %162 = vector.shape_cast %159 : vector<8x256xf32> to vector<1x8x256xf32>
    tpu.vector_store %arg10[%c0_89, %c0_90, %c0_91], %162 {strides = array<i32>} : memref<2x8x256xf32, #tpu.memory_space<vmem>>, vector<1x8x256xf32>,
    %163 = vector.extract_strided_slice %158 {offsets = [0, 256], sizes = [8, 256], strides = [1, 1]} : vector<8x512xf32> to vector<8x256xf32>
    %c1_92 = arith.constant 1 : index
    %c0_93 = arith.constant 0 : index
    %c0_94 = arith.constant 0 : index
    %164 = vector.load %arg10[%c1_92, %c0_93, %c0_94] : memref<2x8x256xf32, #tpu.memory_space<vmem>>, vector<1x8x256xf32>
    %165 = vector.shape_cast %164 : vector<1x8x256xf32> to vector<8x256xf32>
    %166 = vector.shape_cast %163 : vector<8x256xf32> to vector<1x8x256xf32>
    tpu.vector_store %arg10[%c1_92, %c0_93, %c0_94], %166 {strides = array<i32>} : memref<2x8x256xf32, #tpu.memory_space<vmem>>, vector<1x8x256xf32>,
    return
  }
  func.func @transform_0(%arg0: i32) -> (i32, i32, i32) {
    %c0_i32 = arith.constant 0 : i32
    %c0_i32_0 = arith.constant 0 : i32
    %c0_i32_1 = arith.constant 0 : i32
    return %arg0, %c0_i32, %c0_i32_0 : i32, i32, i32
  }
  func.func @transform_1(%arg0: i32) -> (i32, i32) {
    %c0_i32 = arith.constant 0 : i32
    %c0_i32_0 = arith.constant 0 : i32
    %c0_i32_1 = arith.constant 0 : i32
    return %c0_i32, %c0_i32_0 : i32, i32
  }
  func.func @transform_2(%arg0: i32) -> (i32, i32, i32) {
    %c0_i32 = arith.constant 0 : i32
    %c0_i32_0 = arith.constant 0 : i32
    %c0_i32_1 = arith.constant 0 : i32
    %c0_i32_2 = arith.constant 0 : i32
    return %c0_i32, %c0_i32_0, %c0_i32_1 : i32, i32, i32
  }
  func.func @transform_3(%arg0: i32) -> (i32, i32) {
    %c0_i32 = arith.constant 0 : i32
    %c0_i32_0 = arith.constant 0 : i32
    %c0_i32_1 = arith.constant 0 : i32
    return %c0_i32, %c0_i32_0 : i32, i32
  }
  func.func @transform_4(%arg0: i32) -> (i32, i32) {
    %c0_i32 = arith.constant 0 : i32
    %c0_i32_0 = arith.constant 0 : i32
    %c0_i32_1 = arith.constant 0 : i32
    return %c0_i32, %c0_i32_0 : i32, i32
  }
  func.func @transform_5(%arg0: i32) -> (i32, i32) {
    %c0_i32 = arith.constant 0 : i32
    %c0_i32_0 = arith.constant 0 : i32
    %c0_i32_1 = arith.constant 0 : i32
    return %c0_i32, %c0_i32_0 : i32, i32
  }
  func.func @transform_6(%arg0: i32) -> (i32, i32, i32) {
    %c0_i32 = arith.constant 0 : i32
    %c0_i32_0 = arith.constant 0 : i32
    %c0_i32_1 = arith.constant 0 : i32
    %c0_i32_2 = arith.constant 0 : i32
    return %c0_i32, %c0_i32_0, %c0_i32_1 : i32, i32, i32
  }
  func.func @transform_7(%arg0: i32) -> (i32, i32) {
    %c0_i32 = arith.constant 0 : i32
    %c0_i32_0 = arith.constant 0 : i32
    %c0_i32_1 = arith.constant 0 : i32
    return %c0_i32, %c0_i32_0 : i32, i32
  }
  func.func @transform_8(%arg0: i32) -> (i32, i32) {
    %c0_i32 = arith.constant 0 : i32
    %c0_i32_0 = arith.constant 0 : i32
    %c0_i32_1 = arith.constant 0 : i32
    return %c0_i32, %c0_i32_0 : i32, i32
  }
  func.func @transform_9(%arg0: i32) -> (i32, i32, i32) {
    %c0_i32 = arith.constant 0 : i32
    %c0_i32_0 = arith.constant 0 : i32
    %c0_i32_1 = arith.constant 0 : i32
    return %arg0, %c0_i32, %c0_i32_0 : i32, i32, i32
  }
}

</mosaic_0001>

<bundles_post_ra>
// kernel: tpu_custom_call.1
= control target key start
LH: loop header
LB: loop body
LE: loop exit
PB: predicated region body
PF: predicated region fallthrough
CT: control target
= control target key end

     0   :  { %s4654_s0 = inlined_call_operand.vmem [shape: f32[4,8,256], index: 0, kind: input, shape index: {}]   ;;  %s4655_s1 = inlined_call_operand.vmem [shape: f32[9,512], index: 1, kind: input, shape index: {}]   ;;  %s4656_s2 = inlined_call_operand.vmem [shape: f32[9,8,8], index: 2, kind: input, shape index: {}]   ;;  %s4657_s3 = inlined_call_operand.vmem [shape: f32[8,1], index: 3, kind: input, shape index: {}]   ;;  %s4658_s4 = inlined_call_operand.vmem [shape: f32[8,1], index: 4, kind: input, shape index: {}]   ;;  %s4659_s5 = inlined_call_operand.<no memory space> [shape: f32[1,1], index: 5, kind: input, shape index: {}]   ;;  %s4660_s6 = inlined_call_operand.vmem [shape: f32[9,8,8], index: 6, kind: input, shape index: {}]   ;;  %s4661_s7 = inlined_call_operand.vmem [shape: f32[8,1], index: 7, kind: input, shape index: {}]   ;;  %s4662_s8 = inlined_call_operand.vmem [shape: f32[8,1], index: 8, kind: input, shape index: {}]   ;;  %s4663_s9 = inlined_call_operand.hbm [shape: f32[4,8,256], index: 9, kind: output, shape index: {}]  }
   0x1   :  { %14 = sst [smem:[#allocation2]] %s4659_s5 }
   0x2   :  { %15 = vsyncpa [#allocation4], 0 }
   0x3   :  { %17 = vsyncpa [#allocation4 + $0x1], 0  ;;  %s3912_s11 = smov 0   ;;  %s3914_s12 = smov 0  }
   0x4   :  { %s3916_s13 = smov 0   ;;  %s3918_s14 = smov 0  }
   0x5 LB: > { %s3933_s5 = sadd.s32 4294967295, %s3845_s14   ;;  %s3586_s15 = sadd.s32 4294967294, %s3845_s14   ;;  %s3845_s14 = sphi %s3918_s14, %s4681_s14   ;;  %s3841_s13 = sphi %s3916_s13, %s4680_s13   ;;  %s3837_s12 = sphi %s3914_s12, %s4679_s12   ;;  %s3833_s11 = sphi %s3912_s11, %s4678_s11  }
   0x6   : > { %s3937_s16 = sadd.s32 1, %s3845_s14   ;;  %s224_s17 = sadd.s32 1, %s3841_s13 }
   0x7   : > { %s221_s18 = ssub.s32 %s3845_s14, %s3937_s16  ;;  %p234_p0 = scmp.ne.s32.totalorder %s3841_s13, %s3837_s12 }
   0x8   : > { %p222_p1 = scmp.eq.s32.totalorder %s221_s18, 0  ;;  %p235_p2 = scmp.eq.s32.totalorder %s3933_s5, 1 }
   0x9   : > { %p240_p3 = scmp.ne.s32.totalorder %s3837_s12, %s3833_s11  ;;  %p241_p4 = scmp.eq.s32.totalorder %s3586_s15, 1 }
   0xa   : > { %s3948_s19 = scalar_select %p222_p1, %s3841_s13, %s224_s17  }
   0xb   : > { %p3950_p5 = por %p235_p2, %p234_p0  ;;  %p3954_p6 = por %p241_p4, %p240_p3 }
   0xc   : > { %p3589_p7 = scmp.ge.s32.totalorder %s3845_s14, 1  ;;  %p293_p8 = scmp.lt.s32.totalorder %s3845_s14, 3 }
   0xe   : > { %p294_p9 = pnand %p3589_p7, %p293_p8 }
   0xf   : > { %s3591_s22 = sshll.u32 (!%p294_p9), %s3933_s5, 1  ;;  %v3847_v0 = vmov (!%p294_p9), 0.0   ;;  %s3848_s27 = smov (!%p294_p9), 16   ;;  %v3856_v5 = vmov (!%p294_p9), 0   ;;  %v1968_v6 = vld [vmem:[%s4657_s3] sm:$0xff] (!%p294_p9)  ;;  %v359_v8 = vlaneseq (!%p294_p9)  ;;  %v4057_v11 = vld [vmem:[%s4655_s1 + $0x18] sm:$0xff] (!%p294_p9) }
  0x10   : > { %297 = sbr.rel (%p294_p9) target bundleno = 857 (0x359), region = 56  ;;  %p331_p10 = scmp.lt.s32.totalorder (!%p294_p9), %s3591_s22, 3  ;;  %490 = vmatprep.mubr.f32.mxu0 (!%p294_p9), %v3847_v0  ;;  %561 = vmatprep.mubr.f32.mxu1 (!%p294_p9), %v3847_v0  ;;  %v1978_v7 = vld [vmem:[%s4658_s4] sm:$0xff] (!%p294_p9)  ;;  %v4063_v13 = vld [vmem:[%s4655_s1 + $0x8] sm:$0xff] (!%p294_p9)  ;;  %v4073_v15 = vld [vmem:[%s4655_s1 + $0x10] sm:$0xff] (!%p294_p9)  ;;  %vm422_vm2 = vcmask (!%p294_p9), 64512  }
  0x11   : > { %s3849_s28 = smov (!%p294_p9), 17   ;;  %s3850_s29 = smov (!%p294_p9), 15   ;;  %3777 = vset.pattern.permute.xlu0 (!%p294_p9), %v3856_v5  ;;  %3778 = vset.pattern.permute.xlu1 (!%p294_p9), %v3856_v5  ;;  %v4050_v9 = vshrl.u32 (!%p294_p9), %v359_v8, 7  ;;  %v4052_v10 = vand.u32 (!%p294_p9), 127, %v359_v8  ;;  %v4068_v14 = vld [vmem:[%s4655_s1] sm:$0xff] (!%p294_p9)  ;;  %v3596_v34 = vld [vmem:[%s4656_s2 + $0x8] sm:$0xff] (!%p294_p9) }
  0x12   : > { %s3851_s30 = smov (!%p294_p9), 1   ;;  %s4670_s10 = smov (!%p294_p9), 127   ;;  %v386_v52 = vld [vmem:[%s4656_s2] sm:$0xff] (!%p294_p9) }
  0x13   : > { %s4668_s15 = smov (!%p294_p9), 113   ;;  %s4664_s17 = smov (!%p294_p9), 112   ;;  %v402_v12 = vsub.s32 (!%p294_p9), 1, %v4050_v9  ;;  %v368_v18 = vsub.s32 (!%p294_p9), 0, %v4050_v9  ;;  %vm395_vm0 = vcmp.lt.s32.totalorder (!%p294_p9), %v4052_v10, 16  ;;  %vm361_vm1 = vcmp.lt.s32.totalorder (!%p294_p9), %v4052_v10, 17 }
  0x14   : > { %s4666_s18 = smov (!%p294_p9), 111   ;;  %v728_v42 = vsub.s32 (!%p294_p9), 2, %v4050_v9  ;;  %vm721_vm3 = vcmp.lt.s32.totalorder (!%p294_p9), %v4052_v10, 15  ;;  %v912_v60 = vsub.s32 (!%p294_p9), 3, %v4050_v9  ;;  %vm905_vm4 = vcmp.lt.s32.totalorder (!%p294_p9), %v4052_v10, 1 }
  0x15   : > { %v4078_v19 = vrot.slane (!%p294_p9), %v4057_v11, %v402_v12  ;;  %v4081_v20 = vrot.slane (!%p294_p9), %v4063_v13, %v402_v12  ;;  %v4084_v21 = vrot.slane (!%p294_p9), %v4068_v14, %v402_v12  ;;  %v4087_v22 = vrot.slane (!%p294_p9), %v4073_v15, %v402_v12 }
  0x16   : > { %v4091_v25 = vrot.slane (!%p294_p9), %v4063_v13, %v368_v18  ;;  %v4111_v38 = vrot.slane (!%p294_p9), %v4068_v14, %v368_v18  ;;  %v4117_v40 = vrot.slane (!%p294_p9), %v4073_v15, %v368_v18  ;;  %v4120_v41 = vrot.slane (!%p294_p9), %v4057_v11, %v368_v18 }
  0x17   : > { %s4683_s22 = smov (!%p331_p10, %s3591_s22), 3  ;;  %v4136_v51 = vrot.slane %v4063_v13, %v728_v42  ;;  %v4144_v56 = vrot.slane %v4068_v14, %v728_v42  ;;  %v4150_v58 = vrot.slane %v4073_v15, %v728_v42  ;;  %v4153_v59 = vrot.slane %v4057_v11, %v728_v42  ;;  %v3604_v42 = vld [vmem:[%s4656_s2 + $0x18] sm:$0xff] }
  0x18   : > { %s3660_s23 = sshll.u32 %s4683_s22, 4  ;;  %vm1240_vm5 = vcmp.lt.s32.totalorder %v4052_v10, 127  ;;  %vm1424_vm6 = vcmp.lt.s32.totalorder %v4052_v10, 113  ;;  %vm1608_vm7 = vcmp.lt.s32.totalorder %v4052_v10, 112  ;;  %vm1792_vm8 = vcmp.lt.s32.totalorder %v4052_v10, 111  ;;  %v3649_v10 = vld [vmem:[%s4660_s6 + $0x40] sm:$0xff] }
  0x19   : > { %s3966_s26 = scalar_lea.vmem %s4654_s0, %s3660_s23  ;;  %s327_s22 = sand.u32 1, %s3837_s12  }
  0x1a   : > { %v3969_v1 = vld [vmem:[%s3966_s26 + $0x10] sm:$0xff]  ;;  %v3972_v2 = vld [vmem:[%s3966_s26] sm:$0xff]  ;;  %v3979_v3 = vld [vmem:[%s3966_s26 + $0x18] sm:$0xff]  ;;  %s3590_s23 = sshll.u32 %s327_s22, 5 }
  0x1b   : > { %391 = vrot.lane.b32.xlu1 %v3969_v1, %s3848_s27  ;;  %387 = vrot.lane.b32.xlu0 %v3972_v2, %s3848_s27  ;;  %v3982_v4 = vld [vmem:[%s3966_s26 + $0x8] sm:$0xff]  ;;  %s329_s24 = scalar_lea.vmem [#allocation3], %s3590_s23 }
  0x1c   : > { %s3524_s25 = sshll.u32 %s329_s24, 4  ;;  %s4600_s25 = int_to_ptr.vmem [resolvable:$true] %s3524_s25 }
  0x1f   : > { %393 = vrot.lane.b32.xlu1 %v3979_v3, %s3848_s27  ;;  %389 = vrot.lane.b32.xlu0 %v3982_v4, %s3848_s27 }
  0x23   : > { %353 = vrot.lane.b32.xlu1 %v3982_v4, %s3849_s28  ;;  %351 = vrot.lane.b32.xlu0 %v3972_v2, %s3849_s28 }
  0x27   : > { %357 = vrot.lane.b32.xlu1 %v3979_v3, %s3849_s28  ;;  %355 = vrot.lane.b32.xlu0 %v3969_v1, %s3849_s28 }
  0x2b   : > { %715 = vrot.lane.b32.xlu1 %v3982_v4, %s3850_s29  ;;  %713 = vrot.lane.b32.xlu0 %v3972_v2, %s3850_s29 }
  0x2f   : > { %719 = vrot.lane.b32.xlu1 %v3979_v3, %s3850_s29  ;;  %717 = vrot.lane.b32.xlu0 %v3969_v1, %s3850_s29 }
  0x33   : > { %899 = vrot.lane.b32.xlu1 %v3982_v4, %s3851_s30  ;;  %897 = vrot.lane.b32.xlu0 %v3972_v2, %s3851_s30 }
  0x37   : > { %903 = vrot.lane.b32.xlu1 %v3979_v3, %s3851_s30  ;;  %901 = vrot.lane.b32.xlu0 %v3969_v1, %s3851_s30 }
  0x3b   : > { %1232 = vrot.lane.b32.xlu0 %v3972_v2, %s4670_s10  ;;  %1234 = vrot.lane.b32.xlu1 %v3982_v4, %s4670_s10 }
  0x3f   : > { %1236 = vrot.lane.b32.xlu0 %v3969_v1, %s4670_s10  ;;  %1238 = vrot.lane.b32.xlu1 %v3979_v3, %s4670_s10  ;;  %s3662_s10 = sshll.u32 %s3933_s5, 9 }
  0x40   : > { %s4608_s5 = scalar_lea.hbm %s4663_s9, %s3662_s10 }
  0x43   : > { %1416 = vrot.lane.b32.xlu0 %v3972_v2, %s4668_s15  ;;  %1418 = vrot.lane.b32.xlu1 %v3982_v4, %s4668_s15 }
  0x47   : > { %1420 = vrot.lane.b32.xlu0 %v3969_v1, %s4668_s15  ;;  %1422 = vrot.lane.b32.xlu1 %v3979_v3, %s4668_s15 }
  0x4b   : > { %1600 = vrot.lane.b32.xlu0 %v3972_v2, %s4664_s17  ;;  %1602 = vrot.lane.b32.xlu1 %v3982_v4, %s4664_s17 }
  0x4f   : > { %1604 = vrot.lane.b32.xlu0 %v3969_v1, %s4664_s17  ;;  %1606 = vrot.lane.b32.xlu1 %v3979_v3, %s4664_s17  ;;  %s1988_s17 = sld [smem:[#allocation2]] }
  0x53   : > { %1784 = vrot.lane.b32.xlu0 %v3972_v2, %s4666_s18  ;;  %1786 = vrot.lane.b32.xlu1 %v3982_v4, %s4666_s18 }
  0x57   : > { %1788 = vrot.lane.b32.xlu0 %v3969_v1, %s4666_s18  ;;  %1790 = vrot.lane.b32.xlu1 %v3979_v3, %s4666_s18  ;;  %s4677_s18 = smov 111  }
  0x5b   : > { %1971 = vperm.xlu0 %3777, %v1968_v6   ;;  %1981 = vperm.xlu1 %3778, %v1978_v7  }
  0x8d   : > { %v392_v16 = vpop.permute.xlu1 %391  ;;  %v388_v17 = vpop.permute.xlu0 %387 }
  0x91   : > { %v394_v23 = vpop.permute.xlu1 %393  ;;  %v390_v24 = vpop.permute.xlu0 %389 }
  0x92   : > { %v399_v26 = vsel %vm395_vm0, %v394_v23, %v388_v17  ;;  %v397_v27 = vsel %vm395_vm0, %v390_v24, %v392_v16  ;;  %v396_v28 = vsel %vm395_vm0, %v392_v16, %v394_v23  ;;  %v398_v29 = vsel %vm395_vm0, %v388_v17, %v390_v24  ;;  %v3601_v17 = vld [vmem:[%s4656_s2 + $0x10] sm:$0xff] }
  0x93   : > { %v419_v30 = vmul.f32 %v4078_v19, %v396_v28  ;;  %v417_v31 = vmul.f32 %v4081_v20, %v398_v29  ;;  %v416_v32 = vmul.f32 %v4084_v21, %v399_v26  ;;  %v418_v33 = vmul.f32 %v4087_v22, %v397_v27 }
  0x94   : > { %v4169_v16 = vrot.slane %v4063_v13, %v912_v60  ;;  %v4177_v26 = vrot.slane %v4068_v14, %v912_v60  ;;  %v4183_v28 = vrot.slane %v4073_v15, %v912_v60  ;;  %v4186_v29 = vrot.slane %v4057_v11, %v912_v60  ;;  %v3607_v60 = vld [vmem:[%s4656_s2 + $0x20] sm:$0xff] }
  0x95   : > { %497 = vmatprep.subr.mxu1 %v419_v30  ;;  %v354_v35 = vpop.permute.xlu1 %353  ;;  %426 = vmatprep.subr.mxu0 %v417_v31  ;;  %v352_v36 = vpop.permute.xlu0 %351 }
  0x96   : > { %v364_v37 = vsel %vm361_vm1, %v352_v36, %v354_v35  ;;  %427 = vmatpush1.msra.mxu0 %v416_v32  ;;  %498 = vmatpush1.msra.mxu1 %v418_v33 }
  0x97   : > { %v383_v39 = vmul.f32 %v4091_v25, %v364_v37  ;;  %3597 = vmatmul.mubr.msk.f32.vlgmr.msra.gmra.mrb[0].mxu0 %vm422_vm2, %v3596_v34  ;;  %3598 = vmatmul.mubr.msk.f32.vlgmr.msra.gmra.mrb[0].mxu1 %vm422_vm2, %v3596_v34 }
  0x98   : > { %635 = vmatprep.mubr.f32.mxu0 %v3847_v0  ;;  %706 = vmatprep.mubr.f32.mxu1 %v3847_v0 }
  0x99   : > { %v358_v43 = vpop.permute.xlu1 %357  ;;  %v356_v44 = vpop.permute.xlu0 %355  ;;  %571 = vmatprep.subr.mxu0 %v383_v39  ;;  %v1247_v39 = vsub.s32 5, %v4050_v9 }
  0x9a   : > { %v365_v45 = vsel %vm361_vm1, %v358_v43, %v352_v36  ;;  %v362_v46 = vsel %vm361_vm1, %v356_v44, %v358_v43  ;;  %v363_v47 = vsel %vm361_vm1, %v354_v35, %v356_v44 }
  0x9b   : > { %v382_v48 = vmul.f32 %v4111_v38, %v365_v45  ;;  %v384_v49 = vmul.f32 %v4117_v40, %v363_v47  ;;  %v385_v50 = vmul.f32 %v4120_v41, %v362_v46  ;;  %v4208_v45 = vrot.slane %v4063_v13, %v1247_v39 }
  0x9c   : > { %v4211_v46 = vrot.slane %v4057_v11, %v1247_v39  ;;  %v4214_v47 = vrot.slane %v4068_v14, %v1247_v39 }
  0x9d   : > { %v716_v53 = vpop.permute.xlu1 %715  ;;  %572 = vmatpush1.msra.mxu0 %v382_v48  ;;  %642 = vmatprep.subr.mxu1 %v385_v50  ;;  %v714_v54 = vpop.permute.xlu0 %713  ;;  %v4217_v48 = vrot.slane %v4073_v15, %v1247_v39 }
  0x9e   : > { %v724_v55 = vsel %vm721_vm3, %v714_v54, %v716_v53  ;;  %643 = vmatpush1.msra.mxu1 %v384_v49 }
  0x9f   : > { %v743_v57 = vmul.f32 %v4136_v51, %v724_v55  ;;  %3599 = vmatmul.mubr.msk.f32.vlgmr.msra.gmra.mrb[0].mxu0 %vm422_vm2, %v386_v52  ;;  %3600 = vmatmul.mubr.msk.f32.vlgmr.msra.gmra.mrb[0].mxu1 %vm422_vm2, %v386_v52  ;;  %v1431_v55 = vsub.s32 6, %v4050_v9 }
  0xa0   : > { %815 = vmatprep.mubr.f32.mxu0 %v3847_v0  ;;  %886 = vmatprep.mubr.f32.mxu1 %v3847_v0 }
  0xa1   : > { %v720_v61 = vpop.permute.xlu1 %719  ;;  %v718_v62 = vpop.permute.xlu0 %717  ;;  %751 = vmatprep.subr.mxu0 %v743_v57 }
  0xa2   : > { %v725_v63 = vsel %vm721_vm3, %v720_v61, %v714_v54  ;;  %v722_v5 = vsel %vm721_vm3, %v718_v62, %v720_v61  ;;  %v723_v6 = vsel %vm721_vm3, %v716_v53, %v718_v62 }
  0xa3   : > { %v742_v7 = vmul.f32 %v4144_v56, %v725_v63  ;;  %v744_v8 = vmul.f32 %v4150_v58, %v723_v6  ;;  %v745_v12 = vmul.f32 %v4153_v59, %v722_v5  ;;  %v4244_v63 = vrot.slane %v4063_v13, %v1431_v55 }
  0xa4   : > { %v4247_v5 = vrot.slane %v4057_v11, %v1431_v55  ;;  %v4250_v6 = vrot.slane %v4068_v14, %v1431_v55 }
  0xa5   : > { %v900_v18 = vpop.permute.xlu1 %899  ;;  %752 = vmatpush1.msra.mxu0 %v742_v7  ;;  %822 = vmatprep.subr.mxu1 %v745_v12  ;;  %v898_v23 = vpop.permute.xlu0 %897  ;;  %v4253_v7 = vrot.slane %v4073_v15, %v1431_v55  ;;  %v4316_v55 = vld [vmem:[%s4655_s1 + $0x38] ss:$0 sm:$0xff] }
  0xa6   : > { %v908_v24 = vsel %vm905_vm4, %v898_v23, %v900_v18  ;;  %823 = vmatpush1.msra.mxu1 %v744_v8 }
  0xa7   : > { %v927_v27 = vmul.f32 %v4169_v16, %v908_v24  ;;  %3602 = vmatmul.mubr.msk.f32.vlgmr.msra.gmra.mrb[0].mxu0 %vm422_vm2, %v3601_v17  ;;  %3603 = vmatmul.mubr.msk.f32.vlgmr.msra.gmra.mrb[0].mxu1 %vm422_vm2, %v3601_v17 }
  0xa8   : > { %999 = vmatprep.mubr.f32.mxu0 %v3847_v0  ;;  %1070 = vmatprep.mubr.f32.mxu1 %v3847_v0 }
  0xa9   : > { %v904_v30 = vpop.permute.xlu1 %903  ;;  %v902_v31 = vpop.permute.xlu0 %901  ;;  %935 = vmatprep.subr.mxu0 %v927_v27 }
  0xaa   : > { %v909_v32 = vsel %vm905_vm4, %v904_v30, %v898_v23  ;;  %v906_v33 = vsel %vm905_vm4, %v902_v31, %v904_v30  ;;  %v907_v34 = vsel %vm905_vm4, %v900_v18, %v902_v31  ;;  %v1615_v31 = vsub.s32 7, %v4050_v9 }
  0xab   : > { %v926_v35 = vmul.f32 %v4177_v26, %v909_v32  ;;  %v928_v36 = vmul.f32 %v4183_v28, %v907_v34  ;;  %v929_v37 = vmul.f32 %v4186_v29, %v906_v33  ;;  %v3610_v34 = vld [vmem:[%s4656_s2 + $0x28] sm:$0xff] }
  0xac   : > { %v4277_v9 = vrot.slane %v4063_v13, %v1615_v31  ;;  %v4283_v39 = vrot.slane %v4068_v14, %v1615_v31 }
  0xad   : > { %936 = vmatpush1.msra.mxu0 %v926_v35  ;;  %1006 = vmatprep.subr.mxu1 %v929_v37  ;;  %v1233_v43 = vpop.permute.xlu0 %1232  ;;  %v1235_v44 = vpop.permute.xlu1 %1234  ;;  %v4280_v37 = vrot.slane %v4057_v11, %v1615_v31 }
  0xae   : > { %1007 = vmatpush1.msra.mxu1 %v928_v36  ;;  %1086 = vmatprep.subr.mxu0 %v3982_v4  ;;  %v1243_v4 = vsel %vm1240_vm5, %v1233_v43, %v1235_v44 }
  0xaf   : > { %3605 = vmatmul.mubr.msk.f32.vlgmr.msra.gmra.mrb[0].mxu0 %vm422_vm2, %v3604_v42  ;;  %3606 = vmatmul.mubr.msk.f32.vlgmr.msra.gmra.mrb[0].mxu1 %vm422_vm2, %v3604_v42  ;;  %v1261_v57 = vmul.f32 %v4214_v47, %v1243_v4  ;;  %v4286_v42 = vrot.slane %v4073_v15, %v1615_v31  ;;  %v3623_v31 = vld [vmem:[%s4656_s2 + $0x40] sm:$0xff] }
  0xb0   : > { %1157 = vmatprep.subr.mxu1 %v3979_v3  ;;  %1087 = vmatpush1.msra.mxu0 %v3972_v2 }
  0xb1   : > { %v1237_v49 = vpop.permute.xlu0 %1236  ;;  %v1239_v50 = vpop.permute.xlu1 %1238  ;;  %1150 = vmatprep.mubr.f32.mxu0 %v3847_v0  ;;  %1158 = vmatpush1.msra.mxu1 %v3969_v1 }
  0xb2   : > { %v1242_v52 = vsel %vm1240_vm5, %v1235_v44, %v1237_v49  ;;  %v1241_v53 = vsel %vm1240_vm5, %v1237_v49, %v1239_v50  ;;  %v1244_v3 = vsel %vm1240_vm5, %v1239_v50, %v1233_v43  ;;  %1221 = vmatprep.mubr.f32.mxu1 %v3847_v0 }
  0xb3   : > { %v1262_v2 = vmul.f32 %v4208_v45, %v1242_v52  ;;  %v1264_v54 = vmul.f32 %v4211_v46, %v1244_v3  ;;  %v1263_v1 = vmul.f32 %v4217_v48, %v1241_v53  ;;  %v3613_v53 = vld [vmem:[%s4656_s2 + $0x30] sm:$0xff] }
  0xb5   : > { %1270 = vmatprep.subr.mxu0 %v1262_v2  ;;  %v1417_v61 = vpop.permute.xlu0 %1416  ;;  %v1419_v62 = vpop.permute.xlu1 %1418  ;;  %1341 = vmatprep.subr.mxu1 %v1264_v54  ;;  %v4311_v54 = vld [vmem:[%s4655_s1 + $0x28] ss:$0 sm:$0xff] }
  0xb6   : > { %v1427_v8 = vsel %vm1424_vm6, %v1417_v61, %v1419_v62 }
  0xb7   : > { %3608 = vmatmul.mubr.msk.f32.vlgmr.msra.gmra.mrb[0].mxu0 %vm422_vm2, %v3607_v60  ;;  %3609 = vmatmul.mubr.msk.f32.vlgmr.msra.gmra.mrb[0].mxu1 %vm422_vm2, %v3607_v60  ;;  %v1445_v32 = vmul.f32 %v4250_v6, %v1427_v8 }
  0xb8   : > { %1271 = vmatpush1.msra.mxu0 %v1261_v57  ;;  %1342 = vmatpush1.msra.mxu1 %v1263_v1  ;;  %v4321_v57 = vld [vmem:[%s4655_s1 + $0x20] ss:$0 sm:$0xff] }
  0xb9   : > { %v1421_v12 = vpop.permute.xlu0 %1420  ;;  %v1423_v17 = vpop.permute.xlu1 %1422  ;;  %1334 = vmatprep.mubr.f32.mxu0 %v3847_v0  ;;  %1405 = vmatprep.mubr.f32.mxu1 %v3847_v0 }
  0xba   : > { %v1426_v18 = vsel %vm1424_vm6, %v1419_v62, %v1421_v12  ;;  %v1425_v23 = vsel %vm1424_vm6, %v1421_v12, %v1423_v17  ;;  %v1428_v24 = vsel %vm1424_vm6, %v1423_v17, %v1417_v61  ;;  %v4328_v61 = vld [vmem:[%s4655_s1 + $0x30] ss:$0 sm:$0xff] }
  0xbb   : > { %v1446_v27 = vmul.f32 %v4244_v63, %v1426_v18  ;;  %v1448_v30 = vmul.f32 %v4247_v5, %v1428_v24  ;;  %v1447_v33 = vmul.f32 %v4253_v7, %v1425_v23 }
  0xbd   : > { %1454 = vmatprep.subr.mxu0 %v1446_v27  ;;  %v1601_v35 = vpop.permute.xlu0 %1600  ;;  %v1603_v36 = vpop.permute.xlu1 %1602  ;;  %1525 = vmatprep.subr.mxu1 %v1448_v30  ;;  %v3616_v30 = vld [vmem:[%s4656_s2 + $0x38] sm:$0xff] }
  0xbe   : > { %v1611_v43 = vsel %vm1608_vm7, %v1601_v35, %v1603_v36 }
  0xbf   : > { %3611 = vmatmul.mubr.msk.f32.vlgmr.msra.gmra.mrb[0].mxu0 %vm422_vm2, %v3610_v34  ;;  %3612 = vmatmul.mubr.msk.f32.vlgmr.msra.gmra.mrb[0].mxu1 %vm422_vm2, %v3610_v34  ;;  %v1629_v50 = vmul.f32 %v4283_v39, %v1611_v43 }
  0xc0   : > { %1455 = vmatpush1.msra.mxu0 %v1445_v32  ;;  %1526 = vmatpush1.msra.mxu1 %v1447_v33 }
  0xc1   : > { %v1605_v44 = vpop.permute.xlu0 %1604  ;;  %v1607_v4 = vpop.permute.xlu1 %1606  ;;  %1518 = vmatprep.mubr.f32.mxu0 %v3847_v0  ;;  %1589 = vmatprep.mubr.f32.mxu1 %v3847_v0 }
  0xc2   : > { %v1610_v11 = vsel %vm1608_vm7, %v1603_v36, %v1605_v44  ;;  %v1609_v13 = vsel %vm1608_vm7, %v1605_v44, %v1607_v4  ;;  %v1612_v14 = vsel %vm1608_vm7, %v1607_v4, %v1601_v35 }
  0xc3   : > { %v1630_v15 = vmul.f32 %v4277_v9, %v1610_v11  ;;  %v1632_v49 = vmul.f32 %v4280_v37, %v1612_v14  ;;  %v1631_v52 = vmul.f32 %v4286_v42, %v1609_v13  ;;  %v1993_v14 = vstv %s1988_s17 }
  0xc5   : > { %1638 = vmatprep.subr.mxu0 %v1630_v15  ;;  %v1785_v3 = vpop.permute.xlu0 %1784  ;;  %v1787_v2 = vpop.permute.xlu1 %1786  ;;  %1709 = vmatprep.subr.mxu1 %v1632_v49 }
  0xc6   : > { %v1795_v1 = vsel %vm1792_vm8, %v1785_v3, %v1787_v2 }
  0xc7   : > { %3614 = vmatmul.mubr.msk.f32.vlgmr.msra.gmra.mrb[0].mxu0 %vm422_vm2, %v3613_v53  ;;  %3615 = vmatmul.mubr.msk.f32.vlgmr.msra.gmra.mrb[0].mxu1 %vm422_vm2, %v3613_v53  ;;  %v1813_v24 = vmul.f32 %v4321_v57, %v1795_v1 }
  0xc8   : > { %1639 = vmatpush1.msra.mxu0 %v1629_v50  ;;  %1710 = vmatpush1.msra.mxu1 %v1631_v52 }
  0xc9   : > { %v1789_v60 = vpop.permute.xlu0 %1788  ;;  %v1791_v62 = vpop.permute.xlu1 %1790  ;;  %1702 = vmatprep.mubr.f32.mxu0 %v3847_v0  ;;  %1773 = vmatprep.mubr.f32.mxu1 %v3847_v0 }
  0xca   : > { %v1794_v8 = vsel %vm1792_vm8, %v1787_v2, %v1789_v60  ;;  %v1793_v12 = vsel %vm1792_vm8, %v1789_v60, %v1791_v62  ;;  %v1796_v17 = vsel %vm1792_vm8, %v1791_v62, %v1785_v3 }
  0xcb   : > { %v1814_v18 = vmul.f32 %v4311_v54, %v1794_v8  ;;  %v1816_v23 = vmul.f32 %v4316_v55, %v1796_v17  ;;  %v1815_v27 = vmul.f32 %v4328_v61, %v1793_v12  ;;  %v3480_v17 = vld [vmem:[%s4661_s7] sm:$0xff] }
  0xcd   : > { %1822 = vmatprep.subr.mxu0 %v1814_v18  ;;  %1893 = vmatprep.subr.mxu1 %v1816_v23  ;;  %v3490_v18 = vld [vmem:[%s4662_s8] sm:$0xff] }
  0xcf   : > { %3617 = vmatmul.mubr.msk.f32.vlgmr.msra.gmra.mrb[0].mxu0 %vm422_vm2, %v3616_v30  ;;  %3618 = vmatmul.mubr.msk.f32.vlgmr.msra.gmra.mrb[0].mxu1 %vm422_vm2, %v3616_v30 }
  0xd0   : > { %1823 = vmatpush1.msra.mxu0 %v1813_v24  ;;  %1894 = vmatpush1.msra.mxu1 %v1815_v27 }
  0xd1   : > { %1886 = vmatprep.mubr.f32.mxu0 %v3847_v0  ;;  %1957 = vmatprep.mubr.f32.mxu1 %v3847_v0 }
  0xd7   : > { %3624 = vmatmul.mubr.msk.f32.vlgmr.msra.gmra.mrb[0].mxu0 %vm422_vm2, %v3623_v31  ;;  %3625 = vmatmul.mubr.msk.f32.vlgmr.msra.gmra.mrb[0].mxu1 %vm422_vm2, %v3623_v31 }
  0xd8   : > { %2104 = vmatprep.mubr.f32.mxu0 %v3847_v0  ;;  %2175 = vmatprep.mubr.f32.mxu1 %v3847_v0 }
  0xda   : > { %v1972_v32 = vpop.permute.xlu0 %1971  ;;  %v1982_v33 = vpop.permute.xlu1 %1981 }
 0x1aa   : > { %v1888_v34 = vpop.f32.mrb[0].mxu0  ;;  %v1959_v35 = vpop.f32.mrb[0].mxu1 }
 0x1ab   : > { %v1974_v36 = vmul.f32 %v1972_v32, %v1888_v34  ;;  %v1976_v43 = vmul.f32 %v1972_v32, %v1959_v35  ;;  %v1890_v44 = vpop.f32.mrb[1].mxu0  ;;  %v1961_v4 = vpop.f32.mrb[1].mxu1 }
 0x1ac   : > { %v1975_v11 = vmul.f32 %v1972_v32, %v1890_v44  ;;  %v1977_v13 = vmul.f32 %v1972_v32, %v1961_v4 }
 0x1ad   : > { %v1984_v15 = vadd.f32 %v1982_v33, %v1974_v36  ;;  %v1986_v49 = vadd.f32 %v1982_v33, %v1976_v43 }
 0x1ae   : > { %v1985_v50 = vadd.f32 %v1982_v33, %v1975_v11  ;;  %v1987_v52 = vadd.f32 %v1982_v33, %v1977_v13 }
 0x1af   : > { %vm1989_vm9 = vcmp.ge.f32.partialorder %v1984_v15, 0.0  ;;  %v1994_v53 = vmul.f32 %v1993_v14, %v1984_v15  ;;  %v1996_v2 = vmul.f32 %v1993_v14, %v1986_v49  ;;  %vm1991_vm11 = vcmp.ge.f32.partialorder %v1986_v49, 0.0 }
 0x1b0   : > { %vm1990_vm10 = vcmp.ge.f32.partialorder %v1985_v50, 0.0  ;;  %v1995_v3 = vmul.f32 %v1993_v14, %v1985_v50  ;;  %v1997_v60 = vmul.f32 %v1993_v14, %v1987_v52  ;;  %vm1992_vm12 = vcmp.ge.f32.partialorder %v1987_v52, 0.0 }
 0x1b1   : > { %v4356_v1 = vsel %vm1989_vm9, %v1984_v15, %v1994_v53  ;;  %v4364_v8 = vsel %vm1991_vm11, %v1986_v49, %v1996_v2 }
 0x1b2   : > { %v4358_v62 = vsel %vm1990_vm10, %v1985_v50, %v1995_v3  ;;  %2019 = vrot.lane.b32.xlu1 %v4356_v1, %s3848_s27  ;;  %v4366_v12 = vsel %vm1992_vm12, %v1987_v52, %v1997_v60  ;;  %v2018_v52 = vld [vmem:[%s4660_s6] sm:$0xff] }
 0x1b3   : > { %2021 = vrot.lane.b32.xlu0 %v4358_v62, %s3848_s27 }
 0x1b6   : > { %2023 = vrot.lane.b32.xlu1 %v4364_v8, %s3848_s27 }
 0x1b7   : > { %2025 = vrot.lane.b32.xlu0 %v4366_v12, %s3848_s27 }
 0x1ba   : > { %2002 = vrot.lane.b32.xlu1 %v4356_v1, %s3849_s28 }
 0x1bb   : > { %2004 = vrot.lane.b32.xlu0 %v4358_v62, %s3849_s28 }
 0x1be   : > { %2006 = vrot.lane.b32.xlu1 %v4364_v8, %s3849_s28 }
 0x1bf   : > { %2008 = vrot.lane.b32.xlu0 %v4366_v12, %s3849_s28  ;;  %s4674_s28 = smov 127  }
 0x1c2   : > { %2327 = vrot.lane.b32.xlu1 %v4356_v1, %s3850_s29 }
 0x1c3   : > { %2329 = vrot.lane.b32.xlu0 %v4358_v62, %s3850_s29 }
 0x1c6   : > { %2331 = vrot.lane.b32.xlu1 %v4364_v8, %s3850_s29 }
 0x1c7   : > { %2333 = vrot.lane.b32.xlu0 %v4366_v12, %s3850_s29  ;;  %s4675_s29 = smov 113  }
 0x1ca   : > { %2494 = vrot.lane.b32.xlu1 %v4356_v1, %s3851_s30 }
 0x1cb   : > { %2496 = vrot.lane.b32.xlu0 %v4358_v62, %s3851_s30 }
 0x1ce   : > { %2498 = vrot.lane.b32.xlu1 %v4364_v8, %s3851_s30 }
 0x1cf   : > { %2500 = vrot.lane.b32.xlu0 %v4366_v12, %s3851_s30  ;;  %s4676_s30 = smov 112  }
 0x1d2   : > { %2812 = vrot.lane.b32.xlu1 %v4356_v1, %s4674_s28 }
 0x1d3   : > { %2814 = vrot.lane.b32.xlu0 %v4358_v62, %s4674_s28 }
 0x1d6   : > { %2816 = vrot.lane.b32.xlu1 %v4364_v8, %s4674_s28 }
 0x1d7   : > { %2818 = vrot.lane.b32.xlu0 %v4366_v12, %s4674_s28  ;;  %s4612_s28 = scalar_lea.sflag [#allocation4], %s327_s22 }
 0x1da   : > { %2979 = vrot.lane.b32.xlu1 %v4356_v1, %s4675_s29 }
 0x1db   : > { %2981 = vrot.lane.b32.xlu0 %v4358_v62, %s4675_s29 }
 0x1de   : > { %2983 = vrot.lane.b32.xlu1 %v4364_v8, %s4675_s29 }
 0x1df   : > { %2985 = vrot.lane.b32.xlu0 %v4366_v12, %s4675_s29  ;;  %s3783_s29 = scalar_lea.vmem %s4600_s25, 512 }
 0x1e0   : > { %p3784_p11 = scmp.ne.s32.totalorder %s4600_s25, %s3783_s29 }
 0x1e2   : > { %3146 = vrot.lane.b32.xlu1 %v4356_v1, %s4676_s30  ;;  %p3785_p12 = pnand %p3784_p11, %p3950_p5 }
 0x1e3   : > { %3148 = vrot.lane.b32.xlu0 %v4358_v62, %s4676_s30 }
 0x1e4   : > { %p3786_p13 = pneg %p3785_p12 }
 0x1e6   : > { %3150 = vrot.lane.b32.xlu1 %v4364_v8, %s4676_s30 }
 0x1e7   : > { %3152 = vrot.lane.b32.xlu0 %v4366_v12, %s4676_s30  ;;  %s3857_s30 = smov [#allocation3]  }
 0x1ea   : > { %3313 = vrot.lane.b32.xlu1 %v4356_v1, %s4677_s18 }
 0x1eb   : > { %3315 = vrot.lane.b32.xlu0 %v4358_v62, %s4677_s18 }
 0x1ee   : > { %3317 = vrot.lane.b32.xlu1 %v4364_v8, %s4677_s18 }
 0x1ef   : > { %3319 = vrot.lane.b32.xlu0 %v4366_v12, %s4677_s18  ;;  %s3787_s18 = sshll.u32 %s3857_s30, 4  ;;  %s3788_s18 = int_to_ptr.vmem [resolvable:$false] %s3787_s18 }
 0x1f0   : > { %p3790_p0 = scmp.lt.s32.totalorder %s4600_s25, %s3788_s18 }
 0x1f2   : > { %3483 = vperm.xlu1 %3778, %v3480_v17  }
 0x1f3   : > { %3493 = vperm.xlu0 %3777, %v3490_v18  }
 0x224   : > { %v2020_v23 = vpop.permute.xlu1 %2019 }
 0x225   : > { %v2022_v24 = vpop.permute.xlu0 %2021 }
 0x226   : > { %v2029_v27 = vsel %vm395_vm0, %v2020_v23, %v2022_v24 }
 0x227   : > { %v2032_v30 = vmul.f32 %v2029_v27, %v4081_v20  ;;  %v3626_v20 = vld [vmem:[%s4660_s6 + $0x8] sm:$0xff]  ;;  %v3631_v27 = vld [vmem:[%s4660_s6 + $0x10] sm:$0xff] }
 0x228   : > { %v2024_v31 = vpop.permute.xlu1 %2023 }
 0x229   : > { %v2028_v32 = vsel %vm395_vm0, %v2022_v24, %v2024_v31  ;;  %v2026_v33 = vpop.permute.xlu0 %2025  ;;  %2040 = vmatprep.subr.mxu0 %v2032_v30 }
 0x22a   : > { %v2027_v34 = vsel %vm395_vm0, %v2024_v31, %v2026_v33  ;;  %v2030_v35 = vsel %vm395_vm0, %v2026_v33, %v2020_v23  ;;  %v2033_v44 = vmul.f32 %v2028_v32, %v4087_v22 }
 0x22b   : > { %v2031_v36 = vmul.f32 %v2030_v35, %v4084_v21  ;;  %v2034_v43 = vmul.f32 %v2027_v34, %v4078_v19 }
 0x22c   : > { %v2003_v4 = vpop.permute.xlu1 %2002 }
 0x22d   : > { %v2005_v11 = vpop.permute.xlu0 %2004  ;;  %2041 = vmatpush1.msra.mxu0 %v2031_v36  ;;  %2111 = vmatprep.subr.mxu1 %v2034_v43 }
 0x22e   : > { %v2012_v13 = vsel %vm361_vm1, %v2003_v4, %v2005_v11  ;;  %3627 = vmatmul.mubr.msk.f32.vlgmr.msra.gmra.mrb[2].mxu0 %vm422_vm2, %v3626_v20  ;;  %2112 = vmatpush1.msra.mxu1 %v2033_v44 }
 0x22f   : > { %v2015_v21 = vmul.f32 %v2012_v13, %v4091_v25  ;;  %3628 = vmatmul.mubr.msk.f32.vlgmr.msra.gmra.mrb[2].mxu1 %vm422_vm2, %v3626_v20  ;;  %2249 = vmatprep.mubr.f32.mxu0 %v3847_v0  ;;  %v3634_v20 = vld [vmem:[%s4660_s6 + $0x18] sm:$0xff] }
 0x230   : > { %v2007_v19 = vpop.permute.xlu1 %2006  ;;  %2320 = vmatprep.mubr.f32.mxu1 %v3847_v0 }
 0x231   : > { %v2011_v22 = vsel %vm361_vm1, %v2005_v11, %v2007_v19  ;;  %v2009_v14 = vpop.permute.xlu0 %2008  ;;  %2185 = vmatprep.subr.mxu0 %v2015_v21 }
 0x232   : > { %v2010_v15 = vsel %vm361_vm1, %v2007_v19, %v2009_v14  ;;  %v2013_v49 = vsel %vm361_vm1, %v2009_v14, %v2003_v4  ;;  %v2016_v53 = vmul.f32 %v2011_v22, %v4117_v40 }
 0x233   : > { %v2014_v25 = vmul.f32 %v2013_v49, %v4111_v38  ;;  %v2017_v50 = vmul.f32 %v2010_v15, %v4120_v41 }
 0x234   : > { %v2328_v3 = vpop.permute.xlu1 %2327 }
 0x235   : > { %v2330_v2 = vpop.permute.xlu0 %2329  ;;  %2186 = vmatpush1.msra.mxu0 %v2014_v25  ;;  %2256 = vmatprep.subr.mxu1 %v2017_v50 }
 0x236   : > { %v2337_v60 = vsel %vm721_vm3, %v2328_v3, %v2330_v2  ;;  %3629 = vmatmul.mubr.msk.f32.vlgmr.msra.gmra.mrb[2].mxu0 %vm422_vm2, %v2018_v52  ;;  %2257 = vmatpush1.msra.mxu1 %v2016_v53  ;;  %v3640_v53 = vld [vmem:[%s4660_s6 + $0x28] sm:$0xff] }
 0x237   : > { %v2340_v38 = vmul.f32 %v2337_v60, %v4136_v51  ;;  %3630 = vmatmul.mubr.msk.f32.vlgmr.msra.gmra.mrb[2].mxu1 %vm422_vm2, %v2018_v52  ;;  %2412 = vmatprep.mubr.f32.mxu0 %v3847_v0 }
 0x238   : > { %v2332_v41 = vpop.permute.xlu1 %2331  ;;  %2483 = vmatprep.mubr.f32.mxu1 %v3847_v0 }
 0x239   : > { %v2336_v40 = vsel %vm721_vm3, %v2330_v2, %v2332_v41  ;;  %v2334_v17 = vpop.permute.xlu0 %2333  ;;  %2348 = vmatprep.subr.mxu0 %v2340_v38 }
 0x23a   : > { %v2335_v18 = vsel %vm721_vm3, %v2332_v41, %v2334_v17  ;;  %v2338_v23 = vsel %vm721_vm3, %v2334_v17, %v2328_v3  ;;  %v2341_v30 = vmul.f32 %v2336_v40, %v4150_v58 }
 0x23b   : > { %v2339_v51 = vmul.f32 %v2338_v23, %v4144_v56  ;;  %v2342_v24 = vmul.f32 %v2335_v18, %v4153_v59  ;;  %v3643_v23 = vld [vmem:[%s4660_s6 + $0x30] sm:$0xff] }
 0x23c   : > { %v2495_v31 = vpop.permute.xlu1 %2494 }
 0x23d   : > { %v2497_v32 = vpop.permute.xlu0 %2496  ;;  %2349 = vmatpush1.msra.mxu0 %v2339_v51  ;;  %2419 = vmatprep.subr.mxu1 %v2342_v24 }
 0x23e   : > { %v2504_v33 = vsel %vm905_vm4, %v2495_v31, %v2497_v32  ;;  %3632 = vmatmul.mubr.msk.f32.vlgmr.msra.gmra.mrb[2].mxu0 %vm422_vm2, %v3631_v27  ;;  %2420 = vmatpush1.msra.mxu1 %v2341_v30 }
 0x23f   : > { %v2507_v56 = vmul.f32 %v2504_v33, %v4169_v16  ;;  %3633 = vmatmul.mubr.msk.f32.vlgmr.msra.gmra.mrb[2].mxu1 %vm422_vm2, %v3631_v27  ;;  %2579 = vmatprep.mubr.f32.mxu0 %v3847_v0 }
 0x240   : > { %v2499_v59 = vpop.permute.xlu1 %2498  ;;  %2650 = vmatprep.mubr.f32.mxu1 %v3847_v0 }
 0x241   : > { %v2503_v58 = vsel %vm905_vm4, %v2497_v32, %v2499_v59  ;;  %v2501_v34 = vpop.permute.xlu0 %2500  ;;  %2515 = vmatprep.subr.mxu0 %v2507_v56 }
 0x242   : > { %v2502_v35 = vsel %vm905_vm4, %v2499_v59, %v2501_v34  ;;  %v2505_v36 = vsel %vm905_vm4, %v2501_v34, %v2495_v31  ;;  %v2508_v44 = vmul.f32 %v2503_v58, %v4183_v28  ;;  %v3646_v59 = vld [vmem:[%s4660_s6 + $0x38] sm:$0xff] }
 0x243   : > { %v2506_v16 = vmul.f32 %v2505_v36, %v4177_v26  ;;  %v2509_v43 = vmul.f32 %v2502_v35, %v4186_v29 }
 0x244   : > { %v2813_v4 = vpop.permute.xlu1 %2812 }
 0x245   : > { %v2815_v11 = vpop.permute.xlu0 %2814  ;;  %2516 = vmatpush1.msra.mxu0 %v2506_v16  ;;  %2586 = vmatprep.subr.mxu1 %v2509_v43 }
 0x246   : > { %3635 = vmatmul.mubr.msk.f32.vlgmr.msra.gmra.mrb[2].mxu0 %vm422_vm2, %v3634_v20  ;;  %2587 = vmatpush1.msra.mxu1 %v2508_v44  ;;  %v2822_v13 = vsel %vm1240_vm5, %v2813_v4, %v2815_v11 }
 0x247   : > { %2666 = vmatprep.subr.mxu0 %v4358_v62  ;;  %3636 = vmatmul.mubr.msk.f32.vlgmr.msra.gmra.mrb[2].mxu1 %vm422_vm2, %v3634_v20  ;;  %v2824_v22 = vmul.f32 %v2822_v13, %v4214_v47  ;;  %v3780_v13 = vld [vmem:[%s3966_s26 + $0x8] sm:$0xff] }
 0x248   : > { %2667 = vmatpush1.msra.mxu0 %v4356_v1  ;;  %2737 = vmatprep.subr.mxu1 %v4366_v12  ;;  %v2817_v26 = vpop.permute.xlu1 %2816  ;;  %v3637_v12 = vld [vmem:[%s4660_s6 + $0x20] sm:$0xff] }
 0x249   : > { %2738 = vmatpush1.msra.mxu1 %v4364_v8  ;;  %v2821_v28 = vsel %vm1240_vm5, %v2815_v11, %v2817_v26  ;;  %v2819_v29 = vpop.permute.xlu0 %2818  ;;  %2730 = vmatprep.mubr.f32.mxu0 %v3847_v0 }
 0x24a   : > { %v2825_v62 = vmul.f32 %v2821_v28, %v4208_v45  ;;  %v2823_v21 = vsel %vm1240_vm5, %v2819_v29, %v2813_v4  ;;  %2801 = vmatprep.mubr.f32.mxu1 %v3847_v0  ;;  %v2820_v1 = vsel %vm1240_vm5, %v2817_v26, %v2819_v29  ;;  %v3779_v26 = vld [vmem:[%s3966_s26] sm:$0xff] }
 0x24b   : > { %v2827_v8 = vmul.f32 %v2823_v21, %v4211_v46  ;;  %v2826_v45 = vmul.f32 %v2820_v1, %v4217_v48  ;;  %v3781_v21 = vld [vmem:[%s3966_s26 + $0x10] sm:$0xff] }
 0x24c   : > { %2833 = vmatprep.subr.mxu0 %v2825_v62  ;;  %v2980_v19 = vpop.permute.xlu1 %2979 }
 0x24d   : > { %v2982_v14 = vpop.permute.xlu0 %2981  ;;  %2904 = vmatprep.subr.mxu1 %v2827_v8  ;;  %v3782_v8 = vld [vmem:[%s3966_s26 + $0x18] sm:$0xff]  ;;  %s3789_s26 = scalar_lea.vmem %s3788_s18, 1024 }
 0x24e   : > { %3638 = vmatmul.mubr.msk.f32.vlgmr.msra.gmra.mrb[2].mxu0 %vm422_vm2, %v3637_v12  ;;  %v2989_v47 = vsel %vm1424_vm6, %v2980_v19, %v2982_v14  ;;  %p3791_p1 = scmp.lt.s32.totalorder %s3789_s26, %s3783_s29 }
 0x24f   : > { %2834 = vmatpush1.msra.mxu0 %v2824_v22  ;;  %3639 = vmatmul.mubr.msk.f32.vlgmr.msra.gmra.mrb[2].mxu1 %vm422_vm2, %v3637_v12  ;;  %v2991_v2 = vmul.f32 %v2989_v47, %v4250_v6 }
 0x250   : > { %2905 = vmatpush1.msra.mxu1 %v2826_v45  ;;  %v2984_v15 = vpop.permute.xlu1 %2983  ;;  %2897 = vmatprep.mubr.f32.mxu0 %v3847_v0  ;;  %p3792_p2 = por %p3791_p1, %p3790_p0 }
 0x251   : > { %v2988_v46 = vsel %vm1424_vm6, %v2982_v14, %v2984_v15  ;;  %v2986_v49 = vpop.permute.xlu0 %2985  ;;  %2968 = vmatprep.mubr.f32.mxu1 %v3847_v0 }
 0x252   : > { %v2992_v48 = vmul.f32 %v2988_v46, %v4244_v63  ;;  %v2990_v25 = vsel %vm1424_vm6, %v2986_v49, %v2980_v19  ;;  %v2987_v50 = vsel %vm1424_vm6, %v2984_v15, %v2986_v49  ;;  %p3793_p3 = pnand %p3792_p2, %p3786_p13 }
 0x253   : > { %v2994_v52 = vmul.f32 %v2990_v25, %v4247_v5  ;;  %v2993_v63 = vmul.f32 %v2987_v50, %v4253_v7 }
 0x254   : > { %3000 = vmatprep.subr.mxu0 %v2992_v48  ;;  %v3147_v3 = vpop.permute.xlu1 %3146 }
 0x255   : > { %v3149_v60 = vpop.permute.xlu0 %3148  ;;  %3071 = vmatprep.subr.mxu1 %v2994_v52 }
 0x256   : > { %3641 = vmatmul.mubr.msk.f32.vlgmr.msra.gmra.mrb[2].mxu0 %vm422_vm2, %v3640_v53  ;;  %v3156_v6 = vsel %vm1608_vm7, %v3147_v3, %v3149_v60 }
 0x257   : > { %3001 = vmatpush1.msra.mxu0 %v2991_v2  ;;  %3642 = vmatmul.mubr.msk.f32.vlgmr.msra.gmra.mrb[2].mxu1 %vm422_vm2, %v3640_v53  ;;  %v3158_v24 = vmul.f32 %v3156_v6, %v4283_v39 }
 0x258   : > { %3072 = vmatpush1.msra.mxu1 %v2993_v63  ;;  %v3151_v38 = vpop.permute.xlu1 %3150  ;;  %3064 = vmatprep.mubr.f32.mxu0 %v3847_v0 }
 0x259   : > { %v3155_v5 = vsel %vm1608_vm7, %v3149_v60, %v3151_v38  ;;  %v3153_v41 = vpop.permute.xlu0 %3152  ;;  %3135 = vmatprep.mubr.f32.mxu1 %v3847_v0 }
 0x25a   : > { %v3159_v7 = vmul.f32 %v3155_v5, %v4277_v9  ;;  %v3157_v40 = vsel %vm1608_vm7, %v3153_v41, %v3147_v3  ;;  %v3154_v17 = vsel %vm1608_vm7, %v3151_v38, %v3153_v41 }
 0x25b   : > { %v3161_v18 = vmul.f32 %v3157_v40, %v4280_v37  ;;  %v3160_v9 = vmul.f32 %v3154_v17, %v4286_v42 }
 0x25c   : > { %3167 = vmatprep.subr.mxu0 %v3159_v7  ;;  %v3314_v51 = vpop.permute.xlu1 %3313 }
 0x25d   : > { %v3316_v27 = vpop.permute.xlu0 %3315  ;;  %3238 = vmatprep.subr.mxu1 %v3161_v18 }
 0x25e   : > { %3644 = vmatmul.mubr.msk.f32.vlgmr.msra.gmra.mrb[2].mxu0 %vm422_vm2, %v3643_v23  ;;  %v3323_v39 = vsel %vm1792_vm8, %v3314_v51, %v3316_v27 }
 0x25f   : > { %3168 = vmatpush1.msra.mxu0 %v3158_v24  ;;  %3645 = vmatmul.mubr.msk.f32.vlgmr.msra.gmra.mrb[2].mxu1 %vm422_vm2, %v3643_v23  ;;  %v3325_v58 = vmul.f32 %v4321_v57, %v3323_v39 }
 0x260   : > { %3239 = vmatpush1.msra.mxu1 %v3160_v9  ;;  %v3318_v30 = vpop.permute.xlu1 %3317  ;;  %3231 = vmatprep.mubr.f32.mxu0 %v3847_v0 }
 0x261   : > { %v3322_v37 = vsel %vm1792_vm8, %v3316_v27, %v3318_v30  ;;  %v3320_v31 = vpop.permute.xlu0 %3319  ;;  %3302 = vmatprep.mubr.f32.mxu1 %v3847_v0 }
 0x262   : > { %v3326_v42 = vmul.f32 %v4311_v54, %v3322_v37  ;;  %v3324_v32 = vsel %vm1792_vm8, %v3320_v31, %v3314_v51  ;;  %v3321_v33 = vsel %vm1792_vm8, %v3318_v30, %v3320_v31 }
 0x263   : > { %v3328_v56 = vmul.f32 %v4316_v55, %v3324_v32  ;;  %v3327_v54 = vmul.f32 %v4328_v61, %v3321_v33 }
 0x264   : > { %3334 = vmatprep.subr.mxu0 %v3326_v42 }
 0x265   : > { %3405 = vmatprep.subr.mxu1 %v3328_v56 }
 0x266   : > { %3647 = vmatmul.mubr.msk.f32.vlgmr.msra.gmra.mrb[2].mxu0 %vm422_vm2, %v3646_v59 }
 0x267   : > { %3335 = vmatpush1.msra.mxu0 %v3325_v58  ;;  %3648 = vmatmul.mubr.msk.f32.vlgmr.msra.gmra.mrb[2].mxu1 %vm422_vm2, %v3646_v59 }
 0x268   : > { %3406 = vmatpush1.msra.mxu1 %v3327_v54  ;;  %3398 = vmatprep.mubr.f32.mxu0 %v3847_v0 }
 0x269   : > { %3469 = vmatprep.mubr.f32.mxu1 %v3847_v0 }
 0x26e   : > { %3650 = vmatmul.mubr.msk.f32.vlgmr.msra.gmra.mrb[2].mxu0 %vm422_vm2, %v3649_v10 }
 0x26f   : > { %3651 = vmatmul.mubr.msk.f32.vlgmr.msra.gmra.mrb[2].mxu1 %vm422_vm2, %v3649_v10 }
 0x271   : > { %v3484_v55 = vpop.permute.xlu1 %3483 }
 0x272   : > { %v3494_v0 = vpop.permute.xlu0 %3493 }
 0x341   : > { %v3400_v57 = vpop.f32.mrb[2].mxu0 }
 0x342   : > { %v3486_v61 = vmul.f32 %v3484_v55, %v3400_v57  ;;  %v3402_v34 = vpop.f32.mrb[3].mxu0  ;;  %v3471_v35 = vpop.f32.mrb[2].mxu1 }
 0x343   : > { %v3487_v36 = vmul.f32 %v3484_v55, %v3402_v34  ;;  %v3488_v16 = vmul.f32 %v3484_v55, %v3471_v35  ;;  %v3473_v43 = vpop.f32.mrb[3].mxu1 }
 0x344   : > { %v3496_v20 = vadd.f32 %v3494_v0, %v3486_v61  ;;  %v3489_v44 = vmul.f32 %v3484_v55, %v3473_v43 }
 0x345   : > { %v3497_v4 = vadd.f32 %v3494_v0, %v3487_v36  ;;  %v3498_v11 = vadd.f32 %v3494_v0, %v3488_v16 }
 0x346   : > { %v3500_v28 = vadd.f32 %v3779_v26, %v3496_v20  ;;  %v3499_v29 = vadd.f32 %v3494_v0, %v3489_v44 }
 0x347   : > { %v3501_v62 = vadd.f32 %v3780_v13, %v3497_v4  ;;  %v3502_v1 = vadd.f32 %v3781_v21, %v3498_v11 }
 0x348   : > { %3504 = vst [vmem:[%s329_s24] sm:$0xff] %v3500_v28  ;;  %v3503_v12 = vadd.f32 %v3782_v8, %v3499_v29 }
 0x349   : > { %3505 = vst [vmem:[%s329_s24 + $0x8] sm:$0xff] %v3501_v62  ;;  %3652 = vst [vmem:[%s329_s24 + $0x10] sm:$0xff] %v3502_v1 }
 0x34a   : > { %3653 = vst [vmem:[%s329_s24 + $0x18] sm:$0xff] %v3503_v12 }
 0x34b   : > { %3796 = shalt.err (!%p3793_p3)
}
 0x34c   : > { %s3797_s22 = scalar_lea.hbm %s4608_s5, 512  ;;  %s3801_s10 = scalar_lea.hbm %s4663_s9, 1024 }
 0x34d   : > { %p3798_p4 = scmp.ne.s32.totalorder %s4608_s5, %s3797_s22  ;;  %p3802_p9 = scmp.lt.u32.totalorder %s4608_s5, %s4663_s9 }
 0x34e   : > { %p3803_p10 = scmp.lt.u32.totalorder %s3801_s10, %s3797_s22  ;;  %p3805_p12 = scmp.lt.u32.totalorder %s3797_s22, %s4608_s5 }
 0x34f   : > { %p3799_p7 = pnand %p3798_p4, %p3950_p5 }
 0x350   : > { %p3804_p11 = por %p3803_p10, %p3802_p9 }
 0x351   : > { %p3800_p8 = pneg %p3799_p7 }
 0x352   : > { %p3806_p13 = por %p3805_p12, %p3804_p11 }
 0x354   : > { %p3807_p0 = pnand %p3806_p13, %p3800_p8 }
 0x356   : > { %3810 = shalt.err (!%p3807_p0)
}
 0x357   : > { %s3858_s29 = smov 256  }
 0x358   : > { %3727 = dma.vmem_to_hbm [thread:$0]  (%p3950_p5), %s4600_s25, 512, %s4608_s5, %s4612_s28, %s3858_s29, %s3858_s29, %s3848_s27  }
 0x359 PF: > { %p3733_p1 = scmp.ge.s32.totalorder %s3845_s14, 2  ;;  %s3539_s30 = sand.u32 1, %s3833_s11  }
 0x35a   : > { %s3540_s18 = scalar_lea.sflag [#allocation4], %s3539_s30 }
 0x35b   : > { %p3730_p2 = pnand %p3733_p1, %p3954_p6 }
 0x35d   : > { %3828 = dma.done.wait (!%p3730_p2), %s3540_s18, 512  }
 0x35e   : > { %3830 = vsyncadd (!%p3730_p2), %s3540_s18, 4294966784  ;;  %p20_p3 = scmp.ge.s32.totalorder %s3937_s16, 4   ;;  %s4678_s11 = smov %s3837_s12 }
 0x35f   : > { %s4679_s12 = smov %s3841_s13  ;;  %s4680_s13 = smov %s3948_s19 }
 0x360   : > { %s4681_s14 = smov %s3937_s16  ;;  %22 = sbr.rel (!%p20_p3) target bundleno = 5 (0x5), region = 109 }
 0x367   :  { %3545 = vsyncpa [#allocation4], 1 }
 0x368   :  { %3547 = vsyncpa [#allocation4 + $0x1], 1 }

// kernel: tpu_custom_call.1
= control target key start
LH: loop header
LB: loop body
LE: loop exit
PB: predicated region body
PF: predicated region fallthrough
CT: control target
= control target key end

     0   :  { %s4654_s0 = inlined_call_operand.vmem [shape: f32[4,8,256], index: 0, kind: input, shape index: {}]   ;;  %s4655_s1 = inlined_call_operand.vmem [shape: f32[9,512], index: 1, kind: input, shape index: {}]   ;;  %s4656_s2 = inlined_call_operand.vmem [shape: f32[9,8,8], index: 2, kind: input, shape index: {}]   ;;  %s4657_s3 = inlined_call_operand.vmem [shape: f32[8,1], index: 3, kind: input, shape index: {}]   ;;  %s4658_s4 = inlined_call_operand.vmem [shape: f32[8,1], index: 4, kind: input, shape index: {}]   ;;  %s4659_s5 = inlined_call_operand.<no memory space> [shape: f32[1,1], index: 5, kind: input, shape index: {}]   ;;  %s4660_s6 = inlined_call_operand.vmem [shape: f32[9,8,8], index: 6, kind: input, shape index: {}]   ;;  %s4661_s7 = inlined_call_operand.vmem [shape: f32[8,1], index: 7, kind: input, shape index: {}]   ;;  %s4662_s8 = inlined_call_operand.vmem [shape: f32[8,1], index: 8, kind: input, shape index: {}]   ;;  %s4663_s9 = inlined_call_operand.hbm [shape: f32[4,8,256], index: 9, kind: output, shape index: {}]  }
   0x1   :  { %14 = sst [smem:[#allocation2]] %s4659_s5 }
   0x2   :  { %15 = vsyncpa [#allocation4], 0 }
   0x3   :  { %17 = vsyncpa [#allocation4 + $0x1], 0  ;;  %s3912_s11 = smov 0   ;;  %s3914_s12 = smov 0  }
   0x4   :  { %s3916_s13 = smov 0   ;;  %s3918_s14 = smov 0  }
   0x5 LB: > { %s3933_s5 = sadd.s32 4294967295, %s3845_s14   ;;  %s3586_s15 = sadd.s32 4294967294, %s3845_s14   ;;  %s3845_s14 = sphi %s3918_s14, %s4681_s14   ;;  %s3841_s13 = sphi %s3916_s13, %s4680_s13   ;;  %s3837_s12 = sphi %s3914_s12, %s4679_s12   ;;  %s3833_s11 = sphi %s3912_s11, %s4678_s11  }
   0x6   : > { %s3937_s16 = sadd.s32 1, %s3845_s14   ;;  %s224_s17 = sadd.s32 1, %s3841_s13 }
   0x7   : > { %s221_s18 = ssub.s32 %s3845_s14, %s3937_s16  ;;  %p234_p0 = scmp.ne.s32.totalorder %s3841_s13, %s3837_s12 }
   0x8   : > { %p222_p1 = scmp.eq.s32.totalorder %s221_s18, 0  ;;  %p235_p2 = scmp.eq.s32.totalorder %s3933_s5, 1 }
   0x9   : > { %p240_p3 = scmp.ne.s32.totalorder %s3837_s12, %s3833_s11  ;;  %p241_p4 = scmp.eq.s32.totalorder %s3586_s15, 1 }
   0xa   : > { %s3948_s19 = scalar_select %p222_p1, %s3841_s13, %s224_s17  }
   0xb   : > { %p3950_p5 = por %p235_p2, %p234_p0  ;;  %p3954_p6 = por %p241_p4, %p240_p3 }
   0xc   : > { %p3589_p7 = scmp.ge.s32.totalorder %s3845_s14, 1  ;;  %p293_p8 = scmp.lt.s32.totalorder %s3845_s14, 3 }
   0xe   : > { %p294_p9 = pnand %p3589_p7, %p293_p8 }
   0xf   : > { %s3591_s22 = sshll.u32 (!%p294_p9), %s3933_s5, 1  ;;  %v3847_v0 = vmov (!%p294_p9), 0.0   ;;  %s3848_s27 = smov (!%p294_p9), 16   ;;  %v3856_v5 = vmov (!%p294_p9), 0   ;;  %v1968_v6 = vld [vmem:[%s4657_s3] sm:$0xff] (!%p294_p9)  ;;  %v359_v8 = vlaneseq (!%p294_p9)  ;;  %v4057_v11 = vld [vmem:[%s4655_s1 + $0x18] sm:$0xff] (!%p294_p9) }
  0x10   : > { %297 = sbr.rel (%p294_p9) target bundleno = 857 (0x359), region = 56  ;;  %p331_p10 = scmp.lt.s32.totalorder (!%p294_p9), %s3591_s22, 3  ;;  %490 = vmatprep.mubr.f32.mxu0 (!%p294_p9), %v3847_v0  ;;  %561 = vmatprep.mubr.f32.mxu1 (!%p294_p9), %v3847_v0  ;;  %v1978_v7 = vld [vmem:[%s4658_s4] sm:$0xff] (!%p294_p9)  ;;  %v4063_v13 = vld [vmem:[%s4655_s1 + $0x8] sm:$0xff] (!%p294_p9)  ;;  %v4073_v15 = vld [vmem:[%s4655_s1 + $0x10] sm:$0xff] (!%p294_p9)  ;;  %vm422_vm2 = vcmask (!%p294_p9), 64512  }
  0x11   : > { %s3849_s28 = smov (!%p294_p9), 17   ;;  %s3850_s29 = smov (!%p294_p9), 15   ;;  %3777 = vset.pattern.permute.xlu0 (!%p294_p9), %v3856_v5  ;;  %3778 = vset.pattern.permute.xlu1 (!%p294_p9), %v3856_v5  ;;  %v4050_v9 = vshrl.u32 (!%p294_p9), %v359_v8, 7  ;;  %v4052_v10 = vand.u32 (!%p294_p9), 127, %v359_v8  ;;  %v4068_v14 = vld [vmem:[%s4655_s1] sm:$0xff] (!%p294_p9)  ;;  %v3596_v34 = vld [vmem:[%s4656_s2 + $0x8] sm:$0xff] (!%p294_p9) }
  0x12   : > { %s3851_s30 = smov (!%p294_p9), 1   ;;  %s4670_s10 = smov (!%p294_p9), 127   ;;  %v386_v52 = vld [vmem:[%s4656_s2] sm:$0xff] (!%p294_p9) }
  0x13   : > { %s4668_s15 = smov (!%p294_p9), 113   ;;  %s4664_s17 = smov (!%p294_p9), 112   ;;  %v402_v12 = vsub.s32 (!%p294_p9), 1, %v4050_v9  ;;  %v368_v18 = vsub.s32 (!%p294_p9), 0, %v4050_v9  ;;  %vm395_vm0 = vcmp.lt.s32.totalorder (!%p294_p9), %v4052_v10, 16  ;;  %vm361_vm1 = vcmp.lt.s32.totalorder (!%p294_p9), %v4052_v10, 17 }
  0x14   : > { %s4666_s18 = smov (!%p294_p9), 111   ;;  %v728_v42 = vsub.s32 (!%p294_p9), 2, %v4050_v9  ;;  %vm721_vm3 = vcmp.lt.s32.totalorder (!%p294_p9), %v4052_v10, 15  ;;  %v912_v60 = vsub.s32 (!%p294_p9), 3, %v4050_v9  ;;  %vm905_vm4 = vcmp.lt.s32.totalorder (!%p294_p9), %v4052_v10, 1 }
  0x15   : > { %v4078_v19 = vrot.slane (!%p294_p9), %v4057_v11, %v402_v12  ;;  %v4081_v20 = vrot.slane (!%p294_p9), %v4063_v13, %v402_v12  ;;  %v4084_v21 = vrot.slane (!%p294_p9), %v4068_v14, %v402_v12  ;;  %v4087_v22 = vrot.slane (!%p294_p9), %v4073_v15, %v402_v12 }
  0x16   : > { %v4091_v25 = vrot.slane (!%p294_p9), %v4063_v13, %v368_v18  ;;  %v4111_v38 = vrot.slane (!%p294_p9), %v4068_v14, %v368_v18  ;;  %v4117_v40 = vrot.slane (!%p294_p9), %v4073_v15, %v368_v18  ;;  %v4120_v41 = vrot.slane (!%p294_p9), %v4057_v11, %v368_v18 }
  0x17   : > { %s4683_s22 = smov (!%p331_p10, %s3591_s22), 3  ;;  %v4136_v51 = vrot.slane %v4063_v13, %v728_v42  ;;  %v4144_v56 = vrot.slane %v4068_v14, %v728_v42  ;;  %v4150_v58 = vrot.slane %v4073_v15, %v728_v42  ;;  %v4153_v59 = vrot.slane %v4057_v11, %v728_v42  ;;  %v3604_v42 = vld [vmem:[%s4656_s2 + $0x18] sm:$0xff] }
  0x18   : > { %s3660_s23 = sshll.u32 %s4683_s22, 4  ;;  %vm1240_vm5 = vcmp.lt.s32.totalorder %v4052_v10, 127  ;;  %vm1424_vm6 = vcmp.lt.s32.totalorder %v4052_v10, 113  ;;  %vm1608_vm7 = vcmp.lt.s32.totalorder %v4052_v10, 112  ;;  %vm1792_vm8 = vcmp.lt.s32.totalorder %v4052_v10, 111  ;;  %v3649_v10 = vld [vmem:[%s4660_s6 + $0x40] sm:$0xff] }
  0x19   : > { %s3966_s26 = scalar_lea.vmem %s4654_s0, %s3660_s23  ;;  %s327_s22 = sand.u32 1, %s3837_s12  }
  0x1a   : > { %v3969_v1 = vld [vmem:[%s3966_s26 + $0x10] sm:$0xff]  ;;  %v3972_v2 = vld [vmem:[%s3966_s26] sm:$0xff]  ;;  %v3979_v3 = vld [vmem:[%s3966_s26 + $0x18] sm:$0xff]  ;;  %s3590_s23 = sshll.u32 %s327_s22, 5 }
  0x1b   : > { %391 = vrot.lane.b32.xlu1 %v3969_v1, %s3848_s27  ;;  %387 = vrot.lane.b32.xlu0 %v3972_v2, %s3848_s27  ;;  %v3982_v4 = vld [vmem:[%s3966_s26 + $0x8] sm:$0xff]  ;;  %s329_s24 = scalar_lea.vmem [#allocation3], %s3590_s23 }
  0x1c   : > { %s3524_s25 = sshll.u32 %s329_s24, 4  ;;  %s4600_s25 = int_to_ptr.vmem [resolvable:$true] %s3524_s25 }
  0x1f   : > { %393 = vrot.lane.b32.xlu1 %v3979_v3, %s3848_s27  ;;  %389 = vrot.lane.b32.xlu0 %v3982_v4, %s3848_s27 }
  0x23   : > { %353 = vrot.lane.b32.xlu1 %v3982_v4, %s3849_s28  ;;  %351 = vrot.lane.b32.xlu0 %v3972_v2, %s3849_s28 }
  0x27   : > { %357 = vrot.lane.b32.xlu1 %v3979_v3, %s3849_s28  ;;  %355 = vrot.lane.b32.xlu0 %v3969_v1, %s3849_s28 }
  0x2b   : > { %715 = vrot.lane.b32.xlu1 %v3982_v4, %s3850_s29  ;;  %713 = vrot.lane.b32.xlu0 %v3972_v2, %s3850_s29 }
  0x2f   : > { %719 = vrot.lane.b32.xlu1 %v3979_v3, %s3850_s29  ;;  %717 = vrot.lane.b32.xlu0 %v3969_v1, %s3850_s29 }
  0x33   : > { %899 = vrot.lane.b32.xlu1 %v3982_v4, %s3851_s30  ;;  %897 = vrot.lane.b32.xlu0 %v3972_v2, %s3851_s30 }
  0x37   : > { %903 = vrot.lane.b32.xlu1 %v3979_v3, %s3851_s30  ;;  %901 = vrot.lane.b32.xlu0 %v3969_v1, %s3851_s30 }
  0x3b   : > { %1232 = vrot.lane.b32.xlu0 %v3972_v2, %s4670_s10  ;;  %1234 = vrot.lane.b32.xlu1 %v3982_v4, %s4670_s10 }
  0x3f   : > { %1236 = vrot.lane.b32.xlu0 %v3969_v1, %s4670_s10  ;;  %1238 = vrot.lane.b32.xlu1 %v3979_v3, %s4670_s10  ;;  %s3662_s10 = sshll.u32 %s3933_s5, 9 }
  0x40   : > { %s4608_s5 = scalar_lea.hbm %s4663_s9, %s3662_s10 }
  0x43   : > { %1416 = vrot.lane.b32.xlu0 %v3972_v2, %s4668_s15  ;;  %1418 = vrot.lane.b32.xlu1 %v3982_v4, %s4668_s15 }
  0x47   : > { %1420 = vrot.lane.b32.xlu0 %v3969_v1, %s4668_s15  ;;  %1422 = vrot.lane.b32.xlu1 %v3979_v3, %s4668_s15 }
  0x4b   : > { %1600 = vrot.lane.b32.xlu0 %v3972_v2, %s4664_s17  ;;  %1602 = vrot.lane.b32.xlu1 %v3982_v4, %s4664_s17 }
  0x4f   : > { %1604 = vrot.lane.b32.xlu0 %v3969_v1, %s4664_s17  ;;  %1606 = vrot.lane.b32.xlu1 %v3979_v3, %s4664_s17  ;;  %s1988_s17 = sld [smem:[#allocation2]] }
  0x53   : > { %1784 = vrot.lane.b32.xlu0 %v3972_v2, %s4666_s18  ;;  %1786 = vrot.lane.b32.xlu1 %v3982_v4, %s4666_s18 }
  0x57   : > { %1788 = vrot.lane.b32.xlu0 %v3969_v1, %s4666_s18  ;;  %1790 = vrot.lane.b32.xlu1 %v3979_v3, %s4666_s18  ;;  %s4677_s18 = smov 111  }
  0x5b   : > { %1971 = vperm.xlu0 %3777, %v1968_v6   ;;  %1981 = vperm.xlu1 %3778, %v1978_v7  }
  0x8d   : > { %v392_v16 = vpop.permute.xlu1 %391  ;;  %v388_v17 = vpop.permute.xlu0 %387 }
  0x91   : > { %v394_v23 = vpop.permute.xlu1 %393  ;;  %v390_v24 = vpop.permute.xlu0 %389 }
  0x92   : > { %v399_v26 = vsel %vm395_vm0, %v394_v23, %v388_v17  ;;  %v397_v27 = vsel %vm395_vm0, %v390_v24, %v392_v16  ;;  %v396_v28 = vsel %vm395_vm0, %v392_v16, %v394_v23  ;;  %v398_v29 = vsel %vm395_vm0, %v388_v17, %v390_v24  ;;  %v3601_v17 = vld [vmem:[%s4656_s2 + $0x10] sm:$0xff] }
  0x93   : > { %v419_v30 = vmul.f32 %v4078_v19, %v396_v28  ;;  %v417_v31 = vmul.f32 %v4081_v20, %v398_v29  ;;  %v416_v32 = vmul.f32 %v4084_v21, %v399_v26  ;;  %v418_v33 = vmul.f32 %v4087_v22, %v397_v27 }
  0x94   : > { %v4169_v16 = vrot.slane %v4063_v13, %v912_v60  ;;  %v4177_v26 = vrot.slane %v4068_v14, %v912_v60  ;;  %v4183_v28 = vrot.slane %v4073_v15, %v912_v60  ;;  %v4186_v29 = vrot.slane %v4057_v11, %v912_v60  ;;  %v3607_v60 = vld [vmem:[%s4656_s2 + $0x20] sm:$0xff] }
  0x95   : > { %497 = vmatprep.subr.mxu1 %v419_v30  ;;  %v354_v35 = vpop.permute.xlu1 %353  ;;  %426 = vmatprep.subr.mxu0 %v417_v31  ;;  %v352_v36 = vpop.permute.xlu0 %351 }
  0x96   : > { %v364_v37 = vsel %vm361_vm1, %v352_v36, %v354_v35  ;;  %427 = vmatpush1.msra.mxu0 %v416_v32  ;;  %498 = vmatpush1.msra.mxu1 %v418_v33 }
  0x97   : > { %v383_v39 = vmul.f32 %v4091_v25, %v364_v37  ;;  %3597 = vmatmul.mubr.msk.f32.vlgmr.msra.gmra.mrb[0].mxu0 %vm422_vm2, %v3596_v34  ;;  %3598 = vmatmul.mubr.msk.f32.vlgmr.msra.gmra.mrb[0].mxu1 %vm422_vm2, %v3596_v34 }
  0x98   : > { %635 = vmatprep.mubr.f32.mxu0 %v3847_v0  ;;  %706 = vmatprep.mubr.f32.mxu1 %v3847_v0 }
  0x99   : > { %v358_v43 = vpop.permute.xlu1 %357  ;;  %v356_v44 = vpop.permute.xlu0 %355  ;;  %571 = vmatprep.subr.mxu0 %v383_v39  ;;  %v1247_v39 = vsub.s32 5, %v4050_v9 }
  0x9a   : > { %v365_v45 = vsel %vm361_vm1, %v358_v43, %v352_v36  ;;  %v362_v46 = vsel %vm361_vm1, %v356_v44, %v358_v43  ;;  %v363_v47 = vsel %vm361_vm1, %v354_v35, %v356_v44 }
  0x9b   : > { %v382_v48 = vmul.f32 %v4111_v38, %v365_v45  ;;  %v384_v49 = vmul.f32 %v4117_v40, %v363_v47  ;;  %v385_v50 = vmul.f32 %v4120_v41, %v362_v46  ;;  %v4208_v45 = vrot.slane %v4063_v13, %v1247_v39 }
  0x9c   : > { %v4211_v46 = vrot.slane %v4057_v11, %v1247_v39  ;;  %v4214_v47 = vrot.slane %v4068_v14, %v1247_v39 }
  0x9d   : > { %v716_v53 = vpop.permute.xlu1 %715  ;;  %572 = vmatpush1.msra.mxu0 %v382_v48  ;;  %642 = vmatprep.subr.mxu1 %v385_v50  ;;  %v714_v54 = vpop.permute.xlu0 %713  ;;  %v4217_v48 = vrot.slane %v4073_v15, %v1247_v39 }
  0x9e   : > { %v724_v55 = vsel %vm721_vm3, %v714_v54, %v716_v53  ;;  %643 = vmatpush1.msra.mxu1 %v384_v49 }
  0x9f   : > { %v743_v57 = vmul.f32 %v4136_v51, %v724_v55  ;;  %3599 = vmatmul.mubr.msk.f32.vlgmr.msra.gmra.mrb[0].mxu0 %vm422_vm2, %v386_v52  ;;  %3600 = vmatmul.mubr.msk.f32.vlgmr.msra.gmra.mrb[0].mxu1 %vm422_vm2, %v386_v52  ;;  %v1431_v55 = vsub.s32 6, %v4050_v9 }
  0xa0   : > { %815 = vmatprep.mubr.f32.mxu0 %v3847_v0  ;;  %886 = vmatprep.mubr.f32.mxu1 %v3847_v0 }
  0xa1   : > { %v720_v61 = vpop.permute.xlu1 %719  ;;  %v718_v62 = vpop.permute.xlu0 %717  ;;  %751 = vmatprep.subr.mxu0 %v743_v57 }
  0xa2   : > { %v725_v63 = vsel %vm721_vm3, %v720_v61, %v714_v54  ;;  %v722_v5 = vsel %vm721_vm3, %v718_v62, %v720_v61  ;;  %v723_v6 = vsel %vm721_vm3, %v716_v53, %v718_v62 }
  0xa3   : > { %v742_v7 = vmul.f32 %v4144_v56, %v725_v63  ;;  %v744_v8 = vmul.f32 %v4150_v58, %v723_v6  ;;  %v745_v12 = vmul.f32 %v4153_v59, %v722_v5  ;;  %v4244_v63 = vrot.slane %v4063_v13, %v1431_v55 }
  0xa4   : > { %v4247_v5 = vrot.slane %v4057_v11, %v1431_v55  ;;  %v4250_v6 = vrot.slane %v4068_v14, %v1431_v55 }
  0xa5   : > { %v900_v18 = vpop.permute.xlu1 %899  ;;  %752 = vmatpush1.msra.mxu0 %v742_v7  ;;  %822 = vmatprep.subr.mxu1 %v745_v12  ;;  %v898_v23 = vpop.permute.xlu0 %897  ;;  %v4253_v7 = vrot.slane %v4073_v15, %v1431_v55  ;;  %v4316_v55 = vld [vmem:[%s4655_s1 + $0x38] ss:$0 sm:$0xff] }
  0xa6   : > { %v908_v24 = vsel %vm905_vm4, %v898_v23, %v900_v18  ;;  %823 = vmatpush1.msra.mxu1 %v744_v8 }
  0xa7   : > { %v927_v27 = vmul.f32 %v4169_v16, %v908_v24  ;;  %3602 = vmatmul.mubr.msk.f32.vlgmr.msra.gmra.mrb[0].mxu0 %vm422_vm2, %v3601_v17  ;;  %3603 = vmatmul.mubr.msk.f32.vlgmr.msra.gmra.mrb[0].mxu1 %vm422_vm2, %v3601_v17 }
  0xa8   : > { %999 = vmatprep.mubr.f32.mxu0 %v3847_v0  ;;  %1070 = vmatprep.mubr.f32.mxu1 %v3847_v0 }
  0xa9   : > { %v904_v30 = vpop.permute.xlu1 %903  ;;  %v902_v31 = vpop.permute.xlu0 %901  ;;  %935 = vmatprep.subr.mxu0 %v927_v27 }
  0xaa   : > { %v909_v32 = vsel %vm905_vm4, %v904_v30, %v898_v23  ;;  %v906_v33 = vsel %vm905_vm4, %v902_v31, %v904_v30  ;;  %v907_v34 = vsel %vm905_vm4, %v900_v18, %v902_v31  ;;  %v1615_v31 = vsub.s32 7, %v4050_v9 }
  0xab   : > { %v926_v35 = vmul.f32 %v4177_v26, %v909_v32  ;;  %v928_v36 = vmul.f32 %v4183_v28, %v907_v34  ;;  %v929_v37 = vmul.f32 %v4186_v29, %v906_v33  ;;  %v3610_v34 = vld [vmem:[%s4656_s2 + $0x28] sm:$0xff] }
  0xac   : > { %v4277_v9 = vrot.slane %v4063_v13, %v1615_v31  ;;  %v4283_v39 = vrot.slane %v4068_v14, %v1615_v31 }
  0xad   : > { %936 = vmatpush1.msra.mxu0 %v926_v35  ;;  %1006 = vmatprep.subr.mxu1 %v929_v37  ;;  %v1233_v43 = vpop.permute.xlu0 %1232  ;;  %v1235_v44 = vpop.permute.xlu1 %1234  ;;  %v4280_v37 = vrot.slane %v4057_v11, %v1615_v31 }
  0xae   : > { %1007 = vmatpush1.msra.mxu1 %v928_v36  ;;  %1086 = vmatprep.subr.mxu0 %v3982_v4  ;;  %v1243_v4 = vsel %vm1240_vm5, %v1233_v43, %v1235_v44 }
  0xaf   : > { %3605 = vmatmul.mubr.msk.f32.vlgmr.msra.gmra.mrb[0].mxu0 %vm422_vm2, %v3604_v42  ;;  %3606 = vmatmul.mubr.msk.f32.vlgmr.msra.gmra.mrb[0].mxu1 %vm422_vm2, %v3604_v42  ;;  %v1261_v57 = vmul.f32 %v4214_v47, %v1243_v4  ;;  %v4286_v42 = vrot.slane %v4073_v15, %v1615_v31  ;;  %v3623_v31 = vld [vmem:[%s4656_s2 + $0x40] sm:$0xff] }
  0xb0   : > { %1157 = vmatprep.subr.mxu1 %v3979_v3  ;;  %1087 = vmatpush1.msra.mxu0 %v3972_v2 }
  0xb1   : > { %v1237_v49 = vpop.permute.xlu0 %1236  ;;  %v1239_v50 = vpop.permute.xlu1 %1238  ;;  %1150 = vmatprep.mubr.f32.mxu0 %v3847_v0  ;;  %1158 = vmatpush1.msra.mxu1 %v3969_v1 }
  0xb2   : > { %v1242_v52 = vsel %vm1240_vm5, %v1235_v44, %v1237_v49  ;;  %v1241_v53 = vsel %vm1240_vm5, %v1237_v49, %v1239_v50  ;;  %v1244_v3 = vsel %vm1240_vm5, %v1239_v50, %v1233_v43  ;;  %1221 = vmatprep.mubr.f32.mxu1 %v3847_v0 }
  0xb3   : > { %v1262_v2 = vmul.f32 %v4208_v45, %v1242_v52  ;;  %v1264_v54 = vmul.f32 %v4211_v46, %v1244_v3  ;;  %v1263_v1 = vmul.f32 %v4217_v48, %v1241_v53  ;;  %v3613_v53 = vld [vmem:[%s4656_s2 + $0x30] sm:$0xff] }
  0xb5   : > { %1270 = vmatprep.subr.mxu0 %v1262_v2  ;;  %v1417_v61 = vpop.permute.xlu0 %1416  ;;  %v1419_v62 = vpop.permute.xlu1 %1418  ;;  %1341 = vmatprep.subr.mxu1 %v1264_v54  ;;  %v4311_v54 = vld [vmem:[%s4655_s1 + $0x28] ss:$0 sm:$0xff] }
  0xb6   : > { %v1427_v8 = vsel %vm1424_vm6, %v1417_v61, %v1419_v62 }
  0xb7   : > { %3608 = vmatmul.mubr.msk.f32.vlgmr.msra.gmra.mrb[0].mxu0 %vm422_vm2, %v3607_v60  ;;  %3609 = vmatmul.mubr.msk.f32.vlgmr.msra.gmra.mrb[0].mxu1 %vm422_vm2, %v3607_v60  ;;  %v1445_v32 = vmul.f32 %v4250_v6, %v1427_v8 }
  0xb8   : > { %1271 = vmatpush1.msra.mxu0 %v1261_v57  ;;  %1342 = vmatpush1.msra.mxu1 %v1263_v1  ;;  %v4321_v57 = vld [vmem:[%s4655_s1 + $0x20] ss:$0 sm:$0xff] }
  0xb9   : > { %v1421_v12 = vpop.permute.xlu0 %1420  ;;  %v1423_v17 = vpop.permute.xlu1 %1422  ;;  %1334 = vmatprep.mubr.f32.mxu0 %v3847_v0  ;;  %1405 = vmatprep.mubr.f32.mxu1 %v3847_v0 }
  0xba   : > { %v1426_v18 = vsel %vm1424_vm6, %v1419_v62, %v1421_v12  ;;  %v1425_v23 = vsel %vm1424_vm6, %v1421_v12, %v1423_v17  ;;  %v1428_v24 = vsel %vm1424_vm6, %v1423_v17, %v1417_v61  ;;  %v4328_v61 = vld [vmem:[%s4655_s1 + $0x30] ss:$0 sm:$0xff] }
  0xbb   : > { %v1446_v27 = vmul.f32 %v4244_v63, %v1426_v18  ;;  %v1448_v30 = vmul.f32 %v4247_v5, %v1428_v24  ;;  %v1447_v33 = vmul.f32 %v4253_v7, %v1425_v23 }
  0xbd   : > { %1454 = vmatprep.subr.mxu0 %v1446_v27  ;;  %v1601_v35 = vpop.permute.xlu0 %1600  ;;  %v1603_v36 = vpop.permute.xlu1 %1602  ;;  %1525 = vmatprep.subr.mxu1 %v1448_v30  ;;  %v3616_v30 = vld [vmem:[%s4656_s2 + $0x38] sm:$0xff] }
  0xbe   : > { %v1611_v43 = vsel %vm1608_vm7, %v1601_v35, %v1603_v36 }
  0xbf   : > { %3611 = vmatmul.mubr.msk.f32.vlgmr.msra.gmra.mrb[0].mxu0 %vm422_vm2, %v3610_v34  ;;  %3612 = vmatmul.mubr.msk.f32.vlgmr.msra.gmra.mrb[0].mxu1 %vm422_vm2, %v3610_v34  ;;  %v1629_v50 = vmul.f32 %v4283_v39, %v1611_v43 }
  0xc0   : > { %1455 = vmatpush1.msra.mxu0 %v1445_v32  ;;  %1526 = vmatpush1.msra.mxu1 %v1447_v33 }
  0xc1   : > { %v1605_v44 = vpop.permute.xlu0 %1604  ;;  %v1607_v4 = vpop.permute.xlu1 %1606  ;;  %1518 = vmatprep.mubr.f32.mxu0 %v3847_v0  ;;  %1589 = vmatprep.mubr.f32.mxu1 %v3847_v0 }
  0xc2   : > { %v1610_v11 = vsel %vm1608_vm7, %v1603_v36, %v1605_v44  ;;  %v1609_v13 = vsel %vm1608_vm7, %v1605_v44, %v1607_v4  ;;  %v1612_v14 = vsel %vm1608_vm7, %v1607_v4, %v1601_v35 }
  0xc3   : > { %v1630_v15 = vmul.f32 %v4277_v9, %v1610_v11  ;;  %v1632_v49 = vmul.f32 %v4280_v37, %v1612_v14  ;;  %v1631_v52 = vmul.f32 %v4286_v42, %v1609_v13  ;;  %v1993_v14 = vstv %s1988_s17 }
  0xc5   : > { %1638 = vmatprep.subr.mxu0 %v1630_v15  ;;  %v1785_v3 = vpop.permute.xlu0 %1784  ;;  %v1787_v2 = vpop.permute.xlu1 %1786  ;;  %1709 = vmatprep.subr.mxu1 %v1632_v49 }
  0xc6   : > { %v1795_v1 = vsel %vm1792_vm8, %v1785_v3, %v1787_v2 }
  0xc7   : > { %3614 = vmatmul.mubr.msk.f32.vlgmr.msra.gmra.mrb[0].mxu0 %vm422_vm2, %v3613_v53  ;;  %3615 = vmatmul.mubr.msk.f32.vlgmr.msra.gmra.mrb[0].mxu1 %vm422_vm2, %v3613_v53  ;;  %v1813_v24 = vmul.f32 %v4321_v57, %v1795_v1 }
  0xc8   : > { %1639 = vmatpush1.msra.mxu0 %v1629_v50  ;;  %1710 = vmatpush1.msra.mxu1 %v1631_v52 }
  0xc9   : > { %v1789_v60 = vpop.permute.xlu0 %1788  ;;  %v1791_v62 = vpop.permute.xlu1 %1790  ;;  %1702 = vmatprep.mubr.f32.mxu0 %v3847_v0  ;;  %1773 = vmatprep.mubr.f32.mxu1 %v3847_v0 }
  0xca   : > { %v1794_v8 = vsel %vm1792_vm8, %v1787_v2, %v1789_v60  ;;  %v1793_v12 = vsel %vm1792_vm8, %v1789_v60, %v1791_v62  ;;  %v1796_v17 = vsel %vm1792_vm8, %v1791_v62, %v1785_v3 }
  0xcb   : > { %v1814_v18 = vmul.f32 %v4311_v54, %v1794_v8  ;;  %v1816_v23 = vmul.f32 %v4316_v55, %v1796_v17  ;;  %v1815_v27 = vmul.f32 %v4328_v61, %v1793_v12  ;;  %v3480_v17 = vld [vmem:[%s4661_s7] sm:$0xff] }
  0xcd   : > { %1822 = vmatprep.subr.mxu0 %v1814_v18  ;;  %1893 = vmatprep.subr.mxu1 %v1816_v23  ;;  %v3490_v18 = vld [vmem:[%s4662_s8] sm:$0xff] }
  0xcf   : > { %3617 = vmatmul.mubr.msk.f32.vlgmr.msra.gmra.mrb[0].mxu0 %vm422_vm2, %v3616_v30  ;;  %3618 = vmatmul.mubr.msk.f32.vlgmr.msra.gmra.mrb[0].mxu1 %vm422_vm2, %v3616_v30 }
  0xd0   : > { %1823 = vmatpush1.msra.mxu0 %v1813_v24  ;;  %1894 = vmatpush1.msra.mxu1 %v1815_v27 }
  0xd1   : > { %1886 = vmatprep.mubr.f32.mxu0 %v3847_v0  ;;  %1957 = vmatprep.mubr.f32.mxu1 %v3847_v0 }
  0xd7   : > { %3624 = vmatmul.mubr.msk.f32.vlgmr.msra.gmra.mrb[0].mxu0 %vm422_vm2, %v3623_v31  ;;  %3625 = vmatmul.mubr.msk.f32.vlgmr.msra.gmra.mrb[0].mxu1 %vm422_vm2, %v3623_v31 }
  0xd8   : > { %2104 = vmatprep.mubr.f32.mxu0 %v3847_v0  ;;  %2175 = vmatprep.mubr.f32.mxu1 %v3847_v0 }
  0xda   : > { %v1972_v32 = vpop.permute.xlu0 %1971  ;;  %v1982_v33 = vpop.permute.xlu1 %1981 }
 0x1aa   : > { %v1888_v34 = vpop.f32.mrb[0].mxu0  ;;  %v1959_v35 = vpop.f32.mrb[0].mxu1 }
 0x1ab   : > { %v1974_v36 = vmul.f32 %v1972_v32, %v1888_v34  ;;  %v1976_v43 = vmul.f32 %v1972_v32, %v1959_v35  ;;  %v1890_v44 = vpop.f32.mrb[1].mxu0  ;;  %v1961_v4 = vpop.f32.mrb[1].mxu1 }
 0x1ac   : > { %v1975_v11 = vmul.f32 %v1972_v32, %v1890_v44  ;;  %v1977_v13 = vmul.f32 %v1972_v32, %v1961_v4 }
 0x1ad   : > { %v1984_v15 = vadd.f32 %v1982_v33, %v1974_v36  ;;  %v1986_v49 = vadd.f32 %v1982_v33, %v1976_v43 }
 0x1ae   : > { %v1985_v50 = vadd.f32 %v1982_v33, %v1975_v11  ;;  %v1987_v52 = vadd.f32 %v1982_v33, %v1977_v13 }
 0x1af   : > { %vm1989_vm9 = vcmp.ge.f32.partialorder %v1984_v15, 0.0  ;;  %v1994_v53 = vmul.f32 %v1993_v14, %v1984_v15  ;;  %v1996_v2 = vmul.f32 %v1993_v14, %v1986_v49  ;;  %vm1991_vm11 = vcmp.ge.f32.partialorder %v1986_v49, 0.0 }
 0x1b0   : > { %vm1990_vm10 = vcmp.ge.f32.partialorder %v1985_v50, 0.0  ;;  %v1995_v3 = vmul.f32 %v1993_v14, %v1985_v50  ;;  %v1997_v60 = vmul.f32 %v1993_v14, %v1987_v52  ;;  %vm1992_vm12 = vcmp.ge.f32.partialorder %v1987_v52, 0.0 }
 0x1b1   : > { %v4356_v1 = vsel %vm1989_vm9, %v1984_v15, %v1994_v53  ;;  %v4364_v8 = vsel %vm1991_vm11, %v1986_v49, %v1996_v2 }
 0x1b2   : > { %v4358_v62 = vsel %vm1990_vm10, %v1985_v50, %v1995_v3  ;;  %2019 = vrot.lane.b32.xlu1 %v4356_v1, %s3848_s27  ;;  %v4366_v12 = vsel %vm1992_vm12, %v1987_v52, %v1997_v60  ;;  %v2018_v52 = vld [vmem:[%s4660_s6] sm:$0xff] }
 0x1b3   : > { %2021 = vrot.lane.b32.xlu0 %v4358_v62, %s3848_s27 }
 0x1b6   : > { %2023 = vrot.lane.b32.xlu1 %v4364_v8, %s3848_s27 }
 0x1b7   : > { %2025 = vrot.lane.b32.xlu0 %v4366_v12, %s3848_s27 }
 0x1ba   : > { %2002 = vrot.lane.b32.xlu1 %v4356_v1, %s3849_s28 }
 0x1bb   : > { %2004 = vrot.lane.b32.xlu0 %v4358_v62, %s3849_s28 }
 0x1be   : > { %2006 = vrot.lane.b32.xlu1 %v4364_v8, %s3849_s28 }
 0x1bf   : > { %2008 = vrot.lane.b32.xlu0 %v4366_v12, %s3849_s28  ;;  %s4674_s28 = smov 127  }
 0x1c2   : > { %2327 = vrot.lane.b32.xlu1 %v4356_v1, %s3850_s29 }
 0x1c3   : > { %2329 = vrot.lane.b32.xlu0 %v4358_v62, %s3850_s29 }
 0x1c6   : > { %2331 = vrot.lane.b32.xlu1 %v4364_v8, %s3850_s29 }
 0x1c7   : > { %2333 = vrot.lane.b32.xlu0 %v4366_v12, %s3850_s29  ;;  %s4675_s29 = smov 113  }
 0x1ca   : > { %2494 = vrot.lane.b32.xlu1 %v4356_v1, %s3851_s30 }
 0x1cb   : > { %2496 = vrot.lane.b32.xlu0 %v4358_v62, %s3851_s30 }
 0x1ce   : > { %2498 = vrot.lane.b32.xlu1 %v4364_v8, %s3851_s30 }
 0x1cf   : > { %2500 = vrot.lane.b32.xlu0 %v4366_v12, %s3851_s30  ;;  %s4676_s30 = smov 112  }
 0x1d2   : > { %2812 = vrot.lane.b32.xlu1 %v4356_v1, %s4674_s28 }
 0x1d3   : > { %2814 = vrot.lane.b32.xlu0 %v4358_v62, %s4674_s28 }
 0x1d6   : > { %2816 = vrot.lane.b32.xlu1 %v4364_v8, %s4674_s28 }
 0x1d7   : > { %2818 = vrot.lane.b32.xlu0 %v4366_v12, %s4674_s28  ;;  %s4612_s28 = scalar_lea.sflag [#allocation4], %s327_s22 }
 0x1da   : > { %2979 = vrot.lane.b32.xlu1 %v4356_v1, %s4675_s29 }
 0x1db   : > { %2981 = vrot.lane.b32.xlu0 %v4358_v62, %s4675_s29 }
 0x1de   : > { %2983 = vrot.lane.b32.xlu1 %v4364_v8, %s4675_s29 }
 0x1df   : > { %2985 = vrot.lane.b32.xlu0 %v4366_v12, %s4675_s29  ;;  %s3783_s29 = scalar_lea.vmem %s4600_s25, 512 }
 0x1e0   : > { %p3784_p11 = scmp.ne.s32.totalorder %s4600_s25, %s3783_s29 }
 0x1e2   : > { %3146 = vrot.lane.b32.xlu1 %v4356_v1, %s4676_s30  ;;  %p3785_p12 = pnand %p3784_p11, %p3950_p5 }
 0x1e3   : > { %3148 = vrot.lane.b32.xlu0 %v4358_v62, %s4676_s30 }
 0x1e4   : > { %p3786_p13 = pneg %p3785_p12 }
 0x1e6   : > { %3150 = vrot.lane.b32.xlu1 %v4364_v8, %s4676_s30 }
 0x1e7   : > { %3152 = vrot.lane.b32.xlu0 %v4366_v12, %s4676_s30  ;;  %s3857_s30 = smov [#allocation3]  }
 0x1ea   : > { %3313 = vrot.lane.b32.xlu1 %v4356_v1, %s4677_s18 }
 0x1eb   : > { %3315 = vrot.lane.b32.xlu0 %v4358_v62, %s4677_s18 }
 0x1ee   : > { %3317 = vrot.lane.b32.xlu1 %v4364_v8, %s4677_s18 }
 0x1ef   : > { %3319 = vrot.lane.b32.xlu0 %v4366_v12, %s4677_s18  ;;  %s3787_s18 = sshll.u32 %s3857_s30, 4  ;;  %s3788_s18 = int_to_ptr.vmem [resolvable:$false] %s3787_s18 }
 0x1f0   : > { %p3790_p0 = scmp.lt.s32.totalorder %s4600_s25, %s3788_s18 }
 0x1f2   : > { %3483 = vperm.xlu1 %3778, %v3480_v17  }
 0x1f3   : > { %3493 = vperm.xlu0 %3777, %v3490_v18  }
 0x224   : > { %v2020_v23 = vpop.permute.xlu1 %2019 }
 0x225   : > { %v2022_v24 = vpop.permute.xlu0 %2021 }
 0x226   : > { %v2029_v27 = vsel %vm395_vm0, %v2020_v23, %v2022_v24 }
 0x227   : > { %v2032_v30 = vmul.f32 %v2029_v27, %v4081_v20  ;;  %v3626_v20 = vld [vmem:[%s4660_s6 + $0x8] sm:$0xff]  ;;  %v3631_v27 = vld [vmem:[%s4660_s6 + $0x10] sm:$0xff] }
 0x228   : > { %v2024_v31 = vpop.permute.xlu1 %2023 }
 0x229   : > { %v2028_v32 = vsel %vm395_vm0, %v2022_v24, %v2024_v31  ;;  %v2026_v33 = vpop.permute.xlu0 %2025  ;;  %2040 = vmatprep.subr.mxu0 %v2032_v30 }
 0x22a   : > { %v2027_v34 = vsel %vm395_vm0, %v2024_v31, %v2026_v33  ;;  %v2030_v35 = vsel %vm395_vm0, %v2026_v33, %v2020_v23  ;;  %v2033_v44 = vmul.f32 %v2028_v32, %v4087_v22 }
 0x22b   : > { %v2031_v36 = vmul.f32 %v2030_v35, %v4084_v21  ;;  %v2034_v43 = vmul.f32 %v2027_v34, %v4078_v19 }
 0x22c   : > { %v2003_v4 = vpop.permute.xlu1 %2002 }
 0x22d   : > { %v2005_v11 = vpop.permute.xlu0 %2004  ;;  %2041 = vmatpush1.msra.mxu0 %v2031_v36  ;;  %2111 = vmatprep.subr.mxu1 %v2034_v43 }
 0x22e   : > { %v2012_v13 = vsel %vm361_vm1, %v2003_v4, %v2005_v11  ;;  %3627 = vmatmul.mubr.msk.f32.vlgmr.msra.gmra.mrb[2].mxu0 %vm422_vm2, %v3626_v20  ;;  %2112 = vmatpush1.msra.mxu1 %v2033_v44 }
 0x22f   : > { %v2015_v21 = vmul.f32 %v2012_v13, %v4091_v25  ;;  %3628 = vmatmul.mubr.msk.f32.vlgmr.msra.gmra.mrb[2].mxu1 %vm422_vm2, %v3626_v20  ;;  %2249 = vmatprep.mubr.f32.mxu0 %v3847_v0  ;;  %v3634_v20 = vld [vmem:[%s4660_s6 + $0x18] sm:$0xff] }
 0x230   : > { %v2007_v19 = vpop.permute.xlu1 %2006  ;;  %2320 = vmatprep.mubr.f32.mxu1 %v3847_v0 }
 0x231   : > { %v2011_v22 = vsel %vm361_vm1, %v2005_v11, %v2007_v19  ;;  %v2009_v14 = vpop.permute.xlu0 %2008  ;;  %2185 = vmatprep.subr.mxu0 %v2015_v21 }
 0x232   : > { %v2010_v15 = vsel %vm361_vm1, %v2007_v19, %v2009_v14  ;;  %v2013_v49 = vsel %vm361_vm1, %v2009_v14, %v2003_v4  ;;  %v2016_v53 = vmul.f32 %v2011_v22, %v4117_v40 }
 0x233   : > { %v2014_v25 = vmul.f32 %v2013_v49, %v4111_v38  ;;  %v2017_v50 = vmul.f32 %v2010_v15, %v4120_v41 }
 0x234   : > { %v2328_v3 = vpop.permute.xlu1 %2327 }
 0x235   : > { %v2330_v2 = vpop.permute.xlu0 %2329  ;;  %2186 = vmatpush1.msra.mxu0 %v2014_v25  ;;  %2256 = vmatprep.subr.mxu1 %v2017_v50 }
 0x236   : > { %v2337_v60 = vsel %vm721_vm3, %v2328_v3, %v2330_v2  ;;  %3629 = vmatmul.mubr.msk.f32.vlgmr.msra.gmra.mrb[2].mxu0 %vm422_vm2, %v2018_v52  ;;  %2257 = vmatpush1.msra.mxu1 %v2016_v53  ;;  %v3640_v53 = vld [vmem:[%s4660_s6 + $0x28] sm:$0xff] }
 0x237   : > { %v2340_v38 = vmul.f32 %v2337_v60, %v4136_v51  ;;  %3630 = vmatmul.mubr.msk.f32.vlgmr.msra.gmra.mrb[2].mxu1 %vm422_vm2, %v2018_v52  ;;  %2412 = vmatprep.mubr.f32.mxu0 %v3847_v0 }
 0x238   : > { %v2332_v41 = vpop.permute.xlu1 %2331  ;;  %2483 = vmatprep.mubr.f32.mxu1 %v3847_v0 }
 0x239   : > { %v2336_v40 = vsel %vm721_vm3, %v2330_v2, %v2332_v41  ;;  %v2334_v17 = vpop.permute.xlu0 %2333  ;;  %2348 = vmatprep.subr.mxu0 %v2340_v38 }
 0x23a   : > { %v2335_v18 = vsel %vm721_vm3, %v2332_v41, %v2334_v17  ;;  %v2338_v23 = vsel %vm721_vm3, %v2334_v17, %v2328_v3  ;;  %v2341_v30 = vmul.f32 %v2336_v40, %v4150_v58 }
 0x23b   : > { %v2339_v51 = vmul.f32 %v2338_v23, %v4144_v56  ;;  %v2342_v24 = vmul.f32 %v2335_v18, %v4153_v59  ;;  %v3643_v23 = vld [vmem:[%s4660_s6 + $0x30] sm:$0xff] }
 0x23c   : > { %v2495_v31 = vpop.permute.xlu1 %2494 }
 0x23d   : > { %v2497_v32 = vpop.permute.xlu0 %2496  ;;  %2349 = vmatpush1.msra.mxu0 %v2339_v51  ;;  %2419 = vmatprep.subr.mxu1 %v2342_v24 }
 0x23e   : > { %v2504_v33 = vsel %vm905_vm4, %v2495_v31, %v2497_v32  ;;  %3632 = vmatmul.mubr.msk.f32.vlgmr.msra.gmra.mrb[2].mxu0 %vm422_vm2, %v3631_v27  ;;  %2420 = vmatpush1.msra.mxu1 %v2341_v30 }
 0x23f   : > { %v2507_v56 = vmul.f32 %v2504_v33, %v4169_v16  ;;  %3633 = vmatmul.mubr.msk.f32.vlgmr.msra.gmra.mrb[2].mxu1 %vm422_vm2, %v3631_v27  ;;  %2579 = vmatprep.mubr.f32.mxu0 %v3847_v0 }
 0x240   : > { %v2499_v59 = vpop.permute.xlu1 %2498  ;;  %2650 = vmatprep.mubr.f32.mxu1 %v3847_v0 }
 0x241   : > { %v2503_v58 = vsel %vm905_vm4, %v2497_v32, %v2499_v59  ;;  %v2501_v34 = vpop.permute.xlu0 %2500  ;;  %2515 = vmatprep.subr.mxu0 %v2507_v56 }
 0x242   : > { %v2502_v35 = vsel %vm905_vm4, %v2499_v59, %v2501_v34  ;;  %v2505_v36 = vsel %vm905_vm4, %v2501_v34, %v2495_v31  ;;  %v2508_v44 = vmul.f32 %v2503_v58, %v4183_v28  ;;  %v3646_v59 = vld [vmem:[%s4660_s6 + $0x38] sm:$0xff] }
 0x243   : > { %v2506_v16 = vmul.f32 %v2505_v36, %v4177_v26  ;;  %v2509_v43 = vmul.f32 %v2502_v35, %v4186_v29 }
 0x244   : > { %v2813_v4 = vpop.permute.xlu1 %2812 }
 0x245   : > { %v2815_v11 = vpop.permute.xlu0 %2814  ;;  %2516 = vmatpush1.msra.mxu0 %v2506_v16  ;;  %2586 = vmatprep.subr.mxu1 %v2509_v43 }
 0x246   : > { %3635 = vmatmul.mubr.msk.f32.vlgmr.msra.gmra.mrb[2].mxu0 %vm422_vm2, %v3634_v20  ;;  %2587 = vmatpush1.msra.mxu1 %v2508_v44  ;;  %v2822_v13 = vsel %vm1240_vm5, %v2813_v4, %v2815_v11 }
 0x247   : > { %2666 = vmatprep.subr.mxu0 %v4358_v62  ;;  %3636 = vmatmul.mubr.msk.f32.vlgmr.msra.gmra.mrb[2].mxu1 %vm422_vm2, %v3634_v20  ;;  %v2824_v22 = vmul.f32 %v2822_v13, %v4214_v47  ;;  %v3780_v13 = vld [vmem:[%s3966_s26 + $0x8] sm:$0xff] }
 0x248   : > { %2667 = vmatpush1.msra.mxu0 %v4356_v1  ;;  %2737 = vmatprep.subr.mxu1 %v4366_v12  ;;  %v2817_v26 = vpop.permute.xlu1 %2816  ;;  %v3637_v12 = vld [vmem:[%s4660_s6 + $0x20] sm:$0xff] }
 0x249   : > { %2738 = vmatpush1.msra.mxu1 %v4364_v8  ;;  %v2821_v28 = vsel %vm1240_vm5, %v2815_v11, %v2817_v26  ;;  %v2819_v29 = vpop.permute.xlu0 %2818  ;;  %2730 = vmatprep.mubr.f32.mxu0 %v3847_v0 }
 0x24a   : > { %v2825_v62 = vmul.f32 %v2821_v28, %v4208_v45  ;;  %v2823_v21 = vsel %vm1240_vm5, %v2819_v29, %v2813_v4  ;;  %2801 = vmatprep.mubr.f32.mxu1 %v3847_v0  ;;  %v2820_v1 = vsel %vm1240_vm5, %v2817_v26, %v2819_v29  ;;  %v3779_v26 = vld [vmem:[%s3966_s26] sm:$0xff] }
 0x24b   : > { %v2827_v8 = vmul.f32 %v2823_v21, %v4211_v46  ;;  %v2826_v45 = vmul.f32 %v2820_v1, %v4217_v48  ;;  %v3781_v21 = vld [vmem:[%s3966_s26 + $0x10] sm:$0xff] }
 0x24c   : > { %2833 = vmatprep.subr.mxu0 %v2825_v62  ;;  %v2980_v19 = vpop.permute.xlu1 %2979 }
 0x24d   : > { %v2982_v14 = vpop.permute.xlu0 %2981  ;;  %2904 = vmatprep.subr.mxu1 %v2827_v8  ;;  %v3782_v8 = vld [vmem:[%s3966_s26 + $0x18] sm:$0xff]  ;;  %s3789_s26 = scalar_lea.vmem %s3788_s18, 1024 }
 0x24e   : > { %3638 = vmatmul.mubr.msk.f32.vlgmr.msra.gmra.mrb[2].mxu0 %vm422_vm2, %v3637_v12  ;;  %v2989_v47 = vsel %vm1424_vm6, %v2980_v19, %v2982_v14  ;;  %p3791_p1 = scmp.lt.s32.totalorder %s3789_s26, %s3783_s29 }
 0x24f   : > { %2834 = vmatpush1.msra.mxu0 %v2824_v22  ;;  %3639 = vmatmul.mubr.msk.f32.vlgmr.msra.gmra.mrb[2].mxu1 %vm422_vm2, %v3637_v12  ;;  %v2991_v2 = vmul.f32 %v2989_v47, %v4250_v6 }
 0x250   : > { %2905 = vmatpush1.msra.mxu1 %v2826_v45  ;;  %v2984_v15 = vpop.permute.xlu1 %2983  ;;  %2897 = vmatprep.mubr.f32.mxu0 %v3847_v0  ;;  %p3792_p2 = por %p3791_p1, %p3790_p0 }
 0x251   : > { %v2988_v46 = vsel %vm1424_vm6, %v2982_v14, %v2984_v15  ;;  %v2986_v49 = vpop.permute.xlu0 %2985  ;;  %2968 = vmatprep.mubr.f32.mxu1 %v3847_v0 }
 0x252   : > { %v2992_v48 = vmul.f32 %v2988_v46, %v4244_v63  ;;  %v2990_v25 = vsel %vm1424_vm6, %v2986_v49, %v2980_v19  ;;  %v2987_v50 = vsel %vm1424_vm6, %v2984_v15, %v2986_v49  ;;  %p3793_p3 = pnand %p3792_p2, %p3786_p13 }
 0x253   : > { %v2994_v52 = vmul.f32 %v2990_v25, %v4247_v5  ;;  %v2993_v63 = vmul.f32 %v2987_v50, %v4253_v7 }
 0x254   : > { %3000 = vmatprep.subr.mxu0 %v2992_v48  ;;  %v3147_v3 = vpop.permute.xlu1 %3146 }
 0x255   : > { %v3149_v60 = vpop.permute.xlu0 %3148  ;;  %3071 = vmatprep.subr.mxu1 %v2994_v52 }
 0x256   : > { %3641 = vmatmul.mubr.msk.f32.vlgmr.msra.gmra.mrb[2].mxu0 %vm422_vm2, %v3640_v53  ;;  %v3156_v6 = vsel %vm1608_vm7, %v3147_v3, %v3149_v60 }
 0x257   : > { %3001 = vmatpush1.msra.mxu0 %v2991_v2  ;;  %3642 = vmatmul.mubr.msk.f32.vlgmr.msra.gmra.mrb[2].mxu1 %vm422_vm2, %v3640_v53  ;;  %v3158_v24 = vmul.f32 %v3156_v6, %v4283_v39 }
 0x258   : > { %3072 = vmatpush1.msra.mxu1 %v2993_v63  ;;  %v3151_v38 = vpop.permute.xlu1 %3150  ;;  %3064 = vmatprep.mubr.f32.mxu0 %v3847_v0 }
 0x259   : > { %v3155_v5 = vsel %vm1608_vm7, %v3149_v60, %v3151_v38  ;;  %v3153_v41 = vpop.permute.xlu0 %3152  ;;  %3135 = vmatprep.mubr.f32.mxu1 %v3847_v0 }
 0x25a   : > { %v3159_v7 = vmul.f32 %v3155_v5, %v4277_v9  ;;  %v3157_v40 = vsel %vm1608_vm7, %v3153_v41, %v3147_v3  ;;  %v3154_v17 = vsel %vm1608_vm7, %v3151_v38, %v3153_v41 }
 0x25b   : > { %v3161_v18 = vmul.f32 %v3157_v40, %v4280_v37  ;;  %v3160_v9 = vmul.f32 %v3154_v17, %v4286_v42 }
 0x25c   : > { %3167 = vmatprep.subr.mxu0 %v3159_v7  ;;  %v3314_v51 = vpop.permute.xlu1 %3313 }
 0x25d   : > { %v3316_v27 = vpop.permute.xlu0 %3315  ;;  %3238 = vmatprep.subr.mxu1 %v3161_v18 }
 0x25e   : > { %3644 = vmatmul.mubr.msk.f32.vlgmr.msra.gmra.mrb[2].mxu0 %vm422_vm2, %v3643_v23  ;;  %v3323_v39 = vsel %vm1792_vm8, %v3314_v51, %v3316_v27 }
 0x25f   : > { %3168 = vmatpush1.msra.mxu0 %v3158_v24  ;;  %3645 = vmatmul.mubr.msk.f32.vlgmr.msra.gmra.mrb[2].mxu1 %vm422_vm2, %v3643_v23  ;;  %v3325_v58 = vmul.f32 %v4321_v57, %v3323_v39 }
 0x260   : > { %3239 = vmatpush1.msra.mxu1 %v3160_v9  ;;  %v3318_v30 = vpop.permute.xlu1 %3317  ;;  %3231 = vmatprep.mubr.f32.mxu0 %v3847_v0 }
 0x261   : > { %v3322_v37 = vsel %vm1792_vm8, %v3316_v27, %v3318_v30  ;;  %v3320_v31 = vpop.permute.xlu0 %3319  ;;  %3302 = vmatprep.mubr.f32.mxu1 %v3847_v0 }
 0x262   : > { %v3326_v42 = vmul.f32 %v4311_v54, %v3322_v37  ;;  %v3324_v32 = vsel %vm1792_vm8, %v3320_v31, %v3314_v51  ;;  %v3321_v33 = vsel %vm1792_vm8, %v3318_v30, %v3320_v31 }
 0x263   : > { %v3328_v56 = vmul.f32 %v4316_v55, %v3324_v32  ;;  %v3327_v54 = vmul.f32 %v4328_v61, %v3321_v33 }
 0x264   : > { %3334 = vmatprep.subr.mxu0 %v3326_v42 }
 0x265   : > { %3405 = vmatprep.subr.mxu1 %v3328_v56 }
 0x266   : > { %3647 = vmatmul.mubr.msk.f32.vlgmr.msra.gmra.mrb[2].mxu0 %vm422_vm2, %v3646_v59 }
 0x267   : > { %3335 = vmatpush1.msra.mxu0 %v3325_v58  ;;  %3648 = vmatmul.mubr.msk.f32.vlgmr.msra.gmra.mrb[2].mxu1 %vm422_vm2, %v3646_v59 }
 0x268   : > { %3406 = vmatpush1.msra.mxu1 %v3327_v54  ;;  %3398 = vmatprep.mubr.f32.mxu0 %v3847_v0 }
 0x269   : > { %3469 = vmatprep.mubr.f32.mxu1 %v3847_v0 }
 0x26e   : > { %3650 = vmatmul.mubr.msk.f32.vlgmr.msra.gmra.mrb[2].mxu0 %vm422_vm2, %v3649_v10 }
 0x26f   : > { %3651 = vmatmul.mubr.msk.f32.vlgmr.msra.gmra.mrb[2].mxu1 %vm422_vm2, %v3649_v10 }
 0x271   : > { %v3484_v55 = vpop.permute.xlu1 %3483 }
 0x272   : > { %v3494_v0 = vpop.permute.xlu0 %3493 }
 0x341   : > { %v3400_v57 = vpop.f32.mrb[2].mxu0 }
 0x342   : > { %v3486_v61 = vmul.f32 %v3484_v55, %v3400_v57  ;;  %v3402_v34 = vpop.f32.mrb[3].mxu0  ;;  %v3471_v35 = vpop.f32.mrb[2].mxu1 }
 0x343   : > { %v3487_v36 = vmul.f32 %v3484_v55, %v3402_v34  ;;  %v3488_v16 = vmul.f32 %v3484_v55, %v3471_v35  ;;  %v3473_v43 = vpop.f32.mrb[3].mxu1 }
 0x344   : > { %v3496_v20 = vadd.f32 %v3494_v0, %v3486_v61  ;;  %v3489_v44 = vmul.f32 %v3484_v55, %v3473_v43 }
 0x345   : > { %v3497_v4 = vadd.f32 %v3494_v0, %v3487_v36  ;;  %v3498_v11 = vadd.f32 %v3494_v0, %v3488_v16 }
 0x346   : > { %v3500_v28 = vadd.f32 %v3779_v26, %v3496_v20  ;;  %v3499_v29 = vadd.f32 %v3494_v0, %v3489_v44 }
 0x347   : > { %v3501_v62 = vadd.f32 %v3780_v13, %v3497_v4  ;;  %v3502_v1 = vadd.f32 %v3781_v21, %v3498_v11 }
 0x348   : > { %3504 = vst [vmem:[%s329_s24] sm:$0xff] %v3500_v28  ;;  %v3503_v12 = vadd.f32 %v3782_v8, %v3499_v29 }
 0x349   : > { %3505 = vst [vmem:[%s329_s24 + $0x8] sm:$0xff] %v3501_v62  ;;  %3652 = vst [vmem:[%s329_s24 + $0x10] sm:$0xff] %v3502_v1 }
 0x34a   : > { %3653 = vst [vmem:[%s329_s24 + $0x18] sm:$0xff] %v3503_v12 }
 0x34b   : > { %3796 = shalt.err (!%p3793_p3)
}
 0x34c   : > { %s3797_s22 = scalar_lea.hbm %s4608_s5, 512  ;;  %s3801_s10 = scalar_lea.hbm %s4663_s9, 1024 }
 0x34d   : > { %p3798_p4 = scmp.ne.s32.totalorder %s4608_s5, %s3797_s22  ;;  %p3802_p9 = scmp.lt.u32.totalorder %s4608_s5, %s4663_s9 }
 0x34e   : > { %p3803_p10 = scmp.lt.u32.totalorder %s3801_s10, %s3797_s22  ;;  %p3805_p12 = scmp.lt.u32.totalorder %s3797_s22, %s4608_s5 }
 0x34f   : > { %p3799_p7 = pnand %p3798_p4, %p3950_p5 }
 0x350   : > { %p3804_p11 = por %p3803_p10, %p3802_p9 }
 0x351   : > { %p3800_p8 = pneg %p3799_p7 }
 0x352   : > { %p3806_p13 = por %p3805_p12, %p3804_p11 }
 0x354   : > { %p3807_p0 = pnand %p3806_p13, %p3800_p8 }
 0x356   : > { %3810 = shalt.err (!%p3807_p0)
}
 0x357   : > { %s3858_s29 = smov 256  }
 0x358   : > { %3727 = dma.vmem_to_hbm [thread:$0]  (%p3950_p5), %s4600_s25, 512, %s4608_s5, %s4612_s28, %s3858_s29, %s3858_s29, %s3848_s27  }
 0x359 PF: > { %p3733_p1 = scmp.ge.s32.totalorder %s3845_s14, 2  ;;  %s3539_s30 = sand.u32 1, %s3833_s11  }
 0x35a   : > { %s3540_s18 = scalar_lea.sflag [#allocation4], %s3539_s30 }
 0x35b   : > { %p3730_p2 = pnand %p3733_p1, %p3954_p6 }
 0x35d   : > { %3828 = dma.done.wait (!%p3730_p2), %s3540_s18, 512  }
 0x35e   : > { %3830 = vsyncadd (!%p3730_p2), %s3540_s18, 4294966784  ;;  %p20_p3 = scmp.ge.s32.totalorder %s3937_s16, 4   ;;  %s4678_s11 = smov %s3837_s12 }
 0x35f   : > { %s4679_s12 = smov %s3841_s13  ;;  %s4680_s13 = smov %s3948_s19 }
 0x360   : > { %s4681_s14 = smov %s3937_s16  ;;  %22 = sbr.rel (!%p20_p3) target bundleno = 5 (0x5), region = 109 }
 0x367   :  { %3545 = vsyncpa [#allocation4], 1 }
 0x368   :  { %3547 = vsyncpa [#allocation4 + $0x1], 1 }

</bundles_post_ra>
